<compile_context>
chip_gen: v5e
topology: v5e:2x2
jax: 0.10.0
libtpu: 0.0.40
codegen_flags: <defaults>
</compile_context>

<pallas_src>
import jax
import jax.numpy as jnp
from jax.experimental import pallas as pl
from jax.experimental.pallas import tpu as pltpu


# ------------------------------ helpers ------------------------------------

def _vmem_limit_bytes():
    """Scoped-VMEM budget sized per generation (v7x: 64 MiB/TC, v5e/v6e: 128)."""
    try:
        cap = int(pltpu.get_tpu_info().vmem_capacity_bytes)
    except Exception:
        cap = 64 * 1024 * 1024  # conservative fallback
    return min(64 * 1024 * 1024, cap // 2)


def _compiler_params():
    return pltpu.CompilerParams(
        dimension_semantics=("parallel",),        # batch axis: megacore-shardable
        vmem_limit_bytes=_vmem_limit_bytes())


def _conv3x3_taps(x, w_ref, H, W):
    """3x3/stride-1 conv as 9 shifted MXU dots with f32 accumulation.

    x:     (H+2, W+2, Cin) bf16 value (1-pixel zero halo already applied)
    w_ref: (9, Cin, Cout) bf16 ref, tap-major (t = kh*3 + kw)
    returns (H*W, Cout) f32
    """
    Cin = x.shape[-1]
    Cout = w_ref.shape[-1]
    acc = jnp.zeros((H * W, Cout), jnp.float32)
    for t in range(9):
        di, dj = t // 3, t % 3
        patch = x[di:di + H, dj:dj + W, :].reshape(H * W, Cin)
        acc = acc + jnp.dot(patch, w_ref[t],
                            preferred_element_type=jnp.float32)
    return acc


# ----------------------------- Pallas kernels -------------------------------

def _conv3x3_relu_kernel(xp_ref, w_ref, b_ref, o_ref):
    # xp_ref: (1, H+2, W+2, Cin) bf16 ; w_ref: (9, Cin, Cout) bf16
    # b_ref : (1, Cout) f32           ; o_ref: (1, H, W, Cout) bf16
    _, Hp, Wp, _ = xp_ref.shape
    H, W = Hp - 2, Wp - 2
    x = xp_ref[0]
    acc = _conv3x3_taps(x, w_ref, H, W)
    y = jnp.maximum(acc + b_ref[...], 0.0)          # bias + ReLU once, post-loop
    o_ref[...] = y.reshape(o_ref.shape).astype(o_ref.dtype)


def _conv3x3_relu_pool_fc_tanh_kernel(fp_ref, w_ref, b_ref,
                                      wfc_ref, bfc_ref, o_ref):
    # Second conv with the head fused into its epilogue:
    #   conv3x3 + ReLU -> spatial mean -> fc -> tanh  (feature map stays in VMEM)
    _, Hp, Wp, _ = fp_ref.shape
    H, W = Hp - 2, Wp - 2
    x = fp_ref[0]
    acc = _conv3x3_taps(x, w_ref, H, W)
    feat = jnp.maximum(acc + b_ref[...], 0.0)       # (H*W, Cmid) f32
    pooled = jnp.sum(feat, axis=0, keepdims=True) * (1.0 / (H * W))  # (1, Cmid)
    out = jnp.dot(pooled, wfc_ref[...], preferred_element_type=jnp.float32)
    out = out + bfc_ref[...]
    o_ref[...] = jnp.tanh(out).reshape(o_ref.shape).astype(o_ref.dtype)


# ------------------------------ wrappers ------------------------------------

def _pack_conv_weight(w_oihw):
    """(Cout, Cin, 3, 3) -> (9, Cin, Cout), tap-major, bf16 for the MXU."""
    Cout, Cin = w_oihw.shape[0], w_oihw.shape[1]
    return jnp.transpose(w_oihw, (2, 3, 1, 0)).reshape(
        9, Cin, Cout).astype(jnp.bfloat16)


def conv3x3_relu(x_nhwc, w_oihw, b):
    """Conv(3x3, s=1, p=1) + bias + ReLU. One grid step per batch element."""
    B, H, W, Cin = x_nhwc.shape
    Cout = w_oihw.shape[0]
    xp = jnp.pad(x_nhwc.astype(jnp.bfloat16), ((0, 0), (1, 1), (1, 1), (0, 0)))
    w_mat = _pack_conv_weight(w_oihw)
    return pl.pallas_call(
        _conv3x3_relu_kernel,
        out_shape=jax.ShapeDtypeStruct((B, H, W, Cout), jnp.bfloat16),
        grid=(B,),
        in_specs=[
            pl.BlockSpec((1, H + 2, W + 2, Cin), lambda i: (i, 0, 0, 0)),
            pl.BlockSpec((9, Cin, Cout), lambda i: (0, 0, 0)),
            pl.BlockSpec((1, Cout), lambda i: (0, 0)),
        ],
        out_specs=pl.BlockSpec((1, H, W, Cout), lambda i: (i, 0, 0, 0)),
        compiler_params=_compiler_params(),
    )(xp, w_mat, b.reshape(1, Cout).astype(jnp.float32))


def conv3x3_relu_pool_fc_tanh(f_nhwc, w_oihw, b, w_fc, b_fc):
    """Second conv with fused spatial mean-pool + Linear + tanh epilogue."""
    B, H, W, Cin = f_nhwc.shape
    Cout = w_oihw.shape[0]
    hidden = w_fc.shape[0]
    fp = jnp.pad(f_nhwc.astype(jnp.bfloat16), ((0, 0), (1, 1), (1, 1), (0, 0)))
    w_mat = _pack_conv_weight(w_oihw)
    w_fc_t = jnp.transpose(w_fc).astype(jnp.float32)   # (Cout, hidden): x @ W.T
    out = pl.pallas_call(
        _conv3x3_relu_pool_fc_tanh_kernel,
        out_shape=jax.ShapeDtypeStruct((B, 1, hidden), jnp.float32),
        grid=(B,),
        in_specs=[
            pl.BlockSpec((1, H + 2, W + 2, Cin), lambda i: (i, 0, 0, 0)),
            pl.BlockSpec((9, Cin, Cout), lambda i: (0, 0, 0)),
            pl.BlockSpec((1, Cout), lambda i: (0, 0)),
            pl.BlockSpec((Cout, hidden), lambda i: (0, 0)),
            pl.BlockSpec((1, hidden), lambda i: (0, 0)),
        ],
        out_specs=pl.BlockSpec((1, 1, hidden), lambda i: (i, 0, 0)),
        compiler_params=_compiler_params(),
    )(fp, w_mat, b.reshape(1, Cout).astype(jnp.float32),
      w_fc_t, b_fc.reshape(1, hidden).astype(jnp.float32))
    return out.reshape(B, hidden)


class ImageEncoderPallas:
    """JAX/Pallas equivalent of recipe.joint_embedding.ImageEncoder."""

    def __init__(self, hidden_size, in_feats=32, in_channels=3,
                 key=jax.random.PRNGKey(0)):
        k1, k2, k3 = jax.random.split(key, 3)
        # Synthetic backbone params (deterministic).
        self.w1 = 0.1 * jax.random.normal(k1, (in_feats, in_channels, 3, 3),
                                          jnp.float32)
        self.b1 = jnp.zeros((in_feats,), jnp.float32)
        self.w2 = 0.1 * jax.random.normal(k2, (in_feats, in_feats, 3, 3),
                                          jnp.float32)
        self.b2 = jnp.zeros((in_feats,), jnp.float32)
        # fc = nn.Linear(in_feats, hidden_size): PyTorch uniform(-1/sqrt(fan_in))
        kw, kb = jax.random.split(k3)
        bound = 1.0 / (in_feats ** 0.5)
        self.w_fc = jax.random.uniform(kw, (hidden_size, in_feats),
                                       jnp.float32, -bound, bound)
        self.b_fc = jax.random.uniform(kb, (hidden_size,),
                                       jnp.float32, -bound, bound)

    def __call__(self, images_nchw):
        # PyTorch conv input is NCHW -> convert to NHWC for the kernels.
        x = jnp.transpose(images_nchw, (0, 2, 3, 1))
        x = conv3x3_relu(x, self.w1, self.b1)              # backbone layer 1
        # backbone layer 2 + mean-pool + fc + tanh, fused into one kernel
        return conv3x3_relu_pool_fc_tanh(x, self.w2, self.b2,
                                         self.w_fc, self.b_fc)


# ------------------------------ reference (pure JAX) ------------------------

def _reference_forward(enc, images_nchw):
    x = jnp.transpose(images_nchw, (0, 2, 3, 1))

    def conv(x, w, b):
        y = jax.lax.conv_general_dilated(
            x, jnp.transpose(w, (2, 3, 1, 0)), (1, 1), 'SAME',
            dimension_numbers=('NHWC', 'HWIO', 'NHWC'))
        return jnp.maximum(y + b, 0.0)

    x = conv(x, enc.w1, enc.b1)
    x = conv(x, enc.w2, enc.b2)
    pooled = jnp.mean(x, axis=(1, 2))
    return jnp.tanh(pooled @ enc.w_fc.T + enc.b_fc)


if __name__ == "__main__":
    key = jax.random.PRNGKey(0)
    k_img, k_params = jax.random.split(key)

    B, C, H, W = 2, 3, 16, 16
    hidden_size = 32
    in_feats = 32

    images = jax.random.normal(k_img, (B, C, H, W), jnp.float32)  # NCHW

    encoder = ImageEncoderPallas(hidden_size, in_feats=in_feats,
                                 in_channels=C, key=k_params)

    forward = jax.jit(lambda imgs: encoder(imgs))
    out = jax.block_until_ready(forward(images))

    assert out.shape == (B, hidden_size), out.shape
    assert bool(jnp.all(jnp.isfinite(out)))

    ref = jax.block_until_ready(_reference_forward(encoder, images))
    # bf16 MXU operands with f32 accumulation -> compare at bf16-level tolerance.
    assert jnp.allclose(out, ref, atol=2e-2, rtol=2e-2), \
        float(jnp.max(jnp.abs(out - ref)))

    print("KERNEL_OK")
</pallas_src>

<mosaic_0001>
module attributes {stable_mosaic.version = 11 : i64} {
  func.func @_conv3x3_relu_pool_fc_tanh_kernel(%arg0: i32, %arg1: memref<1x18x18x32xbf16, #tpu.memory_space<vmem>>, %arg2: memref<9x32x32xbf16, #tpu.memory_space<vmem>>, %arg3: memref<1x32xf32, #tpu.memory_space<vmem>>, %arg4: memref<32x32xf32, #tpu.memory_space<vmem>>, %arg5: memref<1x32xf32, #tpu.memory_space<vmem>>, %arg6: memref<1x1x32xf32, #tpu.memory_space<vmem>>) attributes {dimension_semantics = [#tpu.dimension_semantics<parallel>], iteration_bounds = array<i64: 2>, scalar_prefetch = 0 : i64, scratch_operands = 0 : i64, tpu.core_type = #tpu.core_type<tc>, window_params = [{transform_indices = @transform_0, window_bounds = array<i64: 1, 18, 18, 32>}, {pipeline_mode = #tpu.pipeline_mode<synchronous>, transform_indices = @transform_1, window_bounds = array<i64: 9, 32, 32>}, {pipeline_mode = #tpu.pipeline_mode<synchronous>, transform_indices = @transform_2, window_bounds = array<i64: 1, 32>}, {pipeline_mode = #tpu.pipeline_mode<synchronous>, transform_indices = @transform_3, window_bounds = array<i64: 32, 32>}, {pipeline_mode = #tpu.pipeline_mode<synchronous>, transform_indices = @transform_4, window_bounds = array<i64: 1, 32>}, {transform_indices = @transform_5, window_bounds = array<i64: 1, 1, 32>}]} {
    %c0 = arith.constant 0 : index
    %c0_0 = arith.constant 0 : index
    %c0_1 = arith.constant 0 : index
    %c0_2 = arith.constant 0 : index
    %0 = vector.load %arg1[%c0, %c0_0, %c0_1, %c0_2] : memref<1x18x18x32xbf16, #tpu.memory_space<vmem>>, vector<1x18x18x32xbf16>
    %1 = vector.shape_cast %0 : vector<1x18x18x32xbf16> to vector<18x18x32xbf16>
    %cst = arith.constant 0.000000e+00 : f32
    %2 = vector.broadcast %cst : f32 to vector<256x32xf32>
    %3 = vector.extract_strided_slice %1 {offsets = [0, 0, 0], sizes = [16, 16, 32], strides = [1, 1, 1]} : vector<18x18x32xbf16> to vector<16x16x32xbf16>
    %4 = vector.shape_cast %3 : vector<16x16x32xbf16> to vector<256x32xbf16>
    %c0_3 = arith.constant 0 : index
    %c0_4 = arith.constant 0 : index
    %c0_5 = arith.constant 0 : index
    %5 = vector.load %arg2[%c0_3, %c0_4, %c0_5] : memref<9x32x32xbf16, #tpu.memory_space<vmem>>, vector<1x32x32xbf16>
    %6 = vector.shape_cast %5 : vector<1x32x32xbf16> to vector<32x32xbf16>
    %cst_6 = arith.constant dense<0.000000e+00> : vector<256x32xf32>
    %7 = tpu.matmul %4, %6, %cst_6 {dimension_numbers = #tpu.dot_dimension_numbers<[1], [0], [0], [1], [0, 0, 1, 1], [], []>} : vector<256x32xbf16>, vector<32x32xbf16>, vector<256x32xf32> -> vector<256x32xf32>
    %8 = arith.addf %2, %7 : vector<256x32xf32>
    %9 = vector.extract_strided_slice %1 {offsets = [0, 1, 0], sizes = [16, 16, 32], strides = [1, 1, 1]} : vector<18x18x32xbf16> to vector<16x16x32xbf16>
    %10 = vector.shape_cast %9 : vector<16x16x32xbf16> to vector<256x32xbf16>
    %c1 = arith.constant 1 : index
    %c0_7 = arith.constant 0 : index
    %c0_8 = arith.constant 0 : index
    %11 = vector.load %arg2[%c1, %c0_7, %c0_8] : memref<9x32x32xbf16, #tpu.memory_space<vmem>>, vector<1x32x32xbf16>
    %12 = vector.shape_cast %11 : vector<1x32x32xbf16> to vector<32x32xbf16>
    %cst_9 = arith.constant dense<0.000000e+00> : vector<256x32xf32>
    %13 = tpu.matmul %10, %12, %cst_9 {dimension_numbers = #tpu.dot_dimension_numbers<[1], [0], [0], [1], [0, 0, 1, 1], [], []>} : vector<256x32xbf16>, vector<32x32xbf16>, vector<256x32xf32> -> vector<256x32xf32>
    %14 = arith.addf %8, %13 : vector<256x32xf32>
    %15 = vector.extract_strided_slice %1 {offsets = [0, 2, 0], sizes = [16, 16, 32], strides = [1, 1, 1]} : vector<18x18x32xbf16> to vector<16x16x32xbf16>
    %16 = vector.shape_cast %15 : vector<16x16x32xbf16> to vector<256x32xbf16>
    %c2 = arith.constant 2 : index
    %c0_10 = arith.constant 0 : index
    %c0_11 = arith.constant 0 : index
    %17 = vector.load %arg2[%c2, %c0_10, %c0_11] : memref<9x32x32xbf16, #tpu.memory_space<vmem>>, vector<1x32x32xbf16>
    %18 = vector.shape_cast %17 : vector<1x32x32xbf16> to vector<32x32xbf16>
    %cst_12 = arith.constant dense<0.000000e+00> : vector<256x32xf32>
    %19 = tpu.matmul %16, %18, %cst_12 {dimension_numbers = #tpu.dot_dimension_numbers<[1], [0], [0], [1], [0, 0, 1, 1], [], []>} : vector<256x32xbf16>, vector<32x32xbf16>, vector<256x32xf32> -> vector<256x32xf32>
    %20 = arith.addf %14, %19 : vector<256x32xf32>
    %21 = vector.extract_strided_slice %1 {offsets = [1, 0, 0], sizes = [16, 16, 32], strides = [1, 1, 1]} : vector<18x18x32xbf16> to vector<16x16x32xbf16>
    %22 = vector.shape_cast %21 : vector<16x16x32xbf16> to vector<256x32xbf16>
    %c3 = arith.constant 3 : index
    %c0_13 = arith.constant 0 : index
    %c0_14 = arith.constant 0 : index
    %23 = vector.load %arg2[%c3, %c0_13, %c0_14] : memref<9x32x32xbf16, #tpu.memory_space<vmem>>, vector<1x32x32xbf16>
    %24 = vector.shape_cast %23 : vector<1x32x32xbf16> to vector<32x32xbf16>
    %cst_15 = arith.constant dense<0.000000e+00> : vector<256x32xf32>
    %25 = tpu.matmul %22, %24, %cst_15 {dimension_numbers = #tpu.dot_dimension_numbers<[1], [0], [0], [1], [0, 0, 1, 1], [], []>} : vector<256x32xbf16>, vector<32x32xbf16>, vector<256x32xf32> -> vector<256x32xf32>
    %26 = arith.addf %20, %25 : vector<256x32xf32>
    %27 = vector.extract_strided_slice %1 {offsets = [1, 1, 0], sizes = [16, 16, 32], strides = [1, 1, 1]} : vector<18x18x32xbf16> to vector<16x16x32xbf16>
    %28 = vector.shape_cast %27 : vector<16x16x32xbf16> to vector<256x32xbf16>
    %c4 = arith.constant 4 : index
    %c0_16 = arith.constant 0 : index
    %c0_17 = arith.constant 0 : index
    %29 = vector.load %arg2[%c4, %c0_16, %c0_17] : memref<9x32x32xbf16, #tpu.memory_space<vmem>>, vector<1x32x32xbf16>
    %30 = vector.shape_cast %29 : vector<1x32x32xbf16> to vector<32x32xbf16>
    %cst_18 = arith.constant dense<0.000000e+00> : vector<256x32xf32>
    %31 = tpu.matmul %28, %30, %cst_18 {dimension_numbers = #tpu.dot_dimension_numbers<[1], [0], [0], [1], [0, 0, 1, 1], [], []>} : vector<256x32xbf16>, vector<32x32xbf16>, vector<256x32xf32> -> vector<256x32xf32>
    %32 = arith.addf %26, %31 : vector<256x32xf32>
    %33 = vector.extract_strided_slice %1 {offsets = [1, 2, 0], sizes = [16, 16, 32], strides = [1, 1, 1]} : vector<18x18x32xbf16> to vector<16x16x32xbf16>
    %34 = vector.shape_cast %33 : vector<16x16x32xbf16> to vector<256x32xbf16>
    %c5 = arith.constant 5 : index
    %c0_19 = arith.constant 0 : index
    %c0_20 = arith.constant 0 : index
    %35 = vector.load %arg2[%c5, %c0_19, %c0_20] : memref<9x32x32xbf16, #tpu.memory_space<vmem>>, vector<1x32x32xbf16>
    %36 = vector.shape_cast %35 : vector<1x32x32xbf16> to vector<32x32xbf16>
    %cst_21 = arith.constant dense<0.000000e+00> : vector<256x32xf32>
    %37 = tpu.matmul %34, %36, %cst_21 {dimension_numbers = #tpu.dot_dimension_numbers<[1], [0], [0], [1], [0, 0, 1, 1], [], []>} : vector<256x32xbf16>, vector<32x32xbf16>, vector<256x32xf32> -> vector<256x32xf32>
    %38 = arith.addf %32, %37 : vector<256x32xf32>
    %39 = vector.extract_strided_slice %1 {offsets = [2, 0, 0], sizes = [16, 16, 32], strides = [1, 1, 1]} : vector<18x18x32xbf16> to vector<16x16x32xbf16>
    %40 = vector.shape_cast %39 : vector<16x16x32xbf16> to vector<256x32xbf16>
    %c6 = arith.constant 6 : index
    %c0_22 = arith.constant 0 : index
    %c0_23 = arith.constant 0 : index
    %41 = vector.load %arg2[%c6, %c0_22, %c0_23] : memref<9x32x32xbf16, #tpu.memory_space<vmem>>, vector<1x32x32xbf16>
    %42 = vector.shape_cast %41 : vector<1x32x32xbf16> to vector<32x32xbf16>
    %cst_24 = arith.constant dense<0.000000e+00> : vector<256x32xf32>
    %43 = tpu.matmul %40, %42, %cst_24 {dimension_numbers = #tpu.dot_dimension_numbers<[1], [0], [0], [1], [0, 0, 1, 1], [], []>} : vector<256x32xbf16>, vector<32x32xbf16>, vector<256x32xf32> -> vector<256x32xf32>
    %44 = arith.addf %38, %43 : vector<256x32xf32>
    %45 = vector.extract_strided_slice %1 {offsets = [2, 1, 0], sizes = [16, 16, 32], strides = [1, 1, 1]} : vector<18x18x32xbf16> to vector<16x16x32xbf16>
    %46 = vector.shape_cast %45 : vector<16x16x32xbf16> to vector<256x32xbf16>
    %c7 = arith.constant 7 : index
    %c0_25 = arith.constant 0 : index
    %c0_26 = arith.constant 0 : index
    %47 = vector.load %arg2[%c7, %c0_25, %c0_26] : memref<9x32x32xbf16, #tpu.memory_space<vmem>>, vector<1x32x32xbf16>
    %48 = vector.shape_cast %47 : vector<1x32x32xbf16> to vector<32x32xbf16>
    %cst_27 = arith.constant dense<0.000000e+00> : vector<256x32xf32>
    %49 = tpu.matmul %46, %48, %cst_27 {dimension_numbers = #tpu.dot_dimension_numbers<[1], [0], [0], [1], [0, 0, 1, 1], [], []>} : vector<256x32xbf16>, vector<32x32xbf16>, vector<256x32xf32> -> vector<256x32xf32>
    %50 = arith.addf %44, %49 : vector<256x32xf32>
    %51 = vector.extract_strided_slice %1 {offsets = [2, 2, 0], sizes = [16, 16, 32], strides = [1, 1, 1]} : vector<18x18x32xbf16> to vector<16x16x32xbf16>
    %52 = vector.shape_cast %51 : vector<16x16x32xbf16> to vector<256x32xbf16>
    %c8 = arith.constant 8 : index
    %c0_28 = arith.constant 0 : index
    %c0_29 = arith.constant 0 : index
    %53 = vector.load %arg2[%c8, %c0_28, %c0_29] : memref<9x32x32xbf16, #tpu.memory_space<vmem>>, vector<1x32x32xbf16>
    %54 = vector.shape_cast %53 : vector<1x32x32xbf16> to vector<32x32xbf16>
    %cst_30 = arith.constant dense<0.000000e+00> : vector<256x32xf32>
    %55 = tpu.matmul %52, %54, %cst_30 {dimension_numbers = #tpu.dot_dimension_numbers<[1], [0], [0], [1], [0, 0, 1, 1], [], []>} : vector<256x32xbf16>, vector<32x32xbf16>, vector<256x32xf32> -> vector<256x32xf32>
    %56 = arith.addf %50, %55 : vector<256x32xf32>
    %c0_31 = arith.constant 0 : index
    %c0_32 = arith.constant 0 : index
    %57 = vector.load %arg3[%c0_31, %c0_32] : memref<1x32xf32, #tpu.memory_space<vmem>>, vector<1x32xf32>
    %58 = vector.broadcast %57 : vector<1x32xf32> to vector<256x32xf32>
    %59 = arith.addf %56, %58 : vector<256x32xf32>
    %cst_33 = arith.constant 0.000000e+00 : f32
    %60 = vector.broadcast %cst_33 : f32 to vector<256x32xf32>
    %61 = arith.maximumf %59, %60 : vector<256x32xf32>
    %cst_34 = arith.constant dense<0.000000e+00> : vector<32xf32>
    %62 = vector.multi_reduction <add>, %61, %cst_34 [0] : vector<256x32xf32> to vector<32xf32>
    %63 = vector.shape_cast %62 : vector<32xf32> to vector<1x32xf32>
    %cst_35 = arith.constant 3.906250e-03 : f32
    %64 = vector.broadcast %cst_35 : f32 to vector<1x32xf32>
    %65 = arith.mulf %63, %64 : vector<1x32xf32>
    %c0_36 = arith.constant 0 : index
    %c0_37 = arith.constant 0 : index
    %66 = vector.load %arg4[%c0_36, %c0_37] : memref<32x32xf32, #tpu.memory_space<vmem>>, vector<32x32xf32>
    %cst_38 = arith.constant dense<0.000000e+00> : vector<1x32xf32>
    %67 = tpu.matmul %65, %66, %cst_38 {dimension_numbers = #tpu.dot_dimension_numbers<[1], [0], [0], [1], [0, 0, 1, 1], [], []>} : vector<1x32xf32>, vector<32x32xf32>, vector<1x32xf32> -> vector<1x32xf32>
    %c0_39 = arith.constant 0 : index
    %c0_40 = arith.constant 0 : index
    %68 = vector.load %arg5[%c0_39, %c0_40] : memref<1x32xf32, #tpu.memory_space<vmem>>, vector<1x32xf32>
    %69 = arith.addf %67, %68 : vector<1x32xf32>
    %70 = math.tanh %69 : vector<1x32xf32>
    %71 = vector.shape_cast %70 : vector<1x32xf32> to vector<1x1x32xf32>
    %c0_41 = arith.constant 0 : index
    %c0_42 = arith.constant 0 : index
    %c0_43 = arith.constant 0 : index
    %72 = vector.load %arg6[%c0_41, %c0_42, %c0_43] : memref<1x1x32xf32, #tpu.memory_space<vmem>>, vector<1x1x32xf32>
    tpu.vector_store %arg6[%c0_41, %c0_42, %c0_43], %71 {strides = array<i32>} : memref<1x1x32xf32, #tpu.memory_space<vmem>>, vector<1x1x32xf32>,
    return
  }
  func.func @transform_0(%arg0: i32) -> (i32, i32, i32, i32) {
    %c0_i32 = arith.constant 0 : i32
    %c0_i32_0 = arith.constant 0 : i32
    %c0_i32_1 = arith.constant 0 : i32
    %c0_i32_2 = arith.constant 0 : i32
    return %arg0, %c0_i32, %c0_i32_0, %c0_i32_1 : i32, i32, i32, i32
  }
  func.func @transform_1(%arg0: i32) -> (i32, i32, i32) {
    %c0_i32 = arith.constant 0 : i32
    %c0_i32_0 = arith.constant 0 : i32
    %c0_i32_1 = arith.constant 0 : i32
    %c0_i32_2 = arith.constant 0 : i32
    return %c0_i32, %c0_i32_0, %c0_i32_1 : i32, i32, i32
  }
  func.func @transform_2(%arg0: i32) -> (i32, i32) {
    %c0_i32 = arith.constant 0 : i32
    %c0_i32_0 = arith.constant 0 : i32
    %c0_i32_1 = arith.constant 0 : i32
    return %c0_i32, %c0_i32_0 : i32, i32
  }
  func.func @transform_3(%arg0: i32) -> (i32, i32) {
    %c0_i32 = arith.constant 0 : i32
    %c0_i32_0 = arith.constant 0 : i32
    %c0_i32_1 = arith.constant 0 : i32
    return %c0_i32, %c0_i32_0 : i32, i32
  }
  func.func @transform_4(%arg0: i32) -> (i32, i32) {
    %c0_i32 = arith.constant 0 : i32
    %c0_i32_0 = arith.constant 0 : i32
    %c0_i32_1 = arith.constant 0 : i32
    return %c0_i32, %c0_i32_0 : i32, i32
  }
  func.func @transform_5(%arg0: i32) -> (i32, i32, i32) {
    %c0_i32 = arith.constant 0 : i32
    %c0_i32_0 = arith.constant 0 : i32
    %c0_i32_1 = arith.constant 0 : i32
    return %arg0, %c0_i32, %c0_i32_0 : i32, i32, i32
  }
}

module attributes {stable_mosaic.version = 11 : i64} {
  func.func @_conv3x3_relu_kernel(%arg0: i32, %arg1: memref<1x18x18x3xbf16, #tpu.memory_space<vmem>>, %arg2: memref<9x3x32xbf16, #tpu.memory_space<vmem>>, %arg3: memref<1x32xf32, #tpu.memory_space<vmem>>, %arg4: memref<1x16x16x32xbf16, #tpu.memory_space<vmem>>) attributes {dimension_semantics = [#tpu.dimension_semantics<parallel>], iteration_bounds = array<i64: 2>, scalar_prefetch = 0 : i64, scratch_operands = 0 : i64, tpu.core_type = #tpu.core_type<tc>, window_params = [{transform_indices = @transform_0, window_bounds = array<i64: 1, 18, 18, 3>}, {pipeline_mode = #tpu.pipeline_mode<synchronous>, transform_indices = @transform_1, window_bounds = array<i64: 9, 3, 32>}, {pipeline_mode = #tpu.pipeline_mode<synchronous>, transform_indices = @transform_2, window_bounds = array<i64: 1, 32>}, {transform_indices = @transform_3, window_bounds = array<i64: 1, 16, 16, 32>}]} {
    %c0 = arith.constant 0 : index
    %c0_0 = arith.constant 0 : index
    %c0_1 = arith.constant 0 : index
    %c0_2 = arith.constant 0 : index
    %0 = vector.load %arg1[%c0, %c0_0, %c0_1, %c0_2] : memref<1x18x18x3xbf16, #tpu.memory_space<vmem>>, vector<1x18x18x3xbf16>
    %1 = vector.shape_cast %0 : vector<1x18x18x3xbf16> to vector<18x18x3xbf16>
    %cst = arith.constant 0.000000e+00 : f32
    %2 = vector.broadcast %cst : f32 to vector<256x32xf32>
    %3 = vector.extract_strided_slice %1 {offsets = [0, 0, 0], sizes = [16, 16, 3], strides = [1, 1, 1]} : vector<18x18x3xbf16> to vector<16x16x3xbf16>
    %4 = vector.shape_cast %3 : vector<16x16x3xbf16> to vector<256x3xbf16>
    %c0_3 = arith.constant 0 : index
    %c0_4 = arith.constant 0 : index
    %c0_5 = arith.constant 0 : index
    %5 = vector.load %arg2[%c0_3, %c0_4, %c0_5] : memref<9x3x32xbf16, #tpu.memory_space<vmem>>, vector<1x3x32xbf16>
    %6 = vector.shape_cast %5 : vector<1x3x32xbf16> to vector<3x32xbf16>
    %cst_6 = arith.constant dense<0.000000e+00> : vector<256x32xf32>
    %7 = tpu.matmul %4, %6, %cst_6 {dimension_numbers = #tpu.dot_dimension_numbers<[1], [0], [0], [1], [0, 0, 1, 1], [], []>} : vector<256x3xbf16>, vector<3x32xbf16>, vector<256x32xf32> -> vector<256x32xf32>
    %8 = arith.addf %2, %7 : vector<256x32xf32>
    %9 = vector.extract_strided_slice %1 {offsets = [0, 1, 0], sizes = [16, 16, 3], strides = [1, 1, 1]} : vector<18x18x3xbf16> to vector<16x16x3xbf16>
    %10 = vector.shape_cast %9 : vector<16x16x3xbf16> to vector<256x3xbf16>
    %c1 = arith.constant 1 : index
    %c0_7 = arith.constant 0 : index
    %c0_8 = arith.constant 0 : index
    %11 = vector.load %arg2[%c1, %c0_7, %c0_8] : memref<9x3x32xbf16, #tpu.memory_space<vmem>>, vector<1x3x32xbf16>
    %12 = vector.shape_cast %11 : vector<1x3x32xbf16> to vector<3x32xbf16>
    %cst_9 = arith.constant dense<0.000000e+00> : vector<256x32xf32>
    %13 = tpu.matmul %10, %12, %cst_9 {dimension_numbers = #tpu.dot_dimension_numbers<[1], [0], [0], [1], [0, 0, 1, 1], [], []>} : vector<256x3xbf16>, vector<3x32xbf16>, vector<256x32xf32> -> vector<256x32xf32>
    %14 = arith.addf %8, %13 : vector<256x32xf32>
    %15 = vector.extract_strided_slice %1 {offsets = [0, 2, 0], sizes = [16, 16, 3], strides = [1, 1, 1]} : vector<18x18x3xbf16> to vector<16x16x3xbf16>
    %16 = vector.shape_cast %15 : vector<16x16x3xbf16> to vector<256x3xbf16>
    %c2 = arith.constant 2 : index
    %c0_10 = arith.constant 0 : index
    %c0_11 = arith.constant 0 : index
    %17 = vector.load %arg2[%c2, %c0_10, %c0_11] : memref<9x3x32xbf16, #tpu.memory_space<vmem>>, vector<1x3x32xbf16>
    %18 = vector.shape_cast %17 : vector<1x3x32xbf16> to vector<3x32xbf16>
    %cst_12 = arith.constant dense<0.000000e+00> : vector<256x32xf32>
    %19 = tpu.matmul %16, %18, %cst_12 {dimension_numbers = #tpu.dot_dimension_numbers<[1], [0], [0], [1], [0, 0, 1, 1], [], []>} : vector<256x3xbf16>, vector<3x32xbf16>, vector<256x32xf32> -> vector<256x32xf32>
    %20 = arith.addf %14, %19 : vector<256x32xf32>
    %21 = vector.extract_strided_slice %1 {offsets = [1, 0, 0], sizes = [16, 16, 3], strides = [1, 1, 1]} : vector<18x18x3xbf16> to vector<16x16x3xbf16>
    %22 = vector.shape_cast %21 : vector<16x16x3xbf16> to vector<256x3xbf16>
    %c3 = arith.constant 3 : index
    %c0_13 = arith.constant 0 : index
    %c0_14 = arith.constant 0 : index
    %23 = vector.load %arg2[%c3, %c0_13, %c0_14] : memref<9x3x32xbf16, #tpu.memory_space<vmem>>, vector<1x3x32xbf16>
    %24 = vector.shape_cast %23 : vector<1x3x32xbf16> to vector<3x32xbf16>
    %cst_15 = arith.constant dense<0.000000e+00> : vector<256x32xf32>
    %25 = tpu.matmul %22, %24, %cst_15 {dimension_numbers = #tpu.dot_dimension_numbers<[1], [0], [0], [1], [0, 0, 1, 1], [], []>} : vector<256x3xbf16>, vector<3x32xbf16>, vector<256x32xf32> -> vector<256x32xf32>
    %26 = arith.addf %20, %25 : vector<256x32xf32>
    %27 = vector.extract_strided_slice %1 {offsets = [1, 1, 0], sizes = [16, 16, 3], strides = [1, 1, 1]} : vector<18x18x3xbf16> to vector<16x16x3xbf16>
    %28 = vector.shape_cast %27 : vector<16x16x3xbf16> to vector<256x3xbf16>
    %c4 = arith.constant 4 : index
    %c0_16 = arith.constant 0 : index
    %c0_17 = arith.constant 0 : index
    %29 = vector.load %arg2[%c4, %c0_16, %c0_17] : memref<9x3x32xbf16, #tpu.memory_space<vmem>>, vector<1x3x32xbf16>
    %30 = vector.shape_cast %29 : vector<1x3x32xbf16> to vector<3x32xbf16>
    %cst_18 = arith.constant dense<0.000000e+00> : vector<256x32xf32>
    %31 = tpu.matmul %28, %30, %cst_18 {dimension_numbers = #tpu.dot_dimension_numbers<[1], [0], [0], [1], [0, 0, 1, 1], [], []>} : vector<256x3xbf16>, vector<3x32xbf16>, vector<256x32xf32> -> vector<256x32xf32>
    %32 = arith.addf %26, %31 : vector<256x32xf32>
    %33 = vector.extract_strided_slice %1 {offsets = [1, 2, 0], sizes = [16, 16, 3], strides = [1, 1, 1]} : vector<18x18x3xbf16> to vector<16x16x3xbf16>
    %34 = vector.shape_cast %33 : vector<16x16x3xbf16> to vector<256x3xbf16>
    %c5 = arith.constant 5 : index
    %c0_19 = arith.constant 0 : index
    %c0_20 = arith.constant 0 : index
    %35 = vector.load %arg2[%c5, %c0_19, %c0_20] : memref<9x3x32xbf16, #tpu.memory_space<vmem>>, vector<1x3x32xbf16>
    %36 = vector.shape_cast %35 : vector<1x3x32xbf16> to vector<3x32xbf16>
    %cst_21 = arith.constant dense<0.000000e+00> : vector<256x32xf32>
    %37 = tpu.matmul %34, %36, %cst_21 {dimension_numbers = #tpu.dot_dimension_numbers<[1], [0], [0], [1], [0, 0, 1, 1], [], []>} : vector<256x3xbf16>, vector<3x32xbf16>, vector<256x32xf32> -> vector<256x32xf32>
    %38 = arith.addf %32, %37 : vector<256x32xf32>
    %39 = vector.extract_strided_slice %1 {offsets = [2, 0, 0], sizes = [16, 16, 3], strides = [1, 1, 1]} : vector<18x18x3xbf16> to vector<16x16x3xbf16>
    %40 = vector.shape_cast %39 : vector<16x16x3xbf16> to vector<256x3xbf16>
    %c6 = arith.constant 6 : index
    %c0_22 = arith.constant 0 : index
    %c0_23 = arith.constant 0 : index
    %41 = vector.load %arg2[%c6, %c0_22, %c0_23] : memref<9x3x32xbf16, #tpu.memory_space<vmem>>, vector<1x3x32xbf16>
    %42 = vector.shape_cast %41 : vector<1x3x32xbf16> to vector<3x32xbf16>
    %cst_24 = arith.constant dense<0.000000e+00> : vector<256x32xf32>
    %43 = tpu.matmul %40, %42, %cst_24 {dimension_numbers = #tpu.dot_dimension_numbers<[1], [0], [0], [1], [0, 0, 1, 1], [], []>} : vector<256x3xbf16>, vector<3x32xbf16>, vector<256x32xf32> -> vector<256x32xf32>
    %44 = arith.addf %38, %43 : vector<256x32xf32>
    %45 = vector.extract_strided_slice %1 {offsets = [2, 1, 0], sizes = [16, 16, 3], strides = [1, 1, 1]} : vector<18x18x3xbf16> to vector<16x16x3xbf16>
    %46 = vector.shape_cast %45 : vector<16x16x3xbf16> to vector<256x3xbf16>
    %c7 = arith.constant 7 : index
    %c0_25 = arith.constant 0 : index
    %c0_26 = arith.constant 0 : index
    %47 = vector.load %arg2[%c7, %c0_25, %c0_26] : memref<9x3x32xbf16, #tpu.memory_space<vmem>>, vector<1x3x32xbf16>
    %48 = vector.shape_cast %47 : vector<1x3x32xbf16> to vector<3x32xbf16>
    %cst_27 = arith.constant dense<0.000000e+00> : vector<256x32xf32>
    %49 = tpu.matmul %46, %48, %cst_27 {dimension_numbers = #tpu.dot_dimension_numbers<[1], [0], [0], [1], [0, 0, 1, 1], [], []>} : vector<256x3xbf16>, vector<3x32xbf16>, vector<256x32xf32> -> vector<256x32xf32>
    %50 = arith.addf %44, %49 : vector<256x32xf32>
    %51 = vector.extract_strided_slice %1 {offsets = [2, 2, 0], sizes = [16, 16, 3], strides = [1, 1, 1]} : vector<18x18x3xbf16> to vector<16x16x3xbf16>
    %52 = vector.shape_cast %51 : vector<16x16x3xbf16> to vector<256x3xbf16>
    %c8 = arith.constant 8 : index
    %c0_28 = arith.constant 0 : index
    %c0_29 = arith.constant 0 : index
    %53 = vector.load %arg2[%c8, %c0_28, %c0_29] : memref<9x3x32xbf16, #tpu.memory_space<vmem>>, vector<1x3x32xbf16>
    %54 = vector.shape_cast %53 : vector<1x3x32xbf16> to vector<3x32xbf16>
    %cst_30 = arith.constant dense<0.000000e+00> : vector<256x32xf32>
    %55 = tpu.matmul %52, %54, %cst_30 {dimension_numbers = #tpu.dot_dimension_numbers<[1], [0], [0], [1], [0, 0, 1, 1], [], []>} : vector<256x3xbf16>, vector<3x32xbf16>, vector<256x32xf32> -> vector<256x32xf32>
    %56 = arith.addf %50, %55 : vector<256x32xf32>
    %c0_31 = arith.constant 0 : index
    %c0_32 = arith.constant 0 : index
    %57 = vector.load %arg3[%c0_31, %c0_32] : memref<1x32xf32, #tpu.memory_space<vmem>>, vector<1x32xf32>
    %58 = vector.broadcast %57 : vector<1x32xf32> to vector<256x32xf32>
    %59 = arith.addf %56, %58 : vector<256x32xf32>
    %cst_33 = arith.constant 0.000000e+00 : f32
    %60 = vector.broadcast %cst_33 : f32 to vector<256x32xf32>
    %61 = arith.maximumf %59, %60 : vector<256x32xf32>
    %62 = vector.shape_cast %61 : vector<256x32xf32> to vector<1x16x16x32xf32>
    %63 = arith.truncf %62 : vector<1x16x16x32xf32> to vector<1x16x16x32xbf16>
    %c0_34 = arith.constant 0 : index
    %c0_35 = arith.constant 0 : index
    %c0_36 = arith.constant 0 : index
    %c0_37 = arith.constant 0 : index
    %64 = vector.load %arg4[%c0_34, %c0_35, %c0_36, %c0_37] : memref<1x16x16x32xbf16, #tpu.memory_space<vmem>>, vector<1x16x16x32xbf16>
    tpu.vector_store %arg4[%c0_34, %c0_35, %c0_36, %c0_37], %63 {strides = array<i32>} : memref<1x16x16x32xbf16, #tpu.memory_space<vmem>>, vector<1x16x16x32xbf16>,
    return
  }
  func.func @transform_0(%arg0: i32) -> (i32, i32, i32, i32) {
    %c0_i32 = arith.constant 0 : i32
    %c0_i32_0 = arith.constant 0 : i32
    %c0_i32_1 = arith.constant 0 : i32
    %c0_i32_2 = arith.constant 0 : i32
    return %arg0, %c0_i32, %c0_i32_0, %c0_i32_1 : i32, i32, i32, i32
  }
  func.func @transform_1(%arg0: i32) -> (i32, i32, i32) {
    %c0_i32 = arith.constant 0 : i32
    %c0_i32_0 = arith.constant 0 : i32
    %c0_i32_1 = arith.constant 0 : i32
    %c0_i32_2 = arith.constant 0 : i32
    return %c0_i32, %c0_i32_0, %c0_i32_1 : i32, i32, i32
  }
  func.func @transform_2(%arg0: i32) -> (i32, i32) {
    %c0_i32 = arith.constant 0 : i32
    %c0_i32_0 = arith.constant 0 : i32
    %c0_i32_1 = arith.constant 0 : i32
    return %c0_i32, %c0_i32_0 : i32, i32
  }
  func.func @transform_3(%arg0: i32) -> (i32, i32, i32, i32) {
    %c0_i32 = arith.constant 0 : i32
    %c0_i32_0 = arith.constant 0 : i32
    %c0_i32_1 = arith.constant 0 : i32
    %c0_i32_2 = arith.constant 0 : i32
    return %arg0, %c0_i32, %c0_i32_0, %c0_i32_1 : i32, i32, i32, i32
  }
}

</mosaic_0001>

<bundles_post_ra>
// kernel: _lambda_.2
= control target key start
LH: loop header
LB: loop body
LE: loop exit
PB: predicated region body
PF: predicated region fallthrough
CT: control target
= control target key end

     0   :  { %s2752_s12 = smov 0   ;;  %s3923_s0 = inlined_call_operand.vmem [shape: bf16[2,18,18,3], index: 0, kind: input, shape index: {}]   ;;  %s3924_s1 = inlined_call_operand.vmem [shape: bf16[9,3,32], index: 1, kind: input, shape index: {}]   ;;  %s3925_s2 = inlined_call_operand.vmem [shape: f32[1,32], index: 2, kind: input, shape index: {}]   ;;  %s3926_s3 = inlined_call_operand.vmem [shape: bf16[2,16,16,32], index: 3, kind: output, shape index: {}]  }
   0x1 LB: > { %s2430_s13 = sadd.s32 4294967295, %s2729_s12   ;;  %p2434_p0 = scmp.ge.s32.totalorder %s2729_s12, 1  ;;  %s2729_s12 = sphi %s2752_s12, %s13_s12  }
   0x2   : > { %p137_p1 = scmp.lt.s32.totalorder %s2729_s12, 3 }
   0x4   : > { %p138_p2 = pnand %p2434_p0, %p137_p1 }
   0x6   : > { %141 = sbr.rel (%p138_p2) target bundleno = 760 (0x2f8), region = 32 }
   0xb   : > { %v2438_v0 = vld [vmem:[%s3924_s1 + $0x2] sm:$0x3]  ;;  %vm713_vm0 = vcmask 1040384   ;;  %vm714_vm1 = vcmask 1041408   ;;  %p161_p3 = scmp.lt.s32.totalorder %s2430_s13, 1  ;;  %v2731_v1 = vmov 65535  }
   0xc   : > { %v715_v2 = vsel %vm713_vm0, 4294967295, %v2731_v1  ;;  %v2551_v4 = vld [vmem:[%s3924_s1 + $0x4] sm:$0x3]  ;;  %v2568_v7 = vld [vmem:[%s3924_s1 + $0x6] sm:$0x3]  ;;  %vm664_vm5 = vcmask 23552  }
   0xd   : > { %v2763_v3 = vsel %vm714_vm1, %v715_v2, 0  ;;  %s4068_s13 = smov (!%p161_p3, %s2430_s13), 1  ;;  %v226_v8 = vld [vmem:[%s3924_s1] sm:$0x3]  ;;  %v2589_v9 = vld [vmem:[%s3924_s1 + $0x8] sm:$0x3] }
   0xe   : > { %v718_v5 = vand.u32 %v2438_v0, %v2763_v3  ;;  %v1259_v6 = vand.u32 %v2551_v4, %v2763_v3  ;;  %s2704_s24 = smul.u32 216, %s4068_s13  ;;  %v1393_v10 = vand.u32 %v2568_v7, %v2763_v3  ;;  %v938_v11 = vand.u32 %v2763_v3, %v226_v8  ;;  %s2682_s11 = sshll.u32 %s4068_s13, 7 }
   0xf   : > { %v1549_v12 = vand.u32 %v2589_v9, %v2763_v3  ;;  %vm227_vm2 = vsmask.f32 3328  ;;  %vm228_vm3 = vsmask.f32 7440  ;;  %vm1045_vm6 = vcmask 1042432   ;;  %s3715_s16 = scalar_lea.vmem %s3926_s3, %s2682_s11 }
  0x10   : > { %2701 = vmatpush.bf16.msra.mxu1 %v718_v5  ;;  %2702 = vmatpush.bf16.msra.mxu2 %v718_v5  ;;  %s2788_s27 = scalar_lea.vmem %s3923_s0, %s2704_s24  ;;  %vm2815_vm4 = vmor %vm227_vm2, %vm228_vm3  ;;  %vm1046_vm7 = vcmask 1046532   ;;  %vm2342_vm9 = vcmask 257024  }
  0x11   : > { %2703 = vmatpush.bf16.msra.mxu3 %v718_v5  ;;  %727 = vmatpush.bf16.msra.mxu0 %v718_v5  ;;  %v2791_v13 = vld [vmem:[%s2788_s27 + $0x30] sm:$0xf]  ;;  %v2794_v14 = vld [vmem:[%s2788_s27 + $0x34] sm:$0xf]  ;;  %v2797_v15 = vld [vmem:[%s2788_s27 + $0x38] sm:$0x1] }
  0x12   : > { %v327_v16 = vshrl.u32 %v2791_v13, 16  ;;  %v330_v17 = vshll.u32 %v2791_v13, 16  ;;  %v336_v18 = vshll.u32 %v2794_v14, 16  ;;  %v340_v19 = vshrl.u32 %v2794_v14, 16  ;;  %v196_v20 = vld [vmem:[%s2788_s27 + $0x60] sm:$0xf]  ;;  %vm3118_vm8 = vmor %vm1045_vm6, %vm1046_vm7 }
  0x13   : > { %v346_v21 = vshll.u32 %v2797_v15, 16  ;;  %v2806_v22 = vld [vmem:[%s2788_s27 + $0x64] sm:$0xf]  ;;  %v198_v23 = vld [vmem:[%s2788_s27 + $0x68] sm:$0x1]  ;;  %v423_v24 = vshrl.u32 %v196_v20, 16 }
  0x14   : > { %1268 = vmatpush.bf16.msrb.mxu2 %v1259_v6  ;;  %947 = vmatpush.bf16.msrb.mxu1 %v938_v11  ;;  %v329_v25 = vrot.slane %v327_v16, 4  ;;  %v332_v26 = vrot.slane %v330_v17, 5  ;;  %v338_v27 = vrot.slane %v336_v18, 5  ;;  %v342_v28 = vrot.slane %v340_v19, 4  ;;  %v208_v29 = vld [vmem:[%s2788_s27 + $0x90] sm:$0xf] }
  0x15   : > { %1402 = vmatpush.bf16.msrb.mxu3 %v1393_v10  ;;  %1558 = vmatpush.bf16.msrb.mxu0 %v1549_v12  ;;  %v348_v30 = vrot.slane %v346_v21, 5  ;;  %v425_v31 = vrot.slane %v423_v24, 4  ;;  %v426_v32 = vshll.u32 %v196_v20, 16  ;;  %v432_v33 = vshll.u32 %v2806_v22, 16  ;;  %v209_v38 = vld [vmem:[%s2788_s27 + $0x94] sm:$0xf] }
  0x16   : > { %v333_v34 = vor.u32 %v332_v26, %v329_v25  ;;  %v343_v35 = vor.u32 %v342_v28, %v338_v27  ;;  %v436_v36 = vshrl.u32 %v2806_v22, 16  ;;  %v442_v37 = vshll.u32 %v198_v23, 16  ;;  %v210_v48 = vld [vmem:[%s2788_s27 + $0x98] sm:$0x1]  ;;  %v2825_v0 = vld [vmem:[%s2788_s27] sm:$0xf] }
  0x17   : > { %v428_v40 = vrot.slane %v426_v32, 5  ;;  %v434_v41 = vrot.slane %v432_v33, 5  ;;  %v519_v42 = vshrl.u32 %v208_v29, 16  ;;  %v522_v50 = vshll.u32 %v208_v29, 16  ;;  %v2832_v5 = vld [vmem:[%s2788_s27 + $0x4] sm:$0xf] }
  0x18   : > { %v334_v43 = vrot.slane %v333_v34, 4  ;;  %v344_v44 = vrot.slane %v343_v35, 4  ;;  %v438_v45 = vrot.slane %v436_v36, 4  ;;  %v444_v46 = vrot.slane %v442_v37, 5  ;;  %v2835_v6 = vld [vmem:[%s2788_s27 + $0x8] sm:$0x1] }
  0x19   : > { %v429_v47 = vor.u32 %v428_v40, %v425_v31  ;;  %v521_v49 = vrot.slane %v519_v42, 4  ;;  %v528_v51 = vshll.u32 %v209_v38, 16  ;;  %v532_v55 = vshrl.u32 %v209_v38, 16  ;;  %v2854_v28 = vld [vmem:[%s2788_s27 + $0x40] sm:$0xf] }
  0x1a   : > { %v339_v52 = vsel %vm2815_vm4, %v334_v43, %v338_v27  ;;  %v349_v53 = vsel %vm2815_vm4, %v344_v44, %v348_v30  ;;  %v439_v54 = vor.u32 %v438_v45, %v434_v41  ;;  %v524_v59 = vrot.slane %v522_v50, 5  ;;  %v2851_v27 = vld [vmem:[%s2788_s27 + $0x3c] sm:$0xf]  ;;  %v2859_v33 = vld [vmem:[%s2788_s27 + $0x44] sm:$0x1] }
  0x1b   : > { %v624_v56 = vunpack.c.l.b16 %v339_v52  ;;  %v625_v57 = vunpack.c.l.b16 %v349_v53  ;;  %v430_v58 = vrot.slane %v429_v47, 4  ;;  %v530_v61 = vrot.slane %v528_v51, 5  ;;  %v2867_v42 = vld [vmem:[%s2788_s27 + $0x6c] sm:$0xf]  ;;  %v2874_v51 = vld [vmem:[%s2788_s27 + $0x70] sm:$0xf] }
  0x1c   : > { %v440_v60 = vrot.slane %v439_v54, 4  ;;  %v534_v62 = vrot.slane %v532_v55, 4  ;;  %v538_v63 = vshll.u32 %v210_v48, 16  ;;  %v525_v4 = vor.u32 %v524_v59, %v521_v49  ;;  %v2881_v55 = vld [vmem:[%s2788_s27 + $0x74] sm:$0x1] }
  0x1d   : > { %v2827_v1 = vpack.c.b16 %v625_v57, %v624_v56  ;;  %v435_v2 = vsel %vm2815_vm4, %v430_v58, %v434_v41  ;;  %v231_v16 = vshrl.u32 %v2825_v0, 16  ;;  %v234_v17 = vshll.u32 %v2825_v0, 16 }
  0x1e   : > { %v445_v7 = vsel %vm2815_vm4, %v440_v60, %v444_v46  ;;  %v632_v8 = vunpack.c.l.b16 %v435_v2  ;;  %v535_v9 = vor.u32 %v534_v62, %v530_v61  ;;  %v540_v10 = vrot.slane %v538_v63, 5 }
  0x1f   : > { %2443 = vmatmul.msk.bf16.vlgmr.msra.gmra.mxu1 %vm664_vm5, %v2827_v1  ;;  %v633_v11 = vunpack.c.l.b16 %v445_v7  ;;  %v526_v12 = vrot.slane %v525_v4, 4  ;;  %v240_v19 = vshll.u32 %v2832_v5, 16  ;;  %v244_v20 = vshrl.u32 %v2832_v5, 16 }
  0x20   : > { %v536_v18 = vrot.slane %v535_v9, 4  ;;  %v250_v21 = vshll.u32 %v2835_v6, 16  ;;  %v233_v25 = vrot.slane %v231_v16, 4  ;;  %v236_v26 = vrot.slane %v234_v17, 5  ;;  %v212_v17 = vld [vmem:[%s2788_s27 + $0xa0] sm:$0xf] }
  0x21   : > { %v2846_v23 = vpack.c.b16 %v633_v11, %v632_v8  ;;  %v531_v24 = vsel %vm2815_vm4, %v526_v12, %v530_v61  ;;  %v242_v31 = vrot.slane %v240_v19, 5  ;;  %v246_v32 = vrot.slane %v244_v20, 4 }
  0x22   : > { %v541_v29 = vsel %vm2815_vm4, %v536_v18, %v540_v10  ;;  %v640_v30 = vunpack.c.l.b16 %v531_v24  ;;  %v237_v35 = vor.u32 %v236_v26, %v233_v25  ;;  %v252_v36 = vrot.slane %v250_v21, 5  ;;  %v211_v10 = vld [vmem:[%s2788_s27 + $0x9c] sm:$0xf]  ;;  %v213_v24 = vld [vmem:[%s2788_s27 + $0xa4] sm:$0x1] }
  0x23   : > { %3969 = vst [vmem:[#allocation2_spill] sm:$0xff] %v2846_v23  ;;  %2447 = vmatmul.msk.bf16.vlgmr.msra.gmra.mxu2 %vm664_vm5, %v2846_v23  ;;  %v641_v34 = vunpack.c.l.b16 %v541_v29  ;;  %v247_v37 = vor.u32 %v246_v32, %v242_v31  ;;  %v351_v38 = vshrl.u32 %v2851_v27, 16  ;;  %v354_v40 = vshll.u32 %v2851_v27, 16 }
  0x24   : > { %v360_v41 = vshll.u32 %v2854_v28, 16  ;;  %v238_v44 = vrot.slane %v237_v35, 4  ;;  %v364_v45 = vshrl.u32 %v2854_v28, 16  ;;  %v370_v46 = vshll.u32 %v2859_v33, 16 }
  0x25   : > { %v2869_v43 = vpack.c.b16 %v641_v34, %v640_v30  ;;  %v248_v47 = vrot.slane %v247_v37, 4  ;;  %v353_v48 = vrot.slane %v351_v38, 4  ;;  %v356_v49 = vrot.slane %v354_v40, 5 }
  0x26   : > { %v362_v50 = vrot.slane %v360_v41, 5  ;;  %v243_v52 = vsel %vm2815_vm4, %v238_v44, %v242_v31  ;;  %v366_v53 = vrot.slane %v364_v45, 4  ;;  %v372_v54 = vrot.slane %v370_v46, 5  ;;  %v2899_v41 = vld [vmem:[%s2788_s27 + $0xc] sm:$0xf] }
  0x27   : > { %3970 = vst [vmem:[#allocation3_spill] sm:$0xff] %v2869_v43  ;;  %2451 = vmatmul.msk.bf16.vlgmr.msra.gmra.mxu3 %vm664_vm5, %v2869_v43  ;;  %v447_v56 = vshrl.u32 %v2867_v42, 16  ;;  %v253_v57 = vsel %vm2815_vm4, %v248_v47, %v252_v36  ;;  %v616_v58 = vunpack.c.l.b16 %v243_v52  ;;  %v357_v59 = vor.u32 %v356_v49, %v353_v48  ;;  %v2906_v48 = vld [vmem:[%s2788_s27 + $0x10] sm:$0xf]  ;;  %v3075_v43 = vld [vmem:[%s2788_s27 + $0x24] sm:$0xf] }
  0x28   : > { %v450_v60 = vshll.u32 %v2867_v42, 16  ;;  %v617_v61 = vunpack.c.l.b16 %v253_v57  ;;  %v367_v62 = vor.u32 %v366_v53, %v362_v50  ;;  %v456_v2 = vshll.u32 %v2874_v51, 16  ;;  %v2909_v53 = vld [vmem:[%s2788_s27 + $0x14] sm:$0x1] }
  0x29   : > { %v449_v63 = vrot.slane %v447_v56, 4  ;;  %v358_v4 = vrot.slane %v357_v59, 4  ;;  %v460_v8 = vshrl.u32 %v2874_v51, 16  ;;  %v466_v9 = vshll.u32 %v2881_v55, 16 }
  0x2a   : > { %v452_v7 = vrot.slane %v450_v60, 5  ;;  %v648_v11 = vpack.c.b16 %v617_v61, %v616_v58  ;;  %v368_v12 = vrot.slane %v367_v62, 4  ;;  %v458_v16 = vrot.slane %v456_v2, 5 }
  0x2b   : > { %v363_v18 = vsel %vm2815_vm4, %v358_v4, %v362_v50  ;;  %v462_v20 = vrot.slane %v460_v8, 4  ;;  %v468_v21 = vrot.slane %v466_v9, 5  ;;  %v543_v29 = vshrl.u32 %v211_v10, 16  ;;  %v2924_v9 = vld [vmem:[%s2788_s27 + $0x4c] sm:$0xf] }
  0x2c   : > { %v453_v19 = vor.u32 %v452_v7, %v449_v63  ;;  %2439 = vmatmul.msk.bf16.vlgmr.msra.gmra.mxu0 %vm664_vm5, %v648_v11  ;;  %v373_v25 = vsel %vm2815_vm4, %v368_v12, %v372_v54  ;;  %v626_v26 = vunpack.c.l.b16 %v363_v18  ;;  %v546_v30 = vshll.u32 %v211_v10, 16  ;;  %v2919_v63 = vld [vmem:[%s2788_s27 + $0x48] sm:$0xf] }
  0x2d   : > { %v627_v31 = vunpack.c.l.b16 %v373_v25  ;;  %v463_v34 = vor.u32 %v462_v20, %v458_v16  ;;  %v552_v35 = vshll.u32 %v212_v17, 16  ;;  %v545_v36 = vrot.slane %v543_v29, 4 }
  0x2e   : > { %v454_v32 = vrot.slane %v453_v19, 4  ;;  %v548_v37 = vrot.slane %v546_v30, 5  ;;  %v556_v38 = vshrl.u32 %v212_v17, 16  ;;  %v562_v40 = vshll.u32 %v213_v24, 16 }
  0x2f   : > { %v2901_v44 = vpack.c.b16 %v627_v31, %v626_v26  ;;  %v464_v46 = vrot.slane %v463_v34, 4  ;;  %v554_v47 = vrot.slane %v552_v35, 5  ;;  %v255_v57 = vshrl.u32 %v2899_v41, 16  ;;  %v2942_v35 = vld [vmem:[%s2788_s27 + $0x78] sm:$0xf] }
  0x30   : > { %v459_v45 = vsel %vm2815_vm4, %v454_v32, %v458_v16  ;;  %v549_v50 = vor.u32 %v548_v37, %v545_v36  ;;  %v558_v52 = vrot.slane %v556_v38, 4  ;;  %v564_v56 = vrot.slane %v562_v40, 5 }
  0x31   : > { %v634_v49 = vunpack.c.l.b16 %v459_v45  ;;  %2444 = vmatmul.msk.bf16.gmra.mxu1 %vm664_vm5, %v2901_v44  ;;  %v469_v54 = vsel %vm2815_vm4, %v464_v46, %v468_v21  ;;  %v258_v58 = vshll.u32 %v2899_v41, 16  ;;  %v264_v62 = vshll.u32 %v2906_v48, 16  ;;  %v2931_v21 = vld [vmem:[%s2788_s27 + $0x50] sm:$0x1]  ;;  %v2946_v45 = vld [vmem:[%s2788_s27 + $0x7c] sm:$0xf] }
  0x32   : > { %v635_v59 = vunpack.c.l.b16 %v469_v54  ;;  %v550_v60 = vrot.slane %v549_v50, 4  ;;  %v559_v61 = vor.u32 %v558_v52, %v554_v47  ;;  %v257_v2 = vrot.slane %v255_v57, 4  ;;  %v2953_v57 = vld [vmem:[%s2788_s27 + $0x80] sm:$0x1] }
  0x33   : > { %v260_v4 = vrot.slane %v258_v58, 5  ;;  %v268_v7 = vshrl.u32 %v2906_v48, 16  ;;  %v274_v8 = vshll.u32 %v2909_v53, 16  ;;  %v266_v16 = vrot.slane %v264_v62, 5 }
  0x34   : > { %v2926_v10 = vpack.c.b16 %v635_v59, %v634_v49  ;;  %v555_v11 = vsel %vm2815_vm4, %v550_v60, %v554_v47  ;;  %v560_v12 = vrot.slane %v559_v61, 4  ;;  %v375_v25 = vshrl.u32 %v2919_v63, 16 }
  0x35   : > { %v642_v17 = vunpack.c.l.b16 %v555_v11  ;;  %v261_v18 = vor.u32 %v260_v4, %v257_v2  ;;  %v270_v19 = vrot.slane %v268_v7, 4  ;;  %v276_v20 = vrot.slane %v274_v8, 5 }
  0x36   : > { %2448 = vmatmul.msk.bf16.gmra.mxu2 %vm664_vm5, %v2926_v10  ;;  %v565_v24 = vsel %vm2815_vm4, %v560_v12, %v564_v56  ;;  %v378_v26 = vshll.u32 %v2919_v63, 16  ;;  %v384_v29 = vshll.u32 %v2924_v9, 16  ;;  %v388_v34 = vshrl.u32 %v2924_v9, 16 }
  0x37   : > { %v643_v30 = vunpack.c.l.b16 %v565_v24  ;;  %v262_v31 = vrot.slane %v261_v18, 4  ;;  %v271_v32 = vor.u32 %v270_v19, %v266_v16  ;;  %v377_v36 = vrot.slane %v375_v25, 4  ;;  %v2965_v18 = vld [vmem:[%s2788_s27 + $0xa8] sm:$0xf]  ;;  %v2972_v25 = vld [vmem:[%s2788_s27 + $0xac] sm:$0xf] }
  0x38   : > { %v380_v37 = vrot.slane %v378_v26, 5  ;;  %v386_v38 = vrot.slane %v384_v29, 5  ;;  %v394_v40 = vshll.u32 %v2931_v21, 16  ;;  %v390_v50 = vrot.slane %v388_v34, 4  ;;  %3972 = vst [vmem:[#allocation5_spill] sm:$0xff] %v2965_v18 }
  0x39   : > { %v2948_v46 = vpack.c.b16 %v643_v30, %v642_v17  ;;  %v267_v47 = vsel %vm2815_vm4, %v262_v31, %v266_v16  ;;  %v272_v49 = vrot.slane %v271_v32, 4  ;;  %v471_v58 = vshrl.u32 %v2942_v35, 16  ;;  %3973 = vst [vmem:[#allocation6_spill] sm:$0xff] %v2972_v25  ;;  %v2975_v26 = vld [vmem:[%s2788_s27 + $0xb0] sm:$0x1] }
  0x3a   : > { %v618_v52 = vunpack.c.l.b16 %v267_v47  ;;  %v381_v54 = vor.u32 %v380_v37, %v377_v36  ;;  %v396_v56 = vrot.slane %v394_v40, 5  ;;  %v391_v60 = vor.u32 %v390_v50, %v386_v38  ;;  %3974 = vst [vmem:[#allocation7_spill] sm:$0xff] %v2975_v26 }
  0x3b   : > { %3971 = vst [vmem:[#allocation4_spill] sm:$0xff] %v2948_v46  ;;  %2452 = vmatmul.msk.bf16.gmra.mxu3 %vm664_vm5, %v2948_v46  ;;  %v277_v59 = vsel %vm2815_vm4, %v272_v49, %v276_v20  ;;  %v474_v61 = vshll.u32 %v2942_v35, 16  ;;  %v480_v62 = vshll.u32 %v2946_v45, 16  ;;  %v473_v7 = vrot.slane %v471_v58, 4 }
  0x3c   : > { %v619_v2 = vunpack.c.l.b16 %v277_v59  ;;  %v382_v4 = vrot.slane %v381_v54, 4  ;;  %v484_v8 = vshrl.u32 %v2946_v45, 16  ;;  %v392_v11 = vrot.slane %v391_v60, 4  ;;  %v2989_v59 = vld [vmem:[%s2788_s27 + $0x18] sm:$0xf] }
  0x3d   : > { %v476_v12 = vrot.slane %v474_v61, 5  ;;  %v482_v16 = vrot.slane %v480_v62, 5  ;;  %v490_v17 = vshll.u32 %v2953_v57, 16  ;;  %v567_v37 = vshrl.u32 %v2965_v18, 16 }
  0x3e   : > { %v2967_v19 = vpack.c.b16 %v619_v2, %v618_v52  ;;  %v387_v20 = vsel %vm2815_vm4, %v382_v4, %v386_v38  ;;  %v486_v24 = vrot.slane %v484_v8, 4  ;;  %v397_v29 = vsel %vm2815_vm4, %v392_v11, %v396_v56  ;;  %v2994_v2 = vld [vmem:[%s2788_s27 + $0x1c] sm:$0xf]  ;;  %v2997_v4 = vld [vmem:[%s2788_s27 + $0x20] sm:$0x1] }
  0x3f   : > { %v628_v30 = vunpack.c.l.b16 %v387_v20  ;;  %v477_v31 = vor.u32 %v476_v12, %v473_v7  ;;  %v492_v32 = vrot.slane %v490_v17, 5  ;;  %v629_v34 = vunpack.c.l.b16 %v397_v29 }
  0x40   : > { %2440 = vmatmul.msk.bf16.gmra.mxu0 %vm664_vm5, %v2967_v19  ;;  %v487_v36 = vor.u32 %v486_v24, %v482_v16  ;;  %v570_v38 = vshll.u32 %v2965_v18, 16  ;;  %v576_v47 = vshll.u32 %v2972_v25, 16  ;;  %v580_v49 = vshrl.u32 %v2972_v25, 16  ;;  %v3041_v18 = vld [vmem:[%s2788_s27 + $0x8c] sm:$0x1] }
  0x41   : > { %v478_v40 = vrot.slane %v477_v31, 4  ;;  %v586_v50 = vshll.u32 %v2975_v26, 16  ;;  %v2986_v52 = vpack.c.b16 %v629_v34, %v628_v30  ;;  %v569_v56 = vrot.slane %v567_v37, 4  ;;  %3978 = vst [vmem:[#allocation11_spill] sm:$0xff] %v3041_v18  ;;  %v3053_v25 = vld [vmem:[%s2788_s27 + $0xb4] sm:$0xf] }
  0x42   : > { %v488_v54 = vrot.slane %v487_v36, 4  ;;  %v572_v58 = vrot.slane %v570_v38, 5  ;;  %v578_v61 = vrot.slane %v576_v47, 5  ;;  %v582_v62 = vrot.slane %v580_v49, 4  ;;  %v3009_v36 = vld [vmem:[%s2788_s27 + $0x54] sm:$0xf] }
  0x43   : > { %3975 = vst [vmem:[#allocation8_spill] sm:$0xff] %v2986_v52  ;;  %v483_v60 = vsel %vm2815_vm4, %v478_v40, %v482_v16  ;;  %2445 = vmatmul.msk.bf16.gmra.mxu1 %vm664_vm5, %v2986_v52  ;;  %v588_v12 = vrot.slane %v586_v50, 5  ;;  %v279_v16 = vshrl.u32 %v2989_v59, 16  ;;  %v282_v24 = vshll.u32 %v2989_v59, 16  ;;  %v3014_v47 = vld [vmem:[%s2788_s27 + $0x58] sm:$0xf] }
  0x44   : > { %v493_v7 = vsel %vm2815_vm4, %v488_v54, %v492_v32  ;;  %v636_v8 = vunpack.c.l.b16 %v483_v60  ;;  %v573_v11 = vor.u32 %v572_v58, %v569_v56  ;;  %v583_v20 = vor.u32 %v582_v62, %v578_v61  ;;  %v3019_v58 = vld [vmem:[%s2788_s27 + $0x5c] sm:$0x1]  ;;  %3979 = vst [vmem:[#allocation12_spill] sm:$0xff] %v3053_v25 }
  0x45   : > { %v637_v17 = vunpack.c.l.b16 %v493_v7  ;;  %v288_v30 = vshll.u32 %v2994_v2, 16  ;;  %v292_v31 = vshrl.u32 %v2994_v2, 16  ;;  %v298_v34 = vshll.u32 %v2997_v4, 16 }
  0x46   : > { %v574_v29 = vrot.slane %v573_v11, 4  ;;  %v584_v37 = vrot.slane %v583_v20, 4  ;;  %v281_v38 = vrot.slane %v279_v16, 4  ;;  %v284_v40 = vrot.slane %v282_v24, 5  ;;  %v3029_v16 = vld [vmem:[%s2788_s27 + $0x84] sm:$0xf] }
  0x47   : > { %v3011_v32 = vpack.c.b16 %v637_v17, %v636_v8  ;;  %v290_v50 = vrot.slane %v288_v30, 5  ;;  %v294_v54 = vrot.slane %v292_v31, 4  ;;  %v300_v56 = vrot.slane %v298_v34, 5  ;;  %3976 = vst [vmem:[#allocation9_spill] sm:$0xff] %v3029_v16 }
  0x48   : > { %v579_v49 = vsel %vm2815_vm4, %v574_v29, %v578_v61  ;;  %v589_v60 = vsel %vm2815_vm4, %v584_v37, %v588_v12  ;;  %v285_v7 = vor.u32 %v284_v40, %v281_v38  ;;  %v399_v8 = vshrl.u32 %v3009_v36, 16  ;;  %v3036_v40 = vld [vmem:[%s2788_s27 + $0x88] sm:$0xf] }
  0x49   : > { %2449 = vmatmul.msk.bf16.gmra.mxu2 %vm664_vm5, %v3011_v32  ;;  %v644_v62 = vunpack.c.l.b16 %v579_v49  ;;  %v645_v11 = vunpack.c.l.b16 %v589_v60  ;;  %v295_v17 = vor.u32 %v294_v54, %v290_v50  ;;  %v402_v61 = vshll.u32 %v3009_v36, 16 }
  0x4a   : > { %v408_v20 = vshll.u32 %v3014_v47, 16  ;;  %v286_v24 = vrot.slane %v285_v7, 4  ;;  %v401_v29 = vrot.slane %v399_v8, 4  ;;  %v412_v30 = vshrl.u32 %v3014_v47, 16 }
  0x4b   : > { %v418_v12 = vshll.u32 %v3019_v58, 16  ;;  %v3033_v31 = vpack.c.b16 %v645_v11, %v644_v62  ;;  %v296_v34 = vrot.slane %v295_v17, 4  ;;  %v404_v37 = vrot.slane %v402_v61, 5 }
  0x4c   : > { %v410_v38 = vrot.slane %v408_v20, 5  ;;  %v291_v49 = vsel %vm2815_vm4, %v286_v24, %v290_v50  ;;  %v414_v54 = vrot.slane %v412_v30, 4  ;;  %v495_v7 = vshrl.u32 %v3029_v16, 16 }
  0x4d   : > { %3977 = vst [vmem:[#allocation10_spill] sm:$0xff] %v3033_v31  ;;  %v420_v60 = vrot.slane %v418_v12, 5  ;;  %2453 = vmatmul.msk.bf16.gmra.mxu3 %vm664_vm5, %v3033_v31  ;;  %v301_v62 = vsel %vm2815_vm4, %v296_v34, %v300_v56  ;;  %v620_v8 = vunpack.c.l.b16 %v291_v49  ;;  %v405_v11 = vor.u32 %v404_v37, %v401_v29  ;;  %v3058_v37 = vld [vmem:[%s2788_s27 + $0xb8] sm:$0xf] }
  0x4e   : > { %v498_v17 = vshll.u32 %v3029_v16, 16  ;;  %v621_v61 = vunpack.c.l.b16 %v301_v62  ;;  %v415_v50 = vor.u32 %v414_v54, %v410_v38  ;;  %v497_v20 = vrot.slane %v495_v7, 4  ;;  %3980 = vst [vmem:[#allocation13_spill] sm:$0xff] %v3058_v37  ;;  %v3086_v16 = vld [vmem:[%s2788_s27 + $0x2c] sm:$0x1] }
  0x4f   : > { %v504_v24 = vshll.u32 %v3036_v40, 16  ;;  %v406_v30 = vrot.slane %v405_v11, 4  ;;  %v508_v26 = vshrl.u32 %v3036_v40, 16  ;;  %v514_v31 = vshll.u32 %v3041_v18, 16  ;;  %v3063_v11 = vld [vmem:[%s2788_s27 + $0xbc] sm:$0x1] }
  0x50   : > { %v500_v12 = vrot.slane %v498_v17, 5  ;;  %v3055_v56 = vpack.c.b16 %v621_v61, %v620_v8  ;;  %v416_v34 = vrot.slane %v415_v50, 4  ;;  %3981 = vst [vmem:[#allocation14_spill] sm:$0xff] %v3063_v11  ;;  %v591_v61 = vshrl.u32 %v3053_v25, 16 }
  0x51   : > { %v506_v29 = vrot.slane %v504_v24, 5  ;;  %v411_v49 = vsel %vm2815_vm4, %v406_v30, %v410_v38  ;;  %v510_v7 = vrot.slane %v508_v26, 4  ;;  %v516_v62 = vrot.slane %v514_v31, 5 }
  0x52   : > { %v501_v54 = vor.u32 %v500_v12, %v497_v20  ;;  %2441 = vmatmul.msk.bf16.gmra.mxu0 %vm664_vm5, %v3055_v56  ;;  %v421_v8 = vsel %vm2815_vm4, %v416_v34, %v420_v60  ;;  %v630_v17 = vunpack.c.l.b16 %v411_v49  ;;  %v594_v50 = vshll.u32 %v3053_v25, 16 }
  0x53   : > { %v631_v24 = vunpack.c.l.b16 %v421_v8  ;;  %v511_v20 = vor.u32 %v510_v7, %v506_v29  ;;  %v600_v26 = vshll.u32 %v3058_v37, 16  ;;  %v593_v31 = vrot.slane %v591_v61, 4 }
  0x54   : > { %v502_v38 = vrot.slane %v501_v54, 4  ;;  %v596_v30 = vrot.slane %v594_v50, 5  ;;  %v604_v12 = vshrl.u32 %v3058_v37, 16  ;;  %v610_v46 = vshll.u32 %v3063_v11, 16  ;;  %v3082_v54 = vld [vmem:[%s2788_s27 + $0x28] sm:$0xf] }
  0x55   : > { %v3077_v60 = vpack.c.b16 %v631_v24, %v630_v17  ;;  %v512_v49 = vrot.slane %v511_v20, 4  ;;  %v602_v8 = vrot.slane %v600_v26, 5  ;;  %v1053_v7 = vrot.slane %v2835_v6, 5 }
  0x56   : > { %v507_v34 = vsel %vm2815_vm4, %v502_v38, %v506_v29  ;;  %v597_v61 = vor.u32 %v596_v30, %v593_v31  ;;  %v606_v50 = vrot.slane %v604_v12, 4  ;;  %v612_v24 = vrot.slane %v610_v46, 5 }
  0x57   : > { %3982 = vst [vmem:[#allocation15_spill] sm:$0xff] %v3077_v60  ;;  %v638_v25 = vunpack.c.l.b16 %v507_v34  ;;  %2446 = vmatmul.msk.bf16.gmra.mxu1 %vm664_vm5, %v3077_v60  ;;  %v517_v17 = vsel %vm2815_vm4, %v512_v49, %v516_v62  ;;  %v303_v29 = vshrl.u32 %v3075_v43, 16  ;;  %v306_v38 = vshll.u32 %v3075_v43, 16 }
  0x58   : > { %v639_v20 = vunpack.c.l.b16 %v517_v17  ;;  %v598_v26 = vrot.slane %v597_v61, 4  ;;  %v607_v11 = vor.u32 %v606_v50, %v602_v8  ;;  %v312_v6 = vshll.u32 %v3082_v54, 16  ;;  %v2624_v61 = vld [vmem:[%s3924_s1 + $0xc] sm:$0x3]  ;;  %v2645_v50 = vld [vmem:[%s3924_s1 + $0xe] sm:$0x3] }
  0x59   : > { %v305_v31 = vrot.slane %v303_v29, 4  ;;  %v308_v30 = vrot.slane %v306_v38, 5  ;;  %v316_v12 = vshrl.u32 %v3082_v54, 16  ;;  %v322_v34 = vshll.u32 %v3086_v16, 16 }
  0x5a   : > { %v3097_v37 = vpack.c.b16 %v639_v20, %v638_v25  ;;  %v603_v46 = vsel %vm2815_vm4, %v598_v26, %v602_v8  ;;  %v608_v62 = vrot.slane %v607_v11, 4  ;;  %v314_v49 = vrot.slane %v312_v6, 5  ;;  %v2607_v25 = vld [vmem:[%s3924_s1 + $0xa] sm:$0x3]  ;;  %v2663_v11 = vld [vmem:[%s3924_s1 + $0x10] sm:$0x3] }
  0x5b   : > { %v646_v17 = vunpack.c.l.b16 %v603_v46  ;;  %v309_v29 = vor.u32 %v308_v30, %v305_v31  ;;  %v318_v38 = vrot.slane %v316_v12, 4  ;;  %v324_v18 = vrot.slane %v322_v34, 5 }
  0x5c   : > { %3983 = vst [vmem:[#allocation16_spill] sm:$0xff] %v3097_v37  ;;  %2450 = vmatmul.msk.bf16.gmra.mxu2 %vm664_vm5, %v3097_v37  ;;  %v613_v8 = vsel %vm2815_vm4, %v608_v62, %v612_v24  ;;  %v2535_v20 = vrot.slane %v2825_v0, 9  ;;  %v1050_v12 = vrot.slane %v2832_v5, 5  ;;  %v1823_v34 = vand.u32 %v2624_v61, %v2763_v3 }
  0x5d   : > { %v647_v26 = vunpack.c.l.b16 %v613_v8  ;;  %v310_v6 = vrot.slane %v309_v29, 4  ;;  %v319_v31 = vor.u32 %v318_v38, %v314_v49  ;;  %v1979_v46 = vand.u32 %v2645_v50, %v2763_v3 }
  0x5e   : > { %v1689_v37 = vand.u32 %v2607_v25, %v2763_v3  ;;  %v2119_v24 = vand.u32 %v2663_v11, %v2763_v3  ;;  %v1051_v38 = vsel %vm3118_vm8, %v2535_v20, %v1050_v12  ;;  %v1052_v5 = vrot.slane %v1050_v12, 4  ;;  %1832 = vmatpush.bf16.msra.mxu2 %v1823_v34  ;;  %v2683_v20 = vld [vmem:[%s2788_s27] sm:$0xff]  ;;  %v2684_v12 = vld [vmem:[%s2788_s27 + $0xc] sm:$0xff] }
  0x5f   : > { %v3127_v62 = vpack.c.b16 %v647_v26, %v646_v17  ;;  %v315_v0 = vsel %vm2815_vm4, %v310_v6, %v314_v49  ;;  %v320_v29 = vrot.slane %v319_v31, 4  ;;  %1988 = vmatpush.bf16.msra.mxu3 %v1979_v46  ;;  %v2536_v61 = vrot.slane %v2899_v41, 9  ;;  %v3164_v46 = vld [vmem:[%s2788_s27 + $0x18] sm:$0xff] }
  0x60   : > { %v622_v8 = vunpack.c.l.b16 %v315_v0  ;;  %v1162_v50 = vunpack.c.l.b16 %v1051_v38  ;;  %1698 = vmatpush.bf16.msra.mxu1 %v1689_v37  ;;  %v1057_v49 = vrot.slane %v2906_v48, 5  ;;  %v1060_v17 = vrot.slane %v2909_v53, 5  ;;  %2128 = vmatpush.bf16.msra.mxu0 %v2119_v24 }
  0x61   : > { %2454 = vmatmul.msk.bf16.gmra.mxu3 %vm664_vm5, %v3127_v62  ;;  %v325_v3 = vsel %vm2815_vm4, %v320_v29, %v324_v18  ;;  %v1054_v11 = vsel %vm3118_vm8, %v1052_v5, %v1053_v7  ;;  %v1064_v34 = vrot.slane %v2994_v2, 5  ;;  %v2537_v24 = vrot.slane %v2989_v59, 9  ;;  %v3184_v5 = vld [vmem:[%s2788_s27 + $0x24] sm:$0xff] }
  0x62   : > { %v623_v25 = vunpack.c.l.b16 %v325_v3  ;;  %v1163_v41 = vunpack.c.l.b16 %v1054_v11  ;;  %v1058_v26 = vsel %vm3118_vm8, %v2536_v61, %v1057_v49  ;;  %v1059_v6 = vrot.slane %v1057_v49, 4 }
  0x63   : > { %v1164_v37 = vunpack.c.l.b16 %v1058_v26  ;;  %v1066_v0 = vrot.slane %v1064_v34, 4  ;;  %v1067_v29 = vrot.slane %v2997_v4, 5  ;;  %v1071_v4 = vrot.slane %v3082_v54, 5 }
  0x64   : > { %v3145_v18 = vpack.c.b16 %v623_v25, %v622_v8  ;;  %v1194_v31 = vpack.c.b16 %v1163_v41, %v1162_v50  ;;  %v1061_v48 = vsel %vm3118_vm8, %v1059_v6, %v1060_v17  ;;  %v2538_v61 = vrot.slane %v3075_v43, 9 }
  0x65   : > { %v1165_v53 = vunpack.c.l.b16 %v1061_v48  ;;  %v1068_v2 = vsel %vm3118_vm8, %v1066_v0, %v1067_v29  ;;  %v1073_v3 = vrot.slane %v1071_v4, 4  ;;  %v1074_v50 = vrot.slane %v3086_v16, 5  ;;  %v3234_v0 = vld [vmem:[%s2788_s27 + $0x3c] sm:$0xff] }
  0x66   : > { %2442 = vmatmul.msk.bf16.gmra.mxu0 %vm664_vm5, %v3145_v18  ;;  %v1167_v8 = vunpack.c.l.b16 %v1068_v2  ;;  %v1072_v49 = vsel %vm3118_vm8, %v2538_v61, %v1071_v4  ;;  %v1078_v16 = vrot.slane %v2794_v14, 5  ;;  %v2539_v41 = vrot.slane %v2791_v13, 9 }
  0x67   : > { %2519 = vmatmul.msk.bf16.vlgmr.msrb.gmra.mxu1 %vm664_vm5, %v2683_v20  ;;  %v3152_v7 = vpack.c.b16 %v1165_v53, %v1164_v37  ;;  %v1075_v54 = vsel %vm3118_vm8, %v1073_v3, %v1074_v50  ;;  %v1168_v17 = vunpack.c.l.b16 %v1072_v49  ;;  %v3206_v20 = vld [vmem:[%s2788_s27 + $0x30] sm:$0xff]  ;;  %v1081_v6 = vrot.slane %v2797_v15, 5 }
  0x68   : > { %v1169_v25 = vunpack.c.l.b16 %v1075_v54  ;;  %v1080_v26 = vrot.slane %v1078_v16, 4  ;;  %v1079_v37 = vsel %vm3118_vm8, %v2539_v41, %v1078_v16  ;;  %v3268_v16 = vld [vmem:[%s2788_s27 + $0x48] sm:$0xff] }
  0x69   : > { %v1170_v48 = vunpack.c.l.b16 %v1079_v37  ;;  %v1095_v37 = vrot.slane %v2931_v21, 5 }
  0x6a   : > { %v3198_v43 = vpack.c.b16 %v1169_v25, %v1168_v17  ;;  %v1082_v14 = vsel %vm3118_vm8, %v1080_v26, %v1081_v6  ;;  %v1092_v17 = vrot.slane %v2924_v9, 5  ;;  %v2541_v26 = vrot.slane %v2919_v63, 9 }
  0x6b   : > { %v1171_v53 = vunpack.c.l.b16 %v1082_v14 }
  0x6c   : > { %2552 = vmatmul.msk.bf16.vlgmr.msrb.gmra.mxu2 %vm664_vm5, %v1194_v31  ;;  %v1094_v6 = vrot.slane %v1092_v17, 4 }
  0x6d   : > { %v3226_v15 = vpack.c.b16 %v1171_v53, %v1170_v48  ;;  %v1093_v48 = vsel %vm3118_vm8, %v2541_v26, %v1092_v17  ;;  %v1102_v26 = vrot.slane %v3019_v58, 5 }
  0x6e   : > { %v1096_v53 = vsel %vm3118_vm8, %v1094_v6, %v1095_v37 }
  0x71   : > { %2573 = vmatmul.msk.bf16.vlgmr.msrb.gmra.mxu3 %vm664_vm5, %v2684_v12 }
  0x76   : > { %2590 = vmatmul.msk.bf16.vlgmr.msrb.gmra.mxu0 %vm664_vm5, %v2967_v19  ;;  %v1065_v19 = vsel %vm3118_vm8, %v2537_v24, %v1064_v34  ;;  %v1085_v24 = vrot.slane %v2854_v28, 5 }
  0x77   : > { %2520 = vmatmul.msk.bf16.gmra.mxu1 %vm664_vm5, %v2684_v12  ;;  %v1166_v38 = vunpack.c.l.b16 %v1065_v19  ;;  %v2540_v19 = vrot.slane %v2851_v27, 9 }
  0x78   : > { %v1087_v2 = vrot.slane %v1085_v24, 4 }
  0x79   : > { %v3178_v59 = vpack.c.b16 %v1167_v8, %v1166_v38  ;;  %v1088_v38 = vrot.slane %v2859_v33, 5  ;;  %v1086_v28 = vsel %vm3118_vm8, %v2540_v19, %v1085_v24  ;;  %v1174_v24 = vunpack.c.l.b16 %v1093_v48 }
  0x7a   : > { %v1172_v27 = vunpack.c.l.b16 %v1086_v28  ;;  %v1175_v19 = vunpack.c.l.b16 %v1096_v53 }
  0x7b   : > { %v1089_v4 = vsel %vm3118_vm8, %v1087_v2, %v1088_v38  ;;  %v1099_v38 = vrot.slane %v3014_v47, 5 }
  0x7c   : > { %2553 = vmatmul.msk.bf16.gmra.mxu2 %vm664_vm5, %v3152_v7  ;;  %v1173_v50 = vunpack.c.l.b16 %v1089_v4  ;;  %v3292_v2 = vpack.c.b16 %v1175_v19, %v1174_v24 }
  0x7d   : > { %v1101_v17 = vrot.slane %v1099_v38, 4 }
  0x7e   : > { %v3258_v49 = vpack.c.b16 %v1173_v50, %v1172_v27  ;;  %3990 = vst [vmem:[#allocation21_spill] sm:$0xff] %v3292_v2  ;;  %v3302_v27 = vld [vmem:[%s2788_s27 + $0x54] sm:$0xff]  ;;  %v2542_v50 = vrot.slane %v3009_v36, 9 }
  0x7f   : > { %3991 = vst [vmem:[#allocation22_spill] sm:$0xff] %v3302_v27  ;;  %v1103_v48 = vsel %vm3118_vm8, %v1101_v17, %v1102_v26 }
  0x80   : > { %v1100_v47 = vsel %vm3118_vm8, %v2542_v50, %v1099_v38  ;;  %v1177_v58 = vunpack.c.l.b16 %v1103_v48  ;;  %v1106_v50 = vrot.slane %v2806_v22, 5 }
  0x81   : > { %2574 = vmatmul.msk.bf16.gmra.mxu3 %vm664_vm5, %v3164_v46  ;;  %v1176_v53 = vunpack.c.l.b16 %v1100_v47  ;;  %v2715_v47 = vld [vmem:[%s2788_s27 + $0x68] sm:$0x1] }
  0x82   : > { %v1109_v48 = vrot.slane %v2715_v47, 5 }
  0x83   : > { %v3324_v19 = vpack.c.b16 %v1177_v58, %v1176_v53 }
  0x85   : > { %3993 = vst [vmem:[#allocation24_spill] sm:$0xff] %v3324_v19 }
  0x86   : > { %2591 = vmatmul.msk.bf16.gmra.mxu0 %vm664_vm5, %v3055_v56 }
  0x87   : > { %2521 = vmatmul.msk.bf16.gmra.mxu1 %vm664_vm5, %v3164_v46 }
  0x8c   : > { %2554 = vmatmul.msk.bf16.gmra.mxu2 %vm664_vm5, %v3178_v59 }
  0x91   : > { %2575 = vmatmul.msk.bf16.gmra.mxu3 %vm664_vm5, %v3184_v5 }
  0x96   : > { %2592 = vmatmul.msk.bf16.gmra.mxu0 %vm664_vm5, %v3145_v18 }
  0x97   : > { %2522 = vmatmul.msk.bf16.gmra.mxu1 %vm664_vm5, %v3184_v5 }
  0x9c   : > { %v3201_v11 = vpop.f32.mrf.mxu1  ;;  %2555 = vmatmul.msk.bf16.gmra.mxu2 %vm664_vm5, %v3198_v43 }
  0xa1   : > { %2576 = vmatmul.msk.bf16.gmra.mxu3 %vm664_vm5, %v3206_v20 }
  0xa4   : > { %v3216_v31 = vpop.f32.mrf.mxu1 }
  0xa6   : > { %v3218_v12 = vpop.f32.mrf.mxu2  ;;  %2593 = vmatmul.msk.bf16.gmra.mxu0 %vm664_vm5, %v2827_v1 }
  0xa7   : > { %2523 = vmatmul.msk.bf16.gmra.mxu1 %vm664_vm5, %v3206_v20 }
  0xa9   : > { %v3224_v13 = vpop.f32.mrf.mxu0 }
  0xaa   : > { %v3228_v34 = vpop.f32.mrf.mxu3 }
  0xab   : > { %3986 = vst [vmem:[#allocation17_spill] sm:$0xff] %v3228_v34 }
  0xac   : > { %2556 = vmatmul.msk.bf16.gmra.mxu2 %vm664_vm5, %v3226_v15 }
  0xae   : > { %v3236_v29 = vpop.f32.mrf.mxu1  ;;  %v3240_v8 = vpop.f32.mrf.mxu2 }
  0xb1   : > { %2577 = vmatmul.msk.bf16.gmra.mxu3 %vm664_vm5, %v3234_v0  ;;  %v3248_v61 = vpop.f32.mrf.mxu0 }
  0xb2   : > { %v3250_v3 = vpop.f32.mrf.mxu3 }
  0xb3   : > { %3987 = vst [vmem:[#allocation18_spill] sm:$0xff] %v3250_v3 }
  0xb6   : > { %2594 = vmatmul.msk.bf16.gmra.mxu0 %vm664_vm5, %v2901_v44  ;;  %v3254_v33 = vpop.f32.mrf.mxu1 }
  0xb7   : > { %2524 = vmatmul.msk.bf16.gmra.mxu1 %vm664_vm5, %v3234_v0 }
  0xb9   : > { %v3260_v54 = vpop.f32.mrf.mxu2 }
  0xbc   : > { %2557 = vmatmul.msk.bf16.gmra.mxu2 %vm664_vm5, %v3258_v49 }
  0xbd   : > { %v3263_v25 = vpop.f32.mrf.mxu0 }
  0xbe   : > { %v3270_v41 = vpop.f32.mrf.mxu3 }
  0xbf   : > { %3988 = vst [vmem:[#allocation19_spill] sm:$0xff] %v3270_v41  ;;  %v1108_v41 = vrot.slane %v1106_v50, 4 }
  0xc0   : > { %v3274_v14 = vpop.f32.mrf.mxu1 }
  0xc1   : > { %2578 = vmatmul.msk.bf16.gmra.mxu3 %vm664_vm5, %v3268_v16  ;;  %v3278_v9 = vpop.f32.mrf.mxu2  ;;  %v1110_v58 = vsel %vm3118_vm8, %v1108_v41, %v1109_v48  ;;  %v1113_v41 = vrot.slane %v2874_v51, 5 }
  0xc5   : > { %v3284_v63 = vpop.f32.mrf.mxu0 }
  0xc6   : > { %2595 = vmatmul.msk.bf16.gmra.mxu0 %vm664_vm5, %v2986_v52  ;;  %v3288_v21 = vpop.f32.mrf.mxu3 }
  0xc7   : > { %3989 = vst [vmem:[#allocation20_spill] sm:$0xff] %v3288_v21  ;;  %2525 = vmatmul.msk.bf16.gmra.mxu1 %vm664_vm5, %v3268_v16  ;;  %v2716_v21 = vld [vmem:[%s2788_s27 + $0x60] sm:$0xf] }
  0xc8   : > { %v3295_v28 = vpop.f32.mrf.mxu1 }
  0xcc   : > { %v3297_v4 = vpop.f32.mrf.mxu2  ;;  %2558 = vmatmul.msk.bf16.gmra.mxu2 %vm664_vm5, %v3292_v2 }
  0xcf   : > { %v3306_v6 = vpop.f32.mrf.mxu0 }
  0xd0   : > { %v3308_v37 = vpop.f32.mrf.mxu3 }
  0xd1   : > { %3992 = vst [vmem:[#allocation23_spill] sm:$0xff] %v3308_v37  ;;  %2579 = vmatmul.msk.bf16.gmra.mxu3 %vm664_vm5, %v3302_v27  ;;  %v3337_v37 = vld [vmem:[%s2788_s27 + $0x60] sm:$0xff] }
  0xd2   : > { %3995 = vst [vmem:[#allocation26_spill] sm:$0xff] %v3337_v37 }
  0xd4   : > { %v3316_v36 = vpop.f32.mrf.mxu1  ;;  %v3318_v24 = vpop.f32.mrf.mxu2 }
  0xd6   : > { %2596 = vmatmul.msk.bf16.gmra.mxu0 %vm664_vm5, %v3077_v60  ;;  %v2543_v60 = vrot.slane %v2716_v21, 9  ;;  %v1179_v21 = vunpack.c.l.b16 %v1110_v58 }
  0xd7   : > { %2526 = vmatmul.msk.bf16.gmra.mxu1 %vm664_vm5, %v3302_v27  ;;  %v3326_v38 = vpop.f32.mrf.mxu0 }
  0xd8   : > { %v3329_v17 = vpop.f32.mrf.mxu3  ;;  %v1107_v22 = vsel %vm3118_vm8, %v2543_v60, %v1106_v50 }
  0xd9   : > { %3994 = vst [vmem:[#allocation25_spill] sm:$0xff] %v3329_v17  ;;  %v1178_v27 = vunpack.c.l.b16 %v1107_v22  ;;  %v3370_v22 = vld [vmem:[%s2788_s27 + $0x6c] sm:$0xff] }
  0xdb   : > { %v3359_v60 = vpack.c.b16 %v1179_v21, %v1178_v27  ;;  %v1115_v27 = vrot.slane %v1113_v41, 4 }
  0xdc   : > { %2559 = vmatmul.msk.bf16.gmra.mxu2 %vm664_vm5, %v3324_v19  ;;  %v3333_v26 = vpop.f32.mrf.mxu1 }
  0xdd   : > { %3997 = vst [vmem:[#allocation28_spill] sm:$0xff] %v3359_v60 }
  0xdf   : > { %v3340_v53 = vpop.f32.mrf.mxu2 }
  0xe1   : > { %2580 = vmatmul.msk.bf16.gmra.mxu3 %vm664_vm5, %v3337_v37 }
  0xe3   : > { %v3348_v17 = vpop.f32.mrf.mxu0 }
  0xe4   : > { %v3350_v47 = vpop.f32.mrf.mxu3  ;;  %v949_v19 = vpop.f32.mrf.mxu1 }
  0xe5   : > { %3996 = vst [vmem:[#allocation27_spill] sm:$0xff] %v3350_v47  ;;  %v950_v3 = vadd.f32 %v949_v19, %v3224_v13  ;;  %v1116_v19 = vrot.slane %v2881_v55, 5  ;;  %v2544_v47 = vrot.slane %v2867_v42, 9 }
  0xe6   : > { %2597 = vmatmul.msk.bf16.gmra.mxu0 %vm664_vm5, %v2846_v23 }
  0xe7   : > { %v3355_v2 = vpop.f32.mrf.mxu2  ;;  %2527 = vmatmul.msk.bf16.gmra.mxu1 %vm664_vm5, %v3337_v37  ;;  %v1114_v51 = vsel %vm3118_vm8, %v2544_v47, %v1113_v41 }
  0xe8   : > { %v1180_v52 = vunpack.c.l.b16 %v1114_v51 }
  0xeb   : > { %v3362_v50 = vpop.f32.mrf.mxu0 }
  0xec   : > { %v3364_v48 = vpop.f32.mrf.mxu3  ;;  %2560 = vmatmul.msk.bf16.gmra.mxu2 %vm664_vm5, %v3359_v60  ;;  %v951_v13 = vpop.f32.mrf.mxu1 }
  0xed   : > { %3998 = vst [vmem:[#allocation29_spill] sm:$0xff] %v3364_v48  ;;  %v952_v58 = vadd.f32 %v951_v13, %v3248_v61  ;;  %v1117_v48 = vsel %vm3118_vm8, %v1115_v27, %v1116_v19  ;;  %v1120_v19 = vrot.slane %v2946_v45, 5 }
  0xee   : > { %v1181_v34 = vunpack.c.l.b16 %v1117_v48  ;;  %v1123_v48 = vrot.slane %v2953_v57, 5 }
  0xef   : > { %v1270_v21 = vpop.f32.mrf.mxu2 }
  0xf0   : > { %v1350_v23 = vadd.f32 %v1270_v21, %v950_v3  ;;  %v3387_v13 = vpack.c.b16 %v1181_v34, %v1180_v52  ;;  %v3394_v21 = vld [vmem:[%s2788_s27 + $0x78] sm:$0xff] }
  0xf1   : > { %2581 = vmatmul.msk.bf16.gmra.mxu3 %vm664_vm5, %v3370_v22 }
  0xf3   : > { %v1560_v60 = vpop.f32.mrf.mxu0 }
  0xf4   : > { %v1404_v55 = vpop.f32.mrf.mxu3  ;;  %v954_v37 = vpop.f32.mrf.mxu1 }
  0xf5   : > { %v1484_v61 = vadd.f32 %v1404_v55, %v1350_v23  ;;  %v955_v42 = vadd.f32 %v954_v37, %v3263_v25 }
  0xf6   : > { %2598 = vmatmul.msk.bf16.gmra.mxu0 %vm664_vm5, %v2926_v10 }
  0xf7   : > { %v1272_v3 = vpop.f32.mrf.mxu2  ;;  %2528 = vmatmul.msk.bf16.gmra.mxu1 %vm664_vm5, %v3370_v22  ;;  %v3385_v47 = vadd.f32 %v1560_v60, %v1484_v61  ;;  %v2545_v60 = vrot.slane %v2942_v35, 9 }
  0xf8   : > { %v1351_v41 = vadd.f32 %v1272_v3, %v952_v58  ;;  %v1122_v58 = vrot.slane %v1120_v19, 4 }
  0xf9   : > { %v1121_v57 = vsel %vm3118_vm8, %v2545_v60, %v1120_v19 }
  0xfa   : > { %v1124_v55 = vsel %vm3118_vm8, %v1122_v58, %v1123_v48  ;;  %v4000_v58 = vld [vmem:[#allocation11_spill] sm:$0xff] }
  0xfb   : > { %v1562_v27 = vpop.f32.mrf.mxu0 }
  0xfc   : > { %v1406_v23 = vpop.f32.mrf.mxu3  ;;  %2561 = vmatmul.msk.bf16.gmra.mxu2 %vm664_vm5, %v3387_v13  ;;  %v956_v25 = vpop.f32.mrf.mxu1 }
  0xfd   : > { %v1485_v37 = vadd.f32 %v1406_v23, %v1351_v41  ;;  %v957_v51 = vadd.f32 %v956_v25, %v3284_v63  ;;  %v1182_v63 = vunpack.c.l.b16 %v1121_v57  ;;  %v1183_v23 = vunpack.c.l.b16 %v1124_v55  ;;  %v3420_v55 = vld [vmem:[%s2788_s27 + $0x84] sm:$0xff] }
  0xff   : > { %v1275_v52 = vpop.f32.mrf.mxu2  ;;  %v3398_v34 = vadd.f32 %v1562_v27, %v1485_v37  ;;  %v3413_v48 = vpack.c.b16 %v1183_v23, %v1182_v63  ;;  %v1127_v37 = vrot.slane %v3036_v40, 5 }
 0x100   : > { %v1352_v45 = vadd.f32 %v1275_v52, %v955_v42  ;;  %v1130_v52 = vrot.slane %v4000_v58, 5 }
 0x101   : > { %2582 = vmatmul.msk.bf16.gmra.mxu3 %vm664_vm5, %v3394_v21 }
 0x103   : > { %v1565_v61 = vpop.f32.mrf.mxu0 }
 0x104   : > { %v1409_v3 = vpop.f32.mrf.mxu3  ;;  %v959_v41 = vpop.f32.mrf.mxu1 }
 0x105   : > { %v1486_v35 = vadd.f32 %v1409_v3, %v1352_v45  ;;  %v960_v27 = vadd.f32 %v959_v41, %v3306_v6 }
 0x106   : > { %2599 = vmatmul.msk.bf16.gmra.mxu0 %vm664_vm5, %v3011_v32 }
 0x107   : > { %v1277_v42 = vpop.f32.mrf.mxu2  ;;  %2529 = vmatmul.msk.bf16.gmra.mxu1 %vm664_vm5, %v3394_v21  ;;  %v3411_v19 = vadd.f32 %v1565_v61, %v1486_v35  ;;  %v4001_v61 = vld [vmem:[#allocation9_spill] sm:$0xff] }
 0x108   : > { %v1353_v25 = vadd.f32 %v1277_v42, %v957_v51  ;;  %v2546_v41 = vrot.slane %v4001_v61, 9  ;;  %v1129_v51 = vrot.slane %v1127_v37, 4 }
 0x109   : > { %3999 = vst [vmem:[#allocation30_spill] sm:$0xff] %v3411_v19 }
 0x10a   : > { %v1128_v35 = vsel %vm3118_vm8, %v2546_v41, %v1127_v37  ;;  %v1131_v42 = vsel %vm3118_vm8, %v1129_v51, %v1130_v52  ;;  %v2717_v51 = vld [vmem:[%s2788_s27 + $0x94] sm:$0xf] }
 0x10b   : > { %v1567_v60 = vpop.f32.mrf.mxu0 }
 0x10c   : > { %v1411_v45 = vpop.f32.mrf.mxu3  ;;  %2562 = vmatmul.msk.bf16.gmra.mxu2 %vm664_vm5, %v3413_v48  ;;  %v961_v6 = vpop.f32.mrf.mxu1 }
 0x10d   : > { %v1487_v57 = vadd.f32 %v1411_v45, %v1353_v25  ;;  %v962_v3 = vadd.f32 %v961_v6, %v3326_v38  ;;  %v1184_v45 = vunpack.c.l.b16 %v1128_v35  ;;  %v1185_v6 = vunpack.c.l.b16 %v1131_v42 }
 0x10f   : > { %v1280_v63 = vpop.f32.mrf.mxu2  ;;  %v3424_v23 = vadd.f32 %v1567_v60, %v1487_v57  ;;  %v3439_v41 = vpack.c.b16 %v1185_v6, %v1184_v45 }
 0x110   : > { %v1354_v40 = vadd.f32 %v1280_v63, %v960_v27  ;;  %v4003_v27 = vld [vmem:[#allocation16_spill] sm:$0xff]  ;;  %v1134_v63 = vrot.slane %v2717_v51, 5 }
 0x111   : > { %4002 = vst [vmem:[#allocation11_spill] sm:$0xff] %v3424_v23  ;;  %2583 = vmatmul.msk.bf16.gmra.mxu3 %vm664_vm5, %v3420_v55  ;;  %v3446_v23 = vld [vmem:[%s2788_s27 + $0x90] sm:$0xff] }
 0x112   : > { %4005 = vst [vmem:[#allocation31_spill] sm:$0xff] %v3439_v41 }
 0x113   : > { %v1570_v25 = vpop.f32.mrf.mxu0  ;;  %4006 = vst [vmem:[#allocation32_spill] sm:$0xff] %v3446_v23 }
 0x114   : > { %v1414_v38 = vpop.f32.mrf.mxu3  ;;  %v964_v58 = vpop.f32.mrf.mxu1 }
 0x115   : > { %v1488_v61 = vadd.f32 %v1414_v38, %v1354_v40  ;;  %v965_v60 = vadd.f32 %v964_v58, %v3348_v17  ;;  %v2718_v40 = vld [vmem:[%s2788_s27 + $0x98] sm:$0x1] }
 0x116   : > { %2600 = vmatmul.msk.bf16.gmra.mxu0 %vm664_vm5, %v4003_v27  ;;  %v1137_v42 = vrot.slane %v2718_v40, 5 }
 0x117   : > { %v1282_v57 = vpop.f32.mrf.mxu2  ;;  %2530 = vmatmul.msk.bf16.gmra.mxu1 %vm664_vm5, %v3420_v55  ;;  %v3437_v37 = vadd.f32 %v1570_v25, %v1488_v61  ;;  %v2719_v25 = vld [vmem:[%s2788_s27 + $0x90] sm:$0xf] }
 0x118   : > { %v1355_v52 = vadd.f32 %v1282_v57, %v962_v3  ;;  %v2547_v61 = vrot.slane %v2719_v25, 9  ;;  %v1136_v3 = vrot.slane %v1134_v63, 4 }
 0x119   : > { %4004 = vst [vmem:[#allocation9_spill] sm:$0xff] %v3437_v37 }
 0x11a   : > { %v1135_v51 = vsel %vm3118_vm8, %v2547_v61, %v1134_v63  ;;  %v2720_v61 = vld [vmem:[%s2788_s27 + $0xa0] sm:$0xf] }
 0x11b   : > { %v1572_v35 = vpop.f32.mrf.mxu0 }
 0x11c   : > { %v1416_v17 = vpop.f32.mrf.mxu3  ;;  %2563 = vmatmul.msk.bf16.gmra.mxu2 %vm664_vm5, %v3439_v41  ;;  %v966_v38 = vpop.f32.mrf.mxu1  ;;  %v2722_v41 = vld [vmem:[%s2788_s27 + $0x9c] sm:$0xf] }
 0x11d   : > { %v1489_v58 = vadd.f32 %v1416_v17, %v1355_v52  ;;  %v967_v27 = vadd.f32 %v966_v38, %v3362_v50  ;;  %v1138_v52 = vsel %vm3118_vm8, %v1136_v3, %v1137_v42  ;;  %v1186_v38 = vunpack.c.l.b16 %v1135_v51 }
 0x11e   : > { %v1187_v25 = vunpack.c.l.b16 %v1138_v52  ;;  %v1141_v3 = vrot.slane %v2720_v61, 5  ;;  %v2721_v52 = vld [vmem:[%s2788_s27 + $0xa4] sm:$0x1] }
 0x11f   : > { %v1285_v45 = vpop.f32.mrf.mxu2  ;;  %v3450_v6 = vadd.f32 %v1572_v35, %v1489_v58  ;;  %v4008_v35 = vld [vmem:[#allocation3_spill] sm:$0xff] }
 0x120   : > { %v1356_v57 = vadd.f32 %v1285_v45, %v965_v60  ;;  %v3464_v42 = vpack.c.b16 %v1187_v25, %v1186_v38 }
 0x121   : > { %4007 = vst [vmem:[#allocation33_spill] sm:$0xff] %v3450_v6  ;;  %2584 = vmatmul.msk.bf16.gmra.mxu3 %vm664_vm5, %v3446_v23 }
 0x122   : > { %4010 = vst [vmem:[#allocation35_spill] sm:$0xff] %v3464_v42 }
 0x123   : > { %v1575_v40 = vpop.f32.mrf.mxu0 }
 0x124   : > { %v1419_v17 = vpop.f32.mrf.mxu3  ;;  %v969_v50 = vpop.f32.mrf.mxu1 }
 0x125   : > { %v1490_v37 = vadd.f32 %v1419_v17, %v1356_v57  ;;  %v1144_v17 = vrot.slane %v2721_v52, 5 }
 0x126   : > { %2601 = vmatmul.msk.bf16.gmra.mxu0 %vm664_vm5, %v4008_v35  ;;  %v3471_v35 = vld [vmem:[%s2788_s27 + $0x9c] sm:$0xff] }
 0x127   : > { %v1287_v60 = vpop.f32.mrf.mxu2  ;;  %2531 = vmatmul.msk.bf16.gmra.mxu1 %vm664_vm5, %v3446_v23  ;;  %v3462_v63 = vadd.f32 %v1575_v40, %v1490_v37  ;;  %4011 = vst [vmem:[#allocation36_spill] sm:$0xff] %v3471_v35  ;;  %v2548_v23 = vrot.slane %v2722_v41, 9  ;;  %v1143_v37 = vrot.slane %v1141_v3, 4 }
 0x128   : > { %v1357_v58 = vadd.f32 %v1287_v60, %v967_v27  ;;  %v970_v27 = vadd.f32 %v969_v50, %v3201_v11  ;;  %v4013_v50 = vld [vmem:[#allocation4_spill] sm:$0xff] }
 0x129   : > { %4009 = vst [vmem:[#allocation34_spill] sm:$0xff] %v3462_v63  ;;  %v1142_v60 = vsel %vm3118_vm8, %v2548_v23, %v1141_v3 }
 0x12a   : > { %v1188_v41 = vunpack.c.l.b16 %v1142_v60 }
 0x12b   : > { %v1577_v45 = vpop.f32.mrf.mxu0 }
 0x12c   : > { %v1421_v51 = vpop.f32.mrf.mxu3  ;;  %2564 = vmatmul.msk.bf16.gmra.mxu2 %vm664_vm5, %v3464_v42  ;;  %v971_v57 = vpop.f32.mrf.mxu1 }
 0x12d   : > { %v1491_v6 = vadd.f32 %v1421_v51, %v1357_v58  ;;  %v1145_v58 = vsel %vm3118_vm8, %v1143_v37, %v1144_v17  ;;  %v4016_v37 = vld [vmem:[#allocation6_spill] sm:$0xff] }
 0x12e   : > { %v1189_v63 = vunpack.c.l.b16 %v1145_v58  ;;  %v4017_v58 = vld [vmem:[#allocation7_spill] sm:$0xff] }
 0x12f   : > { %v1290_v40 = vpop.f32.mrf.mxu2  ;;  %v3475_v38 = vadd.f32 %v1577_v45, %v1491_v6  ;;  %v972_v6 = vadd.f32 %v971_v57, %v3216_v31  ;;  %v3497_v57 = vld [vmem:[%s2788_s27 + $0xa8] sm:$0xff] }
 0x130   : > { %v1358_v25 = vadd.f32 %v1290_v40, %v970_v27  ;;  %v3490_v17 = vpack.c.b16 %v1189_v63, %v1188_v41  ;;  %v1148_v27 = vrot.slane %v4016_v37, 5  ;;  %4018 = vst [vmem:[#allocation6_spill] sm:$0xff] %v3497_v57 }
 0x131   : > { %4012 = vst [vmem:[#allocation37_spill] sm:$0xff] %v3475_v38  ;;  %2585 = vmatmul.msk.bf16.gmra.mxu3 %vm664_vm5, %v3471_v35  ;;  %v4019_v38 = vld [vmem:[#allocation5_spill] sm:$0xff] }
 0x132   : > { %4015 = vst [vmem:[#allocation39_spill] sm:$0xff] %v3490_v17 }
 0x133   : > { %v1580_v61 = vpop.f32.mrf.mxu0 }
 0x134   : > { %v1424_v51 = vpop.f32.mrf.mxu3  ;;  %v974_v52 = vpop.f32.mrf.mxu1 }
 0x135   : > { %v1492_v11 = vadd.f32 %v1424_v51, %v1358_v25  ;;  %v1151_v51 = vrot.slane %v4017_v58, 5 }
 0x136   : > { %2602 = vmatmul.msk.bf16.gmra.mxu0 %vm664_vm5, %v4013_v50  ;;  %v2549_v50 = vrot.slane %v4019_v38, 9 }
 0x137   : > { %v1292_v45 = vpop.f32.mrf.mxu2  ;;  %2532 = vmatmul.msk.bf16.gmra.mxu1 %vm664_vm5, %v3471_v35  ;;  %v3488_v23 = vadd.f32 %v1580_v61, %v1492_v11  ;;  %v1150_v61 = vrot.slane %v1148_v27, 4  ;;  %v975_v11 = vadd.f32 %v974_v52, %v3236_v29 }
 0x138   : > { %v1359_v3 = vadd.f32 %v1292_v45, %v972_v6  ;;  %v1149_v45 = vsel %vm3118_vm8, %v2549_v50, %v1148_v27  ;;  %v3515_v50 = vld [vmem:[%s2788_s27 + $0xc0] sm:$0xf] }
 0x139   : > { %4014 = vst [vmem:[#allocation38_spill] sm:$0xff] %v3488_v23  ;;  %v1190_v58 = vunpack.c.l.b16 %v1149_v45  ;;  %v4021_v23 = vld [vmem:[#allocation10_spill] sm:$0xff]  ;;  %v1517_v45 = vshrl.u32 %v3515_v50, 16 }
 0x13a   : > { %4022 = vst [vmem:[#allocation5_spill] sm:$0xff] %v3515_v50 }
 0x13b   : > { %v1582_v40 = vpop.f32.mrf.mxu0 }
 0x13c   : > { %v1426_v60 = vpop.f32.mrf.mxu3  ;;  %2565 = vmatmul.msk.bf16.gmra.mxu2 %vm664_vm5, %v3490_v17  ;;  %v976_v25 = vpop.f32.mrf.mxu1 }
 0x13d   : > { %v1493_v31 = vadd.f32 %v1426_v60, %v1359_v3  ;;  %v1152_v3 = vsel %vm3118_vm8, %v1150_v61, %v1151_v51 }
 0x13e   : > { %v1191_v29 = vunpack.c.l.b16 %v1152_v3 }
 0x13f   : > { %v1295_v63 = vpop.f32.mrf.mxu2  ;;  %v3501_v41 = vadd.f32 %v1582_v40, %v1493_v31  ;;  %v977_v40 = vadd.f32 %v976_v25, %v3254_v33  ;;  %v1520_v33 = vshll.u32 %v3515_v50, 16 }
 0x140   : > { %v1360_v6 = vadd.f32 %v1295_v63, %v975_v11  ;;  %v3519_v61 = vpack.c.b16 %v1191_v29, %v1190_v58  ;;  %v3522_v11 = vld [vmem:[%s2788_s27 + $0xc4] sm:$0xf]  ;;  %v4026_v63 = vld [vmem:[#allocation13_spill] sm:$0xff] }
 0x141   : > { %4020 = vst [vmem:[#allocation7_spill] sm:$0xff] %v3501_v41  ;;  %2586 = vmatmul.msk.bf16.gmra.mxu3 %vm664_vm5, %v3497_v57  ;;  %v1526_v25 = vshll.u32 %v3522_v11, 16  ;;  %v4027_v58 = vld [vmem:[#allocation14_spill] sm:$0xff]  ;;  %v1522_v17 = vrot.slane %v1520_v33, 5 }
 0x142   : > { %4024 = vst [vmem:[#allocation41_spill] sm:$0xff] %v3519_v61  ;;  %v1158_v29 = vrot.slane %v4027_v58, 5 }
 0x143   : > { %v1585_v37 = vpop.f32.mrf.mxu0  ;;  %4025 = vst [vmem:[#allocation42_spill] sm:$0xff] %v3522_v11 }
 0x144   : > { %v1429_v38 = vpop.f32.mrf.mxu3  ;;  %v979_v60 = vpop.f32.mrf.mxu1 }
 0x145   : > { %v1494_v52 = vadd.f32 %v1429_v38, %v1360_v6  ;;  %v1155_v6 = vrot.slane %v4026_v63, 5  ;;  %v1530_v38 = vshrl.u32 %v3522_v11, 16  ;;  %v980_v50 = vadd.f32 %v979_v60, %v3274_v14 }
 0x146   : > { %2603 = vmatmul.msk.bf16.gmra.mxu0 %vm664_vm5, %v4021_v23  ;;  %v1519_v23 = vrot.slane %v1517_v45, 4  ;;  %v1528_v11 = vrot.slane %v1526_v25, 5 }
 0x147   : > { %v1297_v31 = vpop.f32.mrf.mxu2  ;;  %2533 = vmatmul.msk.bf16.gmra.mxu1 %vm664_vm5, %v3497_v57  ;;  %v3517_v27 = vadd.f32 %v1585_v37, %v1494_v52  ;;  %v1532_v35 = vrot.slane %v1530_v38, 4 }
 0x148   : > { %v1361_v51 = vadd.f32 %v1297_v31, %v977_v40  ;;  %v3533_v40 = vld [vmem:[%s2788_s27 + $0xb4] sm:$0xff]  ;;  %v1523_v60 = vor.u32 %v1522_v17, %v1519_v23 }
 0x149   : > { %4023 = vst [vmem:[#allocation40_spill] sm:$0xff] %v3517_v27  ;;  %v4028_v31 = vld [vmem:[#allocation12_spill] sm:$0xff]  ;;  %v1157_v27 = vrot.slane %v1155_v6, 4  ;;  %v1533_v45 = vor.u32 %v1532_v35, %v1528_v11 }
 0x14a   : > { %v2550_v63 = vrot.slane %v4028_v31, 9 }
 0x14b   : > { %v1587_v3 = vpop.f32.mrf.mxu0  ;;  %v1534_v23 = vrot.slane %v1533_v45, 4 }
 0x14c   : > { %v1431_v41 = vpop.f32.mrf.mxu3  ;;  %2566 = vmatmul.msk.bf16.gmra.mxu2 %vm664_vm5, %v3519_v61  ;;  %v981_v37 = vpop.f32.mrf.mxu1  ;;  %v3540_v61 = vld [vmem:[%s2788_s27 + $0xc8] sm:$0x1] }
 0x14d   : > { %v1495_v52 = vadd.f32 %v1431_v41, %v1361_v51  ;;  %v1156_v41 = vsel %vm3118_vm8, %v2550_v63, %v1155_v6  ;;  %v1159_v51 = vsel %vm3118_vm8, %v1157_v27, %v1158_v29  ;;  %v1536_v33 = vshll.u32 %v3540_v61, 16 }
 0x14e   : > { %v1192_v38 = vunpack.c.l.b16 %v1156_v41  ;;  %v982_v58 = vadd.f32 %v981_v37, %v3295_v28  ;;  %v1524_v27 = vrot.slane %v1523_v60, 4 }
 0x14f   : > { %v1300_v57 = vpop.f32.mrf.mxu2  ;;  %v3537_v42 = vadd.f32 %v1587_v3, %v1495_v52  ;;  %v1538_v35 = vrot.slane %v1536_v33, 5 }
 0x150   : > { %v1362_v19 = vadd.f32 %v1300_v57, %v980_v50  ;;  %v1193_v57 = vunpack.c.l.b16 %v1159_v51  ;;  %v3565_v51 = vld [vmem:[%s2788_s27 + $0xc0] sm:$0xff] }
 0x151   : > { %2587 = vmatmul.msk.bf16.gmra.mxu3 %vm664_vm5, %v3533_v40  ;;  %v1539_v28 = vsel %vm2815_vm4, %v1534_v23, %v1538_v35 }
 0x152   : > { %v3556_v52 = vpack.c.b16 %v1193_v57, %v1192_v38  ;;  %v1543_v45 = vunpack.c.l.b16 %v1539_v28 }
 0x153   : > { %v1590_v14 = vpop.f32.mrf.mxu0 }
 0x154   : > { %v1434_v25 = vpop.f32.mrf.mxu3  ;;  %v984_v3 = vpop.f32.mrf.mxu1 }
 0x155   : > { %v1496_v50 = vadd.f32 %v1434_v25, %v1362_v19  ;;  %v1529_v19 = vsel %vm2815_vm4, %v1524_v27, %v1528_v11 }
 0x156   : > { %2604 = vmatmul.msk.bf16.gmra.mxu0 %vm664_vm5, %v3127_v62  ;;  %v1542_v60 = vunpack.c.l.b16 %v1529_v19 }
 0x157   : > { %v1302_v6 = vpop.f32.mrf.mxu2  ;;  %2534 = vmatmul.msk.bf16.gmra.mxu1 %vm664_vm5, %v3533_v40  ;;  %v3554_v17 = vadd.f32 %v1590_v14, %v1496_v50  ;;  %v985_v14 = vadd.f32 %v984_v3, %v3316_v36 }
 0x158   : > { %v1363_v29 = vadd.f32 %v1302_v6, %v982_v58  ;;  %v3572_v11 = vpack.c.b16 %v1543_v45, %v1542_v60 }
 0x15b   : > { %v1592_v31 = vpop.f32.mrf.mxu0 }
 0x15c   : > { %v1436_v37 = vpop.f32.mrf.mxu3  ;;  %2567 = vmatmul.msk.bf16.gmra.mxu2 %vm664_vm5, %v3556_v52  ;;  %v986_v63 = vpop.f32.mrf.mxu1 }
 0x15d   : > { %v1497_v41 = vadd.f32 %v1436_v37, %v1363_v29  ;;  %v987_v36 = vadd.f32 %v986_v63, %v3333_v26 }
 0x15f   : > { %v1305_v33 = vpop.f32.mrf.mxu2  ;;  %v3568_v25 = vadd.f32 %v1592_v31, %v1497_v41 }
 0x160   : > { %v1364_v38 = vadd.f32 %v1305_v33, %v985_v14 }
 0x161   : > { %2588 = vmatmul.msk.bf16.gmra.mxu3 %vm664_vm5, %v3565_v51 }
 0x163   : > { %v1595_v57 = vpop.f32.mrf.mxu0 }
 0x164   : > { %v1439_v50 = vpop.f32.mrf.mxu3  ;;  %v989_v58 = vpop.f32.mrf.mxu1 }
 0x165   : > { %v1498_v6 = vadd.f32 %v1439_v50, %v1364_v38  ;;  %v990_v28 = vadd.f32 %v989_v58, %v3218_v12 }
 0x166   : > { %2605 = vmatmul.msk.bf16.gmra.mxu0 %vm664_vm5, %v3572_v11 }
 0x167   : > { %v1307_v3 = vpop.f32.mrf.mxu2  ;;  %2608 = vmatmul.msk.bf16.vlgmr.msra.gmra.mxu1 %vm664_vm5, %v3152_v7  ;;  %v3579_v27 = vadd.f32 %v1595_v57, %v1498_v6 }
 0x168   : > { %v1365_v23 = vadd.f32 %v1307_v3, %v987_v36 }
 0x16b   : > { %v1597_v35 = vpop.f32.mrf.mxu0 }
 0x16c   : > { %v1441_v29 = vpop.f32.mrf.mxu3  ;;  %2629 = vmatmul.msk.bf16.vlgmr.msra.gmra.mxu2 %vm664_vm5, %v3164_v46  ;;  %v991_v31 = vpop.f32.mrf.mxu1 }
 0x16d   : > { %v1499_v19 = vadd.f32 %v1441_v29, %v1365_v23  ;;  %v992_v46 = vadd.f32 %v991_v31, %v3240_v8 }
 0x16f   : > { %v1310_v37 = vpop.f32.mrf.mxu2  ;;  %v3584_v41 = vadd.f32 %v1597_v35, %v1499_v19 }
 0x170   : > { %v1366_v26 = vadd.f32 %v1310_v37, %v990_v28 }
 0x171   : > { %2646 = vmatmul.msk.bf16.vlgmr.msra.gmra.mxu3 %vm664_vm5, %v3055_v56 }
 0x173   : > { %v1600_v7 = vpop.f32.mrf.mxu0 }
 0x174   : > { %v1444_v63 = vpop.f32.mrf.mxu3  ;;  %v994_v14 = vpop.f32.mrf.mxu1 }
 0x175   : > { %v1500_v60 = vadd.f32 %v1444_v63, %v1366_v26  ;;  %v995_v58 = vadd.f32 %v994_v14, %v3260_v54 }
 0x176   : > { %2664 = vmatmul.msk.bf16.vlgmr.msra.gmra.mxu0 %vm664_vm5, %v3178_v59 }
 0x177   : > { %v1312_v45 = vpop.f32.mrf.mxu2  ;;  %2609 = vmatmul.msk.bf16.gmra.mxu1 %vm664_vm5, %v3178_v59  ;;  %v3593_v12 = vadd.f32 %v1600_v7, %v1500_v60 }
 0x178   : > { %v1367_v33 = vadd.f32 %v1312_v45, %v992_v46 }
 0x17b   : > { %v1602_v38 = vpop.f32.mrf.mxu0 }
 0x17c   : > { %v1446_v57 = vpop.f32.mrf.mxu3  ;;  %2630 = vmatmul.msk.bf16.gmra.mxu2 %vm664_vm5, %v3184_v5  ;;  %v996_v56 = vpop.f32.mrf.mxu1 }
 0x17d   : > { %v1501_v50 = vadd.f32 %v1446_v57, %v1367_v33  ;;  %v997_v5 = vadd.f32 %v996_v56, %v3278_v9 }
 0x17f   : > { %v1315_v6 = vpop.f32.mrf.mxu2  ;;  %v3598_v36 = vadd.f32 %v1602_v38, %v1501_v50 }
 0x180   : > { %v1368_v8 = vadd.f32 %v1315_v6, %v995_v58 }
 0x181   : > { %2647 = vmatmul.msk.bf16.gmra.mxu3 %vm664_vm5, %v3145_v18 }
 0x183   : > { %v1605_v59 = vpop.f32.mrf.mxu0 }
 0x184   : > { %v1449_v3 = vpop.f32.mrf.mxu3  ;;  %v999_v23 = vpop.f32.mrf.mxu1 }
 0x185   : > { %v1502_v35 = vadd.f32 %v1449_v3, %v1368_v8  ;;  %v1000_v26 = vadd.f32 %v999_v23, %v3297_v4 }
 0x186   : > { %2665 = vmatmul.msk.bf16.gmra.mxu0 %vm664_vm5, %v3198_v43 }
 0x187   : > { %v1317_v29 = vpop.f32.mrf.mxu2  ;;  %2610 = vmatmul.msk.bf16.gmra.mxu1 %vm664_vm5, %v3198_v43  ;;  %v3607_v54 = vadd.f32 %v1605_v59, %v1502_v35 }
 0x188   : > { %v1369_v31 = vadd.f32 %v1317_v29, %v997_v5 }
 0x18b   : > { %v1607_v19 = vpop.f32.mrf.mxu0 }
 0x18c   : > { %v1451_v28 = vpop.f32.mrf.mxu3  ;;  %2631 = vmatmul.msk.bf16.gmra.mxu2 %vm664_vm5, %v3206_v20  ;;  %v1001_v18 = vpop.f32.mrf.mxu1 }
 0x18d   : > { %v1503_v37 = vadd.f32 %v1451_v28, %v1369_v31  ;;  %v1002_v20 = vadd.f32 %v1001_v18, %v3318_v24 }
 0x18f   : > { %v1320_v7 = vpop.f32.mrf.mxu2  ;;  %v3612_v63 = vadd.f32 %v1607_v19, %v1503_v37  ;;  %v4029_v19 = vld [vmem:[#allocation17_spill] sm:$0xff] }
 0x190   : > { %v1370_v9 = vadd.f32 %v1320_v7, %v1000_v26  ;;  %v4030_v26 = vld [vmem:[#allocation8_spill] sm:$0xff] }
 0x191   : > { %2648 = vmatmul.msk.bf16.gmra.mxu3 %vm664_vm5, %v2827_v1 }
 0x193   : > { %v1610_v43 = vpop.f32.mrf.mxu0 }
 0x194   : > { %v1454_v14 = vpop.f32.mrf.mxu3  ;;  %v1004_v60 = vpop.f32.mrf.mxu1 }
 0x195   : > { %v1504_v46 = vadd.f32 %v1454_v14, %v1370_v9  ;;  %v1005_v50 = vadd.f32 %v1004_v60, %v3340_v53  ;;  %v4031_v14 = vld [vmem:[#allocation21_spill] sm:$0xff]  ;;  %v4032_v60 = vld [vmem:[#allocation18_spill] sm:$0xff] }
 0x196   : > { %2666 = vmatmul.msk.bf16.gmra.mxu0 %vm664_vm5, %v3226_v15 }
 0x197   : > { %v1322_v45 = vpop.f32.mrf.mxu2  ;;  %2611 = vmatmul.msk.bf16.gmra.mxu1 %vm664_vm5, %v3226_v15  ;;  %v3621_v4 = vadd.f32 %v1610_v43, %v1504_v46 }
 0x198   : > { %v1371_v33 = vadd.f32 %v1322_v45, %v1002_v20 }
 0x19b   : > { %v1612_v38 = vpop.f32.mrf.mxu0 }
 0x19c   : > { %v1456_v57 = vpop.f32.mrf.mxu3  ;;  %2632 = vmatmul.msk.bf16.gmra.mxu2 %vm664_vm5, %v3234_v0  ;;  %v1006_v1 = vpop.f32.mrf.mxu1 }
 0x19d   : > { %v1505_v56 = vadd.f32 %v1456_v57, %v1371_v33  ;;  %v1007_v0 = vadd.f32 %v1006_v1, %v3355_v2  ;;  %v4033_v57 = vld [vmem:[#allocation22_spill] sm:$0xff] }
 0x19f   : > { %v1325_v58 = vpop.f32.mrf.mxu2  ;;  %v3626_v6 = vadd.f32 %v1612_v38, %v1505_v56 }
 0x1a0   : > { %v1372_v24 = vadd.f32 %v1325_v58, %v1005_v50  ;;  %v4034_v50 = vld [vmem:[#allocation19_spill] sm:$0xff] }
 0x1a1   : > { %2649 = vmatmul.msk.bf16.gmra.mxu3 %vm664_vm5, %v2901_v44 }
 0x1a3   : > { %v1615_v15 = vpop.f32.mrf.mxu0 }
 0x1a4   : > { %v1459_v8 = vpop.f32.mrf.mxu3  ;;  %v1009_v59 = vpop.f32.mrf.mxu1 }
 0x1a5   : > { %v1506_v3 = vadd.f32 %v1459_v8, %v1372_v24  ;;  %v1010_v28 = vadd.f32 %v1009_v59, %v4029_v19  ;;  %v4035_v59 = vld [vmem:[#allocation15_spill] sm:$0xff] }
 0x1a6   : > { %2667 = vmatmul.msk.bf16.gmra.mxu0 %vm664_vm5, %v3258_v49 }
 0x1a7   : > { %v1327_v23 = vpop.f32.mrf.mxu2  ;;  %2612 = vmatmul.msk.bf16.gmra.mxu1 %vm664_vm5, %v3258_v49  ;;  %v3635_v53 = vadd.f32 %v1615_v15, %v1506_v3 }
 0x1a8   : > { %v1373_v35 = vadd.f32 %v1327_v23, %v1007_v0 }
 0x1ab   : > { %v1617_v5 = vpop.f32.mrf.mxu0 }
 0x1ac   : > { %v1461_v29 = vpop.f32.mrf.mxu3  ;;  %2633 = vmatmul.msk.bf16.gmra.mxu2 %vm664_vm5, %v3268_v16  ;;  %v1011_v44 = vpop.f32.mrf.mxu1 }
 0x1ad   : > { %v1507_v31 = vadd.f32 %v1461_v29, %v1373_v35  ;;  %v1012_v16 = vadd.f32 %v1011_v44, %v4032_v60  ;;  %v4037_v29 = vld [vmem:[#allocation20_spill] sm:$0xff] }
 0x1af   : > { %v1330_v18 = vpop.f32.mrf.mxu2  ;;  %v3640_v37 = vadd.f32 %v1617_v5, %v1507_v31  ;;  %v4036_v5 = vld [vmem:[#allocation24_spill] sm:$0xff] }
 0x1b0   : > { %v1374_v2 = vadd.f32 %v1330_v18, %v1010_v28 }
 0x1b1   : > { %2650 = vmatmul.msk.bf16.gmra.mxu3 %vm664_vm5, %v4030_v26  ;;  %v4038_v26 = vld [vmem:[#allocation26_spill] sm:$0xff] }
 0x1b3   : > { %v1620_v49 = vpop.f32.mrf.mxu0 }
 0x1b4   : > { %v1464_v7 = vpop.f32.mrf.mxu3  ;;  %v1014_v9 = vpop.f32.mrf.mxu1 }
 0x1b5   : > { %v1508_v43 = vadd.f32 %v1464_v7, %v1374_v2  ;;  %v1015_v58 = vadd.f32 %v1014_v9, %v4034_v50  ;;  %v4039_v9 = vld [vmem:[#allocation23_spill] sm:$0xff] }
 0x1b6   : > { %2668 = vmatmul.msk.bf16.gmra.mxu0 %vm664_vm5, %v4031_v14 }
 0x1b7   : > { %v1332_v46 = vpop.f32.mrf.mxu2  ;;  %2613 = vmatmul.msk.bf16.gmra.mxu1 %vm664_vm5, %v4031_v14  ;;  %v3649_v20 = vadd.f32 %v1620_v49, %v1508_v43 }
 0x1b8   : > { %v1375_v45 = vadd.f32 %v1332_v46, %v1012_v16  ;;  %v4040_v46 = vld [vmem:[#allocation2_spill] sm:$0xff] }
 0x1bb   : > { %v1622_v33 = vpop.f32.mrf.mxu0 }
 0x1bc   : > { %v1466_v38 = vpop.f32.mrf.mxu3  ;;  %2634 = vmatmul.msk.bf16.gmra.mxu2 %vm664_vm5, %v4033_v57  ;;  %v1016_v1 = vpop.f32.mrf.mxu1 }
 0x1bd   : > { %v1509_v56 = vadd.f32 %v1466_v38, %v1375_v45  ;;  %v1017_v44 = vadd.f32 %v1016_v1, %v4037_v29  ;;  %v4041_v1 = vld [vmem:[#allocation28_spill] sm:$0xff] }
 0x1bf   : > { %v1335_v24 = vpop.f32.mrf.mxu2  ;;  %v3654_v15 = vadd.f32 %v1622_v33, %v1509_v56  ;;  %v4042_v56 = vld [vmem:[#allocation25_spill] sm:$0xff] }
 0x1c0   : > { %v1376_v8 = vadd.f32 %v1335_v24, %v1015_v58 }
 0x1c1   : > { %2651 = vmatmul.msk.bf16.gmra.mxu3 %vm664_vm5, %v4035_v59 }
 0x1c3   : > { %v1625_v3 = vpop.f32.mrf.mxu0 }
 0x1c4   : > { %v1469_v0 = vpop.f32.mrf.mxu3  ;;  %v1019_v23 = vpop.f32.mrf.mxu1 }
 0x1c5   : > { %v1510_v35 = vadd.f32 %v1469_v0, %v1376_v8  ;;  %v1020_v43 = vadd.f32 %v1019_v23, %v4039_v9 }
 0x1c6   : > { %2669 = vmatmul.msk.bf16.gmra.mxu0 %vm664_vm5, %v4036_v5 }
 0x1c7   : > { %v1337_v31 = vpop.f32.mrf.mxu2  ;;  %2614 = vmatmul.msk.bf16.gmra.mxu1 %vm664_vm5, %v4036_v5  ;;  %v3663_v19 = vadd.f32 %v1625_v3, %v1510_v35  ;;  %v4043_v35 = vld [vmem:[#allocation27_spill] sm:$0xff] }
 0x1c8   : > { %v1377_v28 = vadd.f32 %v1337_v31, %v1017_v44 }
 0x1cb   : > { %v1627_v18 = vpop.f32.mrf.mxu0 }
 0x1cc   : > { %v1471_v2 = vpop.f32.mrf.mxu3  ;;  %2635 = vmatmul.msk.bf16.gmra.mxu2 %vm664_vm5, %v4038_v26  ;;  %v1021_v49 = vpop.f32.mrf.mxu1 }
 0x1cd   : > { %v1511_v7 = vadd.f32 %v1471_v2, %v1377_v28  ;;  %v1022_v50 = vadd.f32 %v1021_v49, %v4042_v56  ;;  %v4044_v49 = vld [vmem:[#allocation29_spill] sm:$0xff] }
 0x1cf   : > { %v1340_v14 = vpop.f32.mrf.mxu2  ;;  %v3668_v60 = vadd.f32 %v1627_v18, %v1511_v7 }
 0x1d0   : > { %v1378_v16 = vadd.f32 %v1340_v14, %v1020_v43 }
 0x1d1   : > { %2652 = vmatmul.msk.bf16.gmra.mxu3 %vm664_vm5, %v4040_v46 }
 0x1d3   : > { %v1630_v45 = vpop.f32.mrf.mxu0 }
 0x1d4   : > { %v1474_v33 = vpop.f32.mrf.mxu3  ;;  %v1024_v38 = vpop.f32.mrf.mxu1 }
 0x1d5   : > { %v1512_v57 = vadd.f32 %v1474_v33, %v1378_v16  ;;  %v1025_v5 = vadd.f32 %v1024_v38, %v4043_v35 }
 0x1d6   : > { %2670 = vmatmul.msk.bf16.gmra.mxu0 %vm664_vm5, %v4041_v1 }
 0x1d7   : > { %v1342_v58 = vpop.f32.mrf.mxu2  ;;  %2615 = vmatmul.msk.bf16.gmra.mxu1 %vm664_vm5, %v4041_v1  ;;  %v3677_v24 = vadd.f32 %v1630_v45, %v1512_v57 }
 0x1d8   : > { %v1379_v8 = vadd.f32 %v1342_v58, %v1022_v50 }
 0x1db   : > { %v1632_v59 = vpop.f32.mrf.mxu0 }
 0x1dc   : > { %v1476_v3 = vpop.f32.mrf.mxu3  ;;  %2636 = vmatmul.msk.bf16.gmra.mxu2 %vm664_vm5, %v3370_v22  ;;  %v1026_v0 = vpop.f32.mrf.mxu1 }
 0x1dd   : > { %v1513_v23 = vadd.f32 %v1476_v3, %v1379_v8  ;;  %v1027_v22 = vadd.f32 %v1026_v0, %v4044_v49 }
 0x1df   : > { %v1345_v29 = vpop.f32.mrf.mxu2  ;;  %v3682_v44 = vadd.f32 %v1632_v59, %v1513_v23 }
 0x1e0   : > { %v1380_v31 = vadd.f32 %v1345_v29, %v1025_v5  ;;  %v4045_v29 = vld [vmem:[#allocation30_spill] sm:$0xff] }
 0x1e1   : > { %2653 = vmatmul.msk.bf16.gmra.mxu3 %vm664_vm5, %v2926_v10 }
 0x1e3   : > { %v1635_v28 = vpop.f32.mrf.mxu0 }
 0x1e4   : > { %v1479_v18 = vpop.f32.mrf.mxu3  ;;  %v1700_v2 = vpop.f32.mrf.mxu1 }
 0x1e5   : > { %v1514_v26 = vadd.f32 %v1479_v18, %v1380_v31  ;;  %v1780_v45 = vadd.f32 %v1700_v2, %v3385_v47  ;;  %v4046_v2 = vld [vmem:[#allocation16_spill] sm:$0xff] }
 0x1e6   : > { %2671 = vmatmul.msk.bf16.gmra.mxu0 %vm664_vm5, %v3387_v13 }
 0x1e7   : > { %v1347_v7 = vpop.f32.mrf.mxu2  ;;  %2616 = vmatmul.msk.bf16.gmra.mxu1 %vm664_vm5, %v3387_v13  ;;  %v3691_v9 = vadd.f32 %v1635_v28, %v1514_v26 }
 0x1e8   : > { %v1381_v43 = vadd.f32 %v1347_v7, %v1027_v22 }
 0x1eb   : > { %v1637_v14 = vpop.f32.mrf.mxu0 }
 0x1ec   : > { %v1481_v16 = vpop.f32.mrf.mxu3  ;;  %2637 = vmatmul.msk.bf16.gmra.mxu2 %vm664_vm5, %v3394_v21  ;;  %v1702_v10 = vpop.f32.mrf.mxu1  ;;  %v3703_v21 = vld [vmem:[%s3925_s2] ss:$0 sm:$0xff] }
 0x1ed   : > { %v1515_v46 = vadd.f32 %v1481_v16, %v1381_v43  ;;  %v1781_v58 = vadd.f32 %v1702_v10, %v3398_v34  ;;  %v4047_v16 = vld [vmem:[#allocation31_spill] sm:$0xff] }
 0x1ef   : > { %v1834_v33 = vpop.f32.mrf.mxu2  ;;  %v3696_v38 = vadd.f32 %v1637_v14, %v1515_v46  ;;  %v4048_v46 = vld [vmem:[#allocation11_spill] sm:$0xff] }
 0x1f0   : > { %v1914_v13 = vadd.f32 %v1834_v33, %v1780_v45 }
 0x1f1   : > { %2654 = vmatmul.msk.bf16.gmra.mxu3 %vm664_vm5, %v3011_v32 }
 0x1f3   : > { %v2130_v57 = vpop.f32.mrf.mxu0 }
 0x1f4   : > { %v1990_v1 = vpop.f32.mrf.mxu3  ;;  %v1705_v56 = vpop.f32.mrf.mxu1 }
 0x1f5   : > { %v2070_v50 = vadd.f32 %v1990_v1, %v1914_v13  ;;  %v1782_v31 = vadd.f32 %v1705_v56, %v4045_v29 }
 0x1f6   : > { %2672 = vmatmul.msk.bf16.gmra.mxu0 %vm664_vm5, %v3413_v48 }
 0x1f7   : > { %v2210_v47 = vadd.f32 %v2130_v57, %v2070_v50  ;;  %v1836_v8 = vpop.f32.mrf.mxu2  ;;  %2617 = vmatmul.msk.bf16.gmra.mxu1 %vm664_vm5, %v3413_v48 }
 0x1f8   : > { %v1915_v59 = vadd.f32 %v1836_v8, %v1781_v58 }
 0x1f9   : > { %v2246_v32 = vadd.f32 %v3703_v21, %v2210_v47  ;;  %v4049_v47 = vld [vmem:[#allocation32_spill] sm:$0xff] }
 0x1fb   : > { %v2278_v3 = vmax.f32 %v2246_v32, 0.0  ;;  %v2132_v0 = vpop.f32.mrf.mxu0 }
 0x1fc   : > { %v1992_v23 = vpop.f32.mrf.mxu3  ;;  %2638 = vmatmul.msk.bf16.gmra.mxu2 %vm664_vm5, %v3420_v55  ;;  %v1707_v34 = vpop.f32.mrf.mxu1 }
 0x1fd   : > { %v2310_v35 = vpack.c.bf16 %v2278_v3, %v2278_v3  ;;  %v2071_v48 = vadd.f32 %v1992_v23, %v1915_v59  ;;  %v1783_v45 = vadd.f32 %v1707_v34, %v4048_v46  ;;  %v4050_v3 = vld [vmem:[#allocation9_spill] sm:$0xff] }
 0x1ff   : > { %2343 = vst.msk [vmem:[%s3715_s16] sm:$0xf] %vm2342_vm9, %v2310_v35  ;;  %v2211_v5 = vadd.f32 %v2132_v0, %v2071_v48  ;;  %v1839_v28 = vpop.f32.mrf.mxu2  ;;  %v4051_v35 = vld [vmem:[#allocation3_spill] sm:$0xff] }
 0x200   : > { %v1916_v26 = vadd.f32 %v1839_v28, %v1782_v31 }
 0x201   : > { %v2247_v18 = vadd.f32 %v3703_v21, %v2211_v5  ;;  %2655 = vmatmul.msk.bf16.gmra.mxu3 %vm664_vm5, %v4046_v2 }
 0x203   : > { %v2279_v49 = vmax.f32 %v2247_v18, 0.0  ;;  %v2135_v22 = vpop.f32.mrf.mxu0 }
 0x204   : > { %v1995_v7 = vpop.f32.mrf.mxu3  ;;  %v1710_v55 = vpop.f32.mrf.mxu1 }
 0x205   : > { %v2311_v43 = vpack.c.bf16 %v2279_v49, %v2279_v49  ;;  %v2072_v14 = vadd.f32 %v1995_v7, %v1916_v26  ;;  %v1784_v0 = vadd.f32 %v1710_v55, %v4050_v3  ;;  %v4052_v26 = vld [vmem:[#allocation35_spill] sm:$0xff] }
 0x206   : > { %2673 = vmatmul.msk.bf16.gmra.mxu0 %vm664_vm5, %v4047_v16 }
 0x207   : > { %2344 = vst.msk [vmem:[%s3715_s16 + $0x4] sm:$0xf] %vm2342_vm9, %v2311_v43  ;;  %v2212_v10 = vadd.f32 %v2135_v22, %v2072_v14  ;;  %v1841_v33 = vpop.f32.mrf.mxu2  ;;  %2618 = vmatmul.msk.bf16.gmra.mxu1 %vm664_vm5, %v4047_v16  ;;  %v4053_v22 = vld [vmem:[#allocation33_spill] sm:$0xff] }
 0x208   : > { %v1917_v57 = vadd.f32 %v1841_v33, %v1783_v45  ;;  %v4054_v45 = vld [vmem:[#allocation36_spill] sm:$0xff] }
 0x209   : > { %v2248_v13 = vadd.f32 %v3703_v21, %v2212_v10 }
 0x20b   : > { %v2280_v1 = vmax.f32 %v2248_v13, 0.0  ;;  %v2137_v56 = vpop.f32.mrf.mxu0 }
 0x20c   : > { %v1997_v50 = vpop.f32.mrf.mxu3  ;;  %2639 = vmatmul.msk.bf16.gmra.mxu2 %vm664_vm5, %v4049_v47  ;;  %v1712_v58 = vpop.f32.mrf.mxu1 }
 0x20d   : > { %v2312_v8 = vpack.c.bf16 %v2280_v1, %v2280_v1  ;;  %v2073_v32 = vadd.f32 %v1997_v50, %v1917_v57  ;;  %v1785_v7 = vadd.f32 %v1712_v58, %v4053_v22 }
 0x20f   : > { %2345 = vst.msk [vmem:[%s3715_s16 + $0x8] sm:$0xf] %vm2342_vm9, %v2312_v8  ;;  %v2213_v59 = vadd.f32 %v2137_v56, %v2073_v32  ;;  %v1844_v23 = vpop.f32.mrf.mxu2  ;;  %v4055_v56 = vld [vmem:[#allocation34_spill] sm:$0xff]  ;;  %v4056_v8 = vld [vmem:[#allocation4_spill] sm:$0xff] }
 0x210   : > { %v1918_v48 = vadd.f32 %v1844_v23, %v1784_v0 }
 0x211   : > { %v2249_v34 = vadd.f32 %v3703_v21, %v2213_v59  ;;  %2656 = vmatmul.msk.bf16.gmra.mxu3 %vm664_vm5, %v4051_v35 }
 0x213   : > { %v2281_v5 = vmax.f32 %v2249_v34, 0.0  ;;  %v2140_v29 = vpop.f32.mrf.mxu0 }
 0x214   : > { %v2000_v31 = vpop.f32.mrf.mxu3  ;;  %v1715_v28 = vpop.f32.mrf.mxu1 }
 0x215   : > { %v2313_v18 = vpack.c.bf16 %v2281_v5, %v2281_v5  ;;  %v2074_v2 = vadd.f32 %v2000_v31, %v1918_v48  ;;  %v1786_v50 = vadd.f32 %v1715_v28, %v4055_v56  ;;  %v4057_v48 = vld [vmem:[#allocation39_spill] sm:$0xff] }
 0x216   : > { %2674 = vmatmul.msk.bf16.gmra.mxu0 %vm664_vm5, %v4052_v26 }
 0x217   : > { %2346 = vst.msk [vmem:[%s3715_s16 + $0xc] sm:$0xf] %vm2342_vm9, %v2313_v18  ;;  %v2214_v49 = vadd.f32 %v2140_v29, %v2074_v2  ;;  %v1846_v55 = vpop.f32.mrf.mxu2  ;;  %2619 = vmatmul.msk.bf16.gmra.mxu1 %vm664_vm5, %v4052_v26  ;;  %v4058_v29 = vld [vmem:[#allocation37_spill] sm:$0xff] }
 0x218   : > { %v1919_v14 = vadd.f32 %v1846_v55, %v1785_v7  ;;  %v4059_v7 = vld [vmem:[#allocation6_spill] sm:$0xff] }
 0x219   : > { %v2250_v43 = vadd.f32 %v3703_v21, %v2214_v49 }
 0x21b   : > { %v2282_v16 = vmax.f32 %v2250_v43, 0.0  ;;  %v2142_v10 = vpop.f32.mrf.mxu0 }
 0x21c   : > { %v2002_v46 = vpop.f32.mrf.mxu3  ;;  %2640 = vmatmul.msk.bf16.gmra.mxu2 %vm664_vm5, %v4054_v45  ;;  %v1717_v33 = vpop.f32.mrf.mxu1 }
 0x21d   : > { %v2314_v13 = vpack.c.bf16 %v2282_v16, %v2282_v16  ;;  %v2075_v57 = vadd.f32 %v2002_v46, %v1919_v14  ;;  %v1787_v31 = vadd.f32 %v1717_v33, %v4058_v29 }
 0x21f   : > { %2347 = vst.msk [vmem:[%s3715_s16 + $0x10] sm:$0xf] %vm2342_vm9, %v2314_v13  ;;  %v2215_v1 = vadd.f32 %v2142_v10, %v2075_v57  ;;  %v1849_v47 = vpop.f32.mrf.mxu2  ;;  %v4060_v10 = vld [vmem:[#allocation38_spill] sm:$0xff] }
 0x220   : > { %v1920_v32 = vadd.f32 %v1849_v47, %v1786_v50  ;;  %v4061_v13 = vld [vmem:[#allocation10_spill] sm:$0xff] }
 0x221   : > { %v2251_v58 = vadd.f32 %v3703_v21, %v2215_v1  ;;  %2657 = vmatmul.msk.bf16.gmra.mxu3 %vm664_vm5, %v4056_v8 }
 0x223   : > { %v2283_v59 = vmax.f32 %v2251_v58, 0.0  ;;  %v2145_v3 = vpop.f32.mrf.mxu0 }
 0x224   : > { %v2005_v0 = vpop.f32.mrf.mxu3  ;;  %v1720_v23 = vpop.f32.mrf.mxu1 }
 0x225   : > { %v2315_v34 = vpack.c.bf16 %v2283_v59, %v2283_v59  ;;  %v2076_v35 = vadd.f32 %v2005_v0, %v1920_v32  ;;  %v1788_v46 = vadd.f32 %v1720_v23, %v4060_v10  ;;  %v4062_v32 = vld [vmem:[#allocation41_spill] sm:$0xff]  ;;  %v3791_v10 = vld [vmem:[%s2788_s27 + $0xcc] sm:$0xf] }
 0x226   : > { %2675 = vmatmul.msk.bf16.gmra.mxu0 %vm664_vm5, %v4057_v48 }
 0x227   : > { %2348 = vst.msk [vmem:[%s3715_s16 + $0x14] sm:$0xf] %vm2342_vm9, %v2315_v34  ;;  %v2216_v5 = vadd.f32 %v2145_v3, %v2076_v35  ;;  %v1851_v28 = vpop.f32.mrf.mxu2  ;;  %2620 = vmatmul.msk.bf16.gmra.mxu1 %vm664_vm5, %v4057_v48  ;;  %v4063_v3 = vld [vmem:[#allocation7_spill] sm:$0xff] }
 0x228   : > { %v1921_v2 = vadd.f32 %v1851_v28, %v1787_v31 }
 0x229   : > { %v2252_v18 = vadd.f32 %v3703_v21, %v2216_v5 }
 0x22b   : > { %v2284_v26 = vmax.f32 %v2252_v18, 0.0  ;;  %v2147_v49 = vpop.f32.mrf.mxu0 }
 0x22c   : > { %v2007_v22 = vpop.f32.mrf.mxu3  ;;  %2641 = vmatmul.msk.bf16.gmra.mxu2 %vm664_vm5, %v4059_v7  ;;  %v1722_v55 = vpop.f32.mrf.mxu1 }
 0x22d   : > { %v2316_v43 = vpack.c.bf16 %v2284_v26, %v2284_v26  ;;  %v2077_v14 = vadd.f32 %v2007_v22, %v1921_v2  ;;  %v1789_v0 = vadd.f32 %v1722_v55, %v4063_v3  ;;  %v4064_v26 = vld [vmem:[#allocation40_spill] sm:$0xff] }
 0x22f   : > { %2349 = vst.msk [vmem:[%s3715_s16 + $0x18] sm:$0xf] %vm2342_vm9, %v2316_v43  ;;  %v2217_v16 = vadd.f32 %v2147_v49, %v2077_v14  ;;  %v1854_v45 = vpop.f32.mrf.mxu2 }
 0x230   : > { %v1922_v57 = vadd.f32 %v1854_v45, %v1788_v46  ;;  %v3794_v46 = vld [vmem:[%s2788_s27 + $0xd0] sm:$0xf] }
 0x231   : > { %v2253_v33 = vadd.f32 %v3703_v21, %v2217_v16  ;;  %2658 = vmatmul.msk.bf16.gmra.mxu3 %vm664_vm5, %v4061_v13  ;;  %v4065_v16 = vld [vmem:[#allocation42_spill] sm:$0xff] }
 0x233   : > { %v2285_v1 = vmax.f32 %v2253_v33, 0.0  ;;  %v2150_v56 = vpop.f32.mrf.mxu0 }
 0x234   : > { %v2010_v50 = vpop.f32.mrf.mxu3  ;;  %v1725_v47 = vpop.f32.mrf.mxu1 }
 0x235   : > { %v2317_v58 = vpack.c.bf16 %v2285_v1, %v2285_v1  ;;  %v2078_v8 = vadd.f32 %v2010_v50, %v1922_v57  ;;  %v1790_v49 = vadd.f32 %v1725_v47, %v4064_v26  ;;  %v4066_v1 = vld [vmem:[#allocation5_spill] sm:$0xff]  ;;  %v1950_v50 = vshll.u32 %v3791_v10, 16 }
 0x236   : > { %2676 = vmatmul.msk.bf16.gmra.mxu0 %vm664_vm5, %v4062_v32  ;;  %v1956_v47 = vshll.u32 %v3794_v46, 16 }
 0x237   : > { %2350 = vst.msk [vmem:[%s3715_s16 + $0x1c] sm:$0xf] %vm2342_vm9, %v2317_v58  ;;  %v2218_v59 = vadd.f32 %v2150_v56, %v2078_v8  ;;  %v1856_v23 = vpop.f32.mrf.mxu2  ;;  %2621 = vmatmul.msk.bf16.gmra.mxu1 %vm664_vm5, %v4062_v32  ;;  %v2606_v56 = vrot.slane %v4066_v1, 9  ;;  %v1960_v58 = vshrl.u32 %v3794_v46, 16 }
 0x238   : > { %v1923_v35 = vadd.f32 %v1856_v23, %v1789_v0  ;;  %v1678_v0 = vrot.slane %v3540_v61, 5 }
 0x239   : > { %v2254_v34 = vadd.f32 %v3703_v21, %v2218_v59 }
 0x23b   : > { %v2286_v48 = vmax.f32 %v2254_v34, 0.0  ;;  %v2152_v5 = vpop.f32.mrf.mxu0 }
 0x23c   : > { %v2012_v29 = vpop.f32.mrf.mxu3  ;;  %2642 = vmatmul.msk.bf16.gmra.mxu2 %vm664_vm5, %v3533_v40  ;;  %v1727_v31 = vpop.f32.mrf.mxu1  ;;  %v1675_v40 = vrot.slane %v4065_v16, 5 }
 0x23d   : > { %v2318_v28 = vpack.c.bf16 %v2286_v48, %v2286_v48  ;;  %v2079_v18 = vadd.f32 %v2012_v29, %v1923_v35  ;;  %v1791_v32 = vadd.f32 %v1727_v31, %v3537_v42  ;;  %v1958_v29 = vrot.slane %v1956_v47, 5 }
 0x23e   : > { %v1677_v3 = vrot.slane %v1675_v40, 4  ;;  %v1676_v35 = vsel %vm3118_vm8, %v2606_v56, %v1675_v40 }
 0x23f   : > { %2351 = vst.msk [vmem:[%s3715_s16 + $0x20] sm:$0xf] %vm2342_vm9, %v2318_v28  ;;  %v2219_v2 = vadd.f32 %v2152_v5, %v2079_v18  ;;  %v1859_v22 = vpop.f32.mrf.mxu2  ;;  %v1952_v5 = vrot.slane %v1950_v50, 5  ;;  %v1962_v28 = vrot.slane %v1960_v58, 4  ;;  %v2105_v58 = vrot.slane %v3794_v46, 5 }
 0x240   : > { %v1924_v55 = vadd.f32 %v1859_v22, %v1790_v49  ;;  %v1679_v31 = vsel %vm3118_vm8, %v1677_v3, %v1678_v0  ;;  %v1682_v22 = vunpack.c.l.b16 %v1676_v35  ;;  %v2662_v3 = vrot.slane %v3791_v10, 9 }
 0x241   : > { %v2255_v7 = vadd.f32 %v3703_v21, %v2219_v2  ;;  %2659 = vmatmul.msk.bf16.gmra.mxu3 %vm664_vm5, %v3127_v62  ;;  %v1947_v62 = vshrl.u32 %v3791_v10, 16 }
 0x242   : > { %v2106_v10 = vsel %vm3118_vm8, %v2662_v3, %v2105_v58 }
 0x243   : > { %v2287_v43 = vmax.f32 %v2255_v7, 0.0  ;;  %v2155_v14 = vpop.f32.mrf.mxu0  ;;  %v1949_v48 = vrot.slane %v1947_v62, 4  ;;  %v1683_v7 = vunpack.c.l.b16 %v1679_v31 }
 0x244   : > { %v2015_v45 = vpop.f32.mrf.mxu3  ;;  %v1730_v33 = vpop.f32.mrf.mxu1 }
 0x245   : > { %v2319_v13 = vpack.c.bf16 %v2287_v43, %v2287_v43  ;;  %v2080_v57 = vadd.f32 %v2015_v45, %v1924_v55  ;;  %v1953_v55 = vor.u32 %v1952_v5, %v1949_v48  ;;  %v1963_v43 = vor.u32 %v1962_v28, %v1958_v29  ;;  %v2700_v48 = vld [vmem:[%s2788_s27 + $0xcc] sm:$0xff] }
 0x246   : > { %2677 = vmatmul.msk.bf16.gmra.mxu0 %vm664_vm5, %v3556_v52  ;;  %v1792_v40 = vadd.f32 %v1730_v33, %v3554_v17 }
 0x247   : > { %2352 = vst.msk [vmem:[%s3715_s16 + $0x24] sm:$0xf] %vm2342_vm9, %v2319_v13  ;;  %v2220_v8 = vadd.f32 %v2155_v14, %v2080_v57  ;;  %v1861_v59 = vpop.f32.mrf.mxu2  ;;  %2622 = vmatmul.msk.bf16.gmra.mxu1 %vm664_vm5, %v3556_v52  ;;  %v225_v52 = vld [vmem:[%s2788_s27 + $0xd4] sm:$0x1]  ;;  %v1684_v57 = vpack.c.b16 %v1683_v7, %v1682_v22  ;;  %v1954_v1 = vrot.slane %v1953_v55, 4  ;;  %v1964_v56 = vrot.slane %v1963_v43, 4 }
 0x248   : > { %v1925_v34 = vadd.f32 %v1861_v59, %v1791_v32  ;;  %v1966_v14 = vshll.u32 %v225_v52, 16  ;;  %v2108_v35 = vrot.slane %v225_v52, 5 }
 0x249   : > { %v2256_v23 = vadd.f32 %v3703_v21, %v2220_v8 }
 0x24a   : > { %v1968_v62 = vrot.slane %v1966_v14, 5 }
 0x24b   : > { %v2288_v18 = vmax.f32 %v2256_v23, 0.0  ;;  %v2157_v42 = vpop.f32.mrf.mxu0 }
 0x24c   : > { %v2017_v2 = vpop.f32.mrf.mxu3  ;;  %2643 = vmatmul.msk.bf16.gmra.mxu2 %vm664_vm5, %v3565_v51  ;;  %v1732_v61 = vpop.f32.mrf.mxu1  ;;  %v1969_v59 = vsel %vm2815_vm4, %v1964_v56, %v1968_v62 }
 0x24d   : > { %v2320_v26 = vpack.c.bf16 %v2288_v18, %v2288_v18  ;;  %v2081_v49 = vadd.f32 %v2017_v2, %v1925_v34  ;;  %v1793_v46 = vadd.f32 %v1732_v61, %v3568_v25  ;;  %v2107_v34 = vrot.slane %v2105_v58, 4 }
 0x24e   : > { %v1973_v39 = vunpack.c.l.b16 %v1969_v59 }
 0x24f   : > { %2353 = vst.msk [vmem:[%s3715_s16 + $0x28] sm:$0xf] %vm2342_vm9, %v2320_v26  ;;  %v2221_v16 = vadd.f32 %v2157_v42, %v2081_v49  ;;  %v1864_v45 = vpop.f32.mrf.mxu2  ;;  %v2109_v25 = vsel %vm3118_vm8, %v2107_v34, %v2108_v35  ;;  %v2112_v49 = vunpack.c.l.b16 %v2106_v10 }
 0x250   : > { %v1926_v51 = vadd.f32 %v1864_v45, %v1792_v40  ;;  %v2113_v22 = vunpack.c.l.b16 %v2109_v25 }
 0x251   : > { %v2257_v13 = vadd.f32 %v3703_v21, %v2221_v16  ;;  %2660 = vmatmul.msk.bf16.gmra.mxu3 %vm664_vm5, %v3572_v11  ;;  %v1959_v11 = vsel %vm2815_vm4, %v1954_v1, %v1958_v29 }
 0x252   : > { %v1972_v28 = vunpack.c.l.b16 %v1959_v11  ;;  %v2114_v16 = vpack.c.b16 %v2113_v22, %v2112_v49 }
 0x253   : > { %v2289_v50 = vmax.f32 %v2257_v13, 0.0  ;;  %v2160_v47 = vpop.f32.mrf.mxu0 }
 0x254   : > { %v2020_v8 = vpop.f32.mrf.mxu3  ;;  %v1735_v32 = vpop.f32.mrf.mxu1  ;;  %v1974_v26 = vpack.c.b16 %v1973_v39, %v1972_v28 }
 0x255   : > { %v2321_v17 = vpack.c.bf16 %v2289_v50, %v2289_v50  ;;  %v2082_v33 = vadd.f32 %v2020_v8, %v1926_v51  ;;  %v1794_v55 = vadd.f32 %v1735_v32, %v3579_v27 }
 0x256   : > { %2678 = vmatmul.msk.bf16.gmra.mxu0 %vm664_vm5, %v1684_v57 }
 0x257   : > { %2354 = vst.msk [vmem:[%s3715_s16 + $0x2c] sm:$0xf] %vm2342_vm9, %v2321_v17  ;;  %v2222_v0 = vadd.f32 %v2160_v47, %v2082_v33  ;;  %v1866_v23 = vpop.f32.mrf.mxu2  ;;  %2623 = vmatmul.msk.bf16.gmra.mxu1 %vm664_vm5, %v1684_v57 }
 0x258   : > { %v1927_v29 = vadd.f32 %v1866_v23, %v1793_v46 }
 0x259   : > { %v2258_v5 = vadd.f32 %v3703_v21, %v2222_v0 }
 0x25b   : > { %v2290_v18 = vmax.f32 %v2258_v5, 0.0  ;;  %v2162_v42 = vpop.f32.mrf.mxu0 }
 0x25c   : > { %v2022_v31 = vpop.f32.mrf.mxu3  ;;  %2644 = vmatmul.msk.bf16.gmra.mxu2 %vm664_vm5, %v2700_v48  ;;  %v1737_v2 = vpop.f32.mrf.mxu1 }
 0x25d   : > { %v2322_v52 = vpack.c.bf16 %v2290_v18, %v2290_v18  ;;  %v2083_v61 = vadd.f32 %v2022_v31, %v1927_v29  ;;  %v1795_v27 = vadd.f32 %v1737_v2, %v3584_v41 }
 0x25f   : > { %2355 = vst.msk [vmem:[%s3715_s16 + $0x30] sm:$0xf] %vm2342_vm9, %v2322_v52  ;;  %v2223_v7 = vadd.f32 %v2162_v42, %v2083_v61  ;;  %v1869_v43 = vpop.f32.mrf.mxu2 }
 0x260   : > { %v1928_v30 = vadd.f32 %v1869_v43, %v1794_v55 }
 0x261   : > { %v2259_v14 = vadd.f32 %v3703_v21, %v2223_v7  ;;  %2661 = vmatmul.msk.bf16.gmra.mxu3 %vm664_vm5, %v1974_v26 }
 0x263   : > { %v2291_v40 = vmax.f32 %v2259_v14, 0.0  ;;  %v2165_v45 = vpop.f32.mrf.mxu0 }
 0x264   : > { %v2025_v13 = vpop.f32.mrf.mxu3  ;;  %v1740_v51 = vpop.f32.mrf.mxu1 }
 0x265   : > { %v2323_v57 = vpack.c.bf16 %v2291_v40, %v2291_v40  ;;  %v2084_v1 = vadd.f32 %v2025_v13, %v1928_v30  ;;  %v1796_v3 = vadd.f32 %v1740_v51, %v3593_v12 }
 0x266   : > { %2679 = vmatmul.msk.bf16.gmra.mxu0 %vm664_vm5, %v2114_v16 }
 0x267   : > { %2356 = vst.msk [vmem:[%s3715_s16 + $0x34] sm:$0xf] %vm2342_vm9, %v2323_v57  ;;  %v2224_v56 = vadd.f32 %v2165_v45, %v2084_v1  ;;  %v1871_v62 = vpop.f32.mrf.mxu2 }
 0x268   : > { %v1929_v47 = vadd.f32 %v1871_v62, %v1795_v27 }
 0x269   : > { %v2260_v50 = vadd.f32 %v3703_v21, %v2224_v56 }
 0x26b   : > { %v2292_v58 = vmax.f32 %v2260_v50, 0.0  ;;  %v2167_v8 = vpop.f32.mrf.mxu0 }
 0x26c   : > { %v2027_v32 = vpop.f32.mrf.mxu3  ;;  %v1742_v17 = vpop.f32.mrf.mxu1 }
 0x26d   : > { %v2324_v33 = vpack.c.bf16 %v2292_v58, %v2292_v58  ;;  %v2085_v11 = vadd.f32 %v2027_v32, %v1929_v47  ;;  %v1797_v39 = vadd.f32 %v1742_v17, %v3598_v36 }
 0x26f   : > { %2357 = vst.msk [vmem:[%s3715_s16 + $0x38] sm:$0xf] %vm2342_vm9, %v2324_v33  ;;  %v2225_v59 = vadd.f32 %v2167_v8, %v2085_v11  ;;  %v1874_v0 = vpop.f32.mrf.mxu2 }
 0x270   : > { %v1930_v41 = vadd.f32 %v1874_v0, %v1796_v3 }
 0x271   : > { %v2261_v46 = vadd.f32 %v3703_v21, %v2225_v59 }
 0x273   : > { %v2293_v23 = vmax.f32 %v2261_v46, 0.0  ;;  %v2170_v34 = vpop.f32.mrf.mxu0 }
 0x274   : > { %v2030_v35 = vpop.f32.mrf.mxu3  ;;  %v1745_v48 = vpop.f32.mrf.mxu1 }
 0x275   : > { %v2325_v5 = vpack.c.bf16 %v2293_v23, %v2293_v23  ;;  %v2086_v29 = vadd.f32 %v2030_v35, %v1930_v41  ;;  %v1798_v49 = vadd.f32 %v1745_v48, %v3607_v54 }
 0x277   : > { %2358 = vst.msk [vmem:[%s3715_s16 + $0x3c] sm:$0xf] %vm2342_vm9, %v2325_v5  ;;  %v2226_v28 = vadd.f32 %v2170_v34, %v2086_v29  ;;  %v1876_v18 = vpop.f32.mrf.mxu2 }
 0x278   : > { %v1931_v12 = vadd.f32 %v1876_v18, %v1797_v39 }
 0x279   : > { %v2262_v42 = vadd.f32 %v3703_v21, %v2226_v28 }
 0x27b   : > { %v2294_v10 = vmax.f32 %v2262_v42, 0.0  ;;  %v2172_v25 = vpop.f32.mrf.mxu0 }
 0x27c   : > { %v2032_v31 = vpop.f32.mrf.mxu3  ;;  %v1747_v2 = vpop.f32.mrf.mxu1 }
 0x27d   : > { %v2326_v52 = vpack.c.bf16 %v2294_v10, %v2294_v10  ;;  %v2087_v61 = vadd.f32 %v2032_v31, %v1931_v12  ;;  %v1799_v13 = vadd.f32 %v1747_v2, %v3612_v63 }
 0x27f   : > { %2359 = vst.msk [vmem:[%s3715_s16 + $0x40] sm:$0xf] %vm2342_vm9, %v2326_v52  ;;  %v2227_v26 = vadd.f32 %v2172_v25, %v2087_v61  ;;  %v1879_v22 = vpop.f32.mrf.mxu2 }
 0x280   : > { %v1932_v36 = vadd.f32 %v1879_v22, %v1798_v49 }
 0x281   : > { %v2263_v7 = vadd.f32 %v3703_v21, %v2227_v26 }
 0x283   : > { %v2295_v55 = vmax.f32 %v2263_v7, 0.0  ;;  %v2175_v43 = vpop.f32.mrf.mxu0 }
 0x284   : > { %v2035_v14 = vpop.f32.mrf.mxu3  ;;  %v1750_v30 = vpop.f32.mrf.mxu1 }
 0x285   : > { %v2327_v16 = vpack.c.bf16 %v2295_v55, %v2295_v55  ;;  %v2088_v40 = vadd.f32 %v2035_v14, %v1932_v36  ;;  %v1800_v8 = vadd.f32 %v1750_v30, %v3621_v4 }
 0x287   : > { %2360 = vst.msk [vmem:[%s3715_s16 + $0x44] sm:$0xf] %vm2342_vm9, %v2327_v16  ;;  %v2228_v45 = vadd.f32 %v2175_v43, %v2088_v40  ;;  %v1881_v51 = vpop.f32.mrf.mxu2 }
 0x288   : > { %v1933_v54 = vadd.f32 %v1881_v51, %v1799_v13 }
 0x289   : > { %v2264_v57 = vadd.f32 %v3703_v21, %v2228_v45 }
 0x28b   : > { %v2296_v1 = vmax.f32 %v2264_v57, 0.0  ;;  %v2177_v56 = vpop.f32.mrf.mxu0 }
 0x28c   : > { %v2037_v27 = vpop.f32.mrf.mxu3  ;;  %v1752_v62 = vpop.f32.mrf.mxu1 }
 0x28d   : > { %v2328_v50 = vpack.c.bf16 %v2296_v1, %v2296_v1  ;;  %v2089_v47 = vadd.f32 %v2037_v27, %v1933_v54  ;;  %v1801_v23 = vadd.f32 %v1752_v62, %v3626_v6 }
 0x28f   : > { %2361 = vst.msk [vmem:[%s3715_s16 + $0x48] sm:$0xf] %vm2342_vm9, %v2328_v50  ;;  %v2229_v58 = vadd.f32 %v2177_v56, %v2089_v47  ;;  %v1884_v32 = vpop.f32.mrf.mxu2 }
 0x290   : > { %v1934_v63 = vadd.f32 %v1884_v32, %v1800_v8 }
 0x291   : > { %v2265_v17 = vadd.f32 %v3703_v21, %v2229_v58 }
 0x293   : > { %v2297_v33 = vmax.f32 %v2265_v17, 0.0  ;;  %v2180_v11 = vpop.f32.mrf.mxu0 }
 0x294   : > { %v2040_v59 = vpop.f32.mrf.mxu3  ;;  %v1755_v3 = vpop.f32.mrf.mxu1 }
 0x295   : > { %v2329_v0 = vpack.c.bf16 %v2297_v33, %v2297_v33  ;;  %v2090_v46 = vadd.f32 %v2040_v59, %v1934_v63  ;;  %v1802_v12 = vadd.f32 %v1755_v3, %v3635_v53 }
 0x297   : > { %2362 = vst.msk [vmem:[%s3715_s16 + $0x4c] sm:$0xf] %vm2342_vm9, %v2329_v0  ;;  %v2230_v41 = vadd.f32 %v2180_v11, %v2090_v46  ;;  %v1886_v34 = vpop.f32.mrf.mxu2 }
 0x298   : > { %v1935_v4 = vadd.f32 %v1886_v34, %v1801_v23 }
 0x299   : > { %v2266_v35 = vadd.f32 %v3703_v21, %v2230_v41 }
 0x29b   : > { %v2298_v48 = vmax.f32 %v2266_v35, 0.0  ;;  %v2182_v5 = vpop.f32.mrf.mxu0 }
 0x29c   : > { %v2042_v29 = vpop.f32.mrf.mxu3  ;;  %v1757_v28 = vpop.f32.mrf.mxu1 }
 0x29d   : > { %v2330_v39 = vpack.c.bf16 %v2298_v48, %v2298_v48  ;;  %v2091_v18 = vadd.f32 %v2042_v29, %v1935_v4  ;;  %v1803_v7 = vadd.f32 %v1757_v28, %v3640_v37 }
 0x29f   : > { %2363 = vst.msk [vmem:[%s3715_s16 + $0x50] sm:$0xf] %vm2342_vm9, %v2330_v39  ;;  %v2231_v42 = vadd.f32 %v2182_v5, %v2091_v18  ;;  %v1889_v10 = vpop.f32.mrf.mxu2 }
 0x2a0   : > { %v1936_v6 = vadd.f32 %v1889_v10, %v1802_v12 }
 0x2a1   : > { %v2267_v25 = vadd.f32 %v3703_v21, %v2231_v42 }
 0x2a3   : > { %v2299_v31 = vmax.f32 %v2267_v25, 0.0  ;;  %v2185_v2 = vpop.f32.mrf.mxu0 }
 0x2a4   : > { %v2045_v52 = vpop.f32.mrf.mxu3  ;;  %v1760_v61 = vpop.f32.mrf.mxu1 }
 0x2a5   : > { %v2331_v26 = vpack.c.bf16 %v2299_v31, %v2299_v31  ;;  %v2092_v49 = vadd.f32 %v2045_v52, %v1936_v6  ;;  %v1804_v51 = vadd.f32 %v1760_v61, %v3649_v20 }
 0x2a7   : > { %2364 = vst.msk [vmem:[%s3715_s16 + $0x54] sm:$0xf] %vm2342_vm9, %v2331_v26  ;;  %v2232_v22 = vadd.f32 %v2185_v2, %v2092_v49  ;;  %v1891_v36 = vpop.f32.mrf.mxu2 }
 0x2a8   : > { %v1937_v53 = vadd.f32 %v1891_v36, %v1803_v7 }
 0x2a9   : > { %v2268_v55 = vadd.f32 %v3703_v21, %v2232_v22 }
 0x2ab   : > { %v2300_v43 = vmax.f32 %v2268_v55, 0.0  ;;  %v2187_v14 = vpop.f32.mrf.mxu0 }
 0x2ac   : > { %v2047_v30 = vpop.f32.mrf.mxu3  ;;  %v1762_v16 = vpop.f32.mrf.mxu1 }
 0x2ad   : > { %v2332_v40 = vpack.c.bf16 %v2300_v43, %v2300_v43  ;;  %v2093_v45 = vadd.f32 %v2047_v30, %v1937_v53  ;;  %v1805_v8 = vadd.f32 %v1762_v16, %v3654_v15 }
 0x2af   : > { %2365 = vst.msk [vmem:[%s3715_s16 + $0x58] sm:$0xf] %vm2342_vm9, %v2332_v40  ;;  %v2233_v13 = vadd.f32 %v2187_v14, %v2093_v45  ;;  %v1894_v57 = vpop.f32.mrf.mxu2 }
 0x2b0   : > { %v1938_v37 = vadd.f32 %v1894_v57, %v1804_v51 }
 0x2b1   : > { %v2269_v54 = vadd.f32 %v3703_v21, %v2233_v13 }
 0x2b3   : > { %v2301_v1 = vmax.f32 %v2269_v54, 0.0  ;;  %v2190_v56 = vpop.f32.mrf.mxu0 }
 0x2b4   : > { %v2050_v27 = vpop.f32.mrf.mxu3  ;;  %v1765_v62 = vpop.f32.mrf.mxu1 }
 0x2b5   : > { %v2333_v50 = vpack.c.bf16 %v2301_v1, %v2301_v1  ;;  %v2094_v47 = vadd.f32 %v2050_v27, %v1938_v37  ;;  %v1806_v41 = vadd.f32 %v1765_v62, %v3663_v19 }
 0x2b7   : > { %2366 = vst.msk [vmem:[%s3715_s16 + $0x5c] sm:$0xf] %vm2342_vm9, %v2333_v50  ;;  %v2234_v58 = vadd.f32 %v2190_v56, %v2094_v47  ;;  %v1896_v32 = vpop.f32.mrf.mxu2 }
 0x2b8   : > { %v1939_v20 = vadd.f32 %v1896_v32, %v1805_v8 }
 0x2b9   : > { %v2270_v17 = vadd.f32 %v3703_v21, %v2234_v58 }
 0x2bb   : > { %v2302_v63 = vmax.f32 %v2270_v17, 0.0  ;;  %v2192_v33 = vpop.f32.mrf.mxu0 }
 0x2bc   : > { %v2052_v11 = vpop.f32.mrf.mxu3  ;;  %v1767_v59 = vpop.f32.mrf.mxu1 }
 0x2bd   : > { %v2334_v3 = vpack.c.bf16 %v2302_v63, %v2302_v63  ;;  %v2095_v0 = vadd.f32 %v2052_v11, %v1939_v20  ;;  %v1807_v18 = vadd.f32 %v1767_v59, %v3668_v60 }
 0x2bf   : > { %2367 = vst.msk [vmem:[%s3715_s16 + $0x60] sm:$0xf] %vm2342_vm9, %v2334_v3  ;;  %v2235_v46 = vadd.f32 %v2192_v33, %v2095_v0  ;;  %v1899_v23 = vpop.f32.mrf.mxu2 }
 0x2c0   : > { %v1940_v15 = vadd.f32 %v1899_v23, %v1806_v41 }
 0x2c1   : > { %v2271_v34 = vadd.f32 %v3703_v21, %v2235_v46 }
 0x2c3   : > { %v2303_v35 = vmax.f32 %v2271_v34, 0.0  ;;  %v2195_v4 = vpop.f32.mrf.mxu0 }
 0x2c4   : > { %v2055_v48 = vpop.f32.mrf.mxu3  ;;  %v1770_v28 = vpop.f32.mrf.mxu1 }
 0x2c5   : > { %v2335_v5 = vpack.c.bf16 %v2303_v35, %v2303_v35  ;;  %v2096_v29 = vadd.f32 %v2055_v48, %v1940_v15  ;;  %v1808_v61 = vadd.f32 %v1770_v28, %v3677_v24 }
 0x2c7   : > { %2368 = vst.msk [vmem:[%s3715_s16 + $0x64] sm:$0xf] %vm2342_vm9, %v2335_v5  ;;  %v2236_v39 = vadd.f32 %v2195_v4, %v2096_v29  ;;  %v1901_v42 = vpop.f32.mrf.mxu2 }
 0x2c8   : > { %v1941_v19 = vadd.f32 %v1901_v42, %v1807_v18 }
 0x2c9   : > { %v2272_v12 = vadd.f32 %v3703_v21, %v2236_v39 }
 0x2cb   : > { %v2304_v10 = vmax.f32 %v2272_v12, 0.0  ;;  %v2197_v25 = vpop.f32.mrf.mxu0 }
 0x2cc   : > { %v2057_v6 = vpop.f32.mrf.mxu3  ;;  %v1772_v49 = vpop.f32.mrf.mxu1 }
 0x2cd   : > { %v2336_v31 = vpack.c.bf16 %v2304_v10, %v2304_v10  ;;  %v2097_v2 = vadd.f32 %v2057_v6, %v1941_v19  ;;  %v1809_v30 = vadd.f32 %v1772_v49, %v3682_v44 }
 0x2cf   : > { %2369 = vst.msk [vmem:[%s3715_s16 + $0x68] sm:$0xf] %vm2342_vm9, %v2336_v31  ;;  %v2237_v52 = vadd.f32 %v2197_v25, %v2097_v2  ;;  %v1904_v26 = vpop.f32.mrf.mxu2 }
 0x2d0   : > { %v1942_v60 = vadd.f32 %v1904_v26, %v1808_v61 }
 0x2d1   : > { %v2273_v22 = vadd.f32 %v3703_v21, %v2237_v52 }
 0x2d3   : > { %v2305_v7 = vmax.f32 %v2273_v22, 0.0  ;;  %v2200_v36 = vpop.f32.mrf.mxu0 }
 0x2d4   : > { %v2060_v55 = vpop.f32.mrf.mxu3  ;;  %v1775_v45 = vpop.f32.mrf.mxu1 }
 0x2d5   : > { %v2337_v53 = vpack.c.bf16 %v2305_v7, %v2305_v7  ;;  %v2098_v43 = vadd.f32 %v2060_v55, %v1942_v60  ;;  %v1810_v56 = vadd.f32 %v1775_v45, %v3691_v9 }
 0x2d7   : > { %2370 = vst.msk [vmem:[%s3715_s16 + $0x6c] sm:$0xf] %vm2342_vm9, %v2337_v53  ;;  %v2238_v14 = vadd.f32 %v2200_v36, %v2098_v43  ;;  %v1906_v16 = vpop.f32.mrf.mxu2 }
 0x2d8   : > { %v1943_v24 = vadd.f32 %v1906_v16, %v1809_v30 }
 0x2d9   : > { %v2274_v40 = vadd.f32 %v3703_v21, %v2238_v14 }
 0x2db   : > { %v2306_v13 = vmax.f32 %v2274_v40, 0.0  ;;  %v2202_v51 = vpop.f32.mrf.mxu0 }
 0x2dc   : > { %v2062_v57 = vpop.f32.mrf.mxu3  ;;  %v1777_v47 = vpop.f32.mrf.mxu1 }
 0x2dd   : > { %v2338_v54 = vpack.c.bf16 %v2306_v13, %v2306_v13  ;;  %v2099_v37 = vadd.f32 %v2062_v57, %v1943_v24  ;;  %v1811_v63 = vadd.f32 %v1777_v47, %v3696_v38 }
 0x2df   : > { %2371 = vst.msk [vmem:[%s3715_s16 + $0x70] sm:$0xf] %vm2342_vm9, %v2338_v54  ;;  %v2239_v1 = vadd.f32 %v2202_v51, %v2099_v37  ;;  %v1909_v27 = vpop.f32.mrf.mxu2 }
 0x2e0   : > { %v1944_v44 = vadd.f32 %v1909_v27, %v1810_v56 }
 0x2e1   : > { %v2275_v62 = vadd.f32 %v3703_v21, %v2239_v1 }
 0x2e3   : > { %v2307_v50 = vmax.f32 %v2275_v62, 0.0  ;;  %v2205_v58 = vpop.f32.mrf.mxu0 }
 0x2e4   : > { %v2065_v8 = vpop.f32.mrf.mxu3 }
 0x2e5   : > { %v2339_v32 = vpack.c.bf16 %v2307_v50, %v2307_v50  ;;  %v2100_v17 = vadd.f32 %v2065_v8, %v1944_v44 }
 0x2e7   : > { %2372 = vst.msk [vmem:[%s3715_s16 + $0x74] sm:$0xf] %vm2342_vm9, %v2339_v32  ;;  %v2240_v20 = vadd.f32 %v2205_v58, %v2100_v17  ;;  %v1911_v33 = vpop.f32.mrf.mxu2 }
 0x2e8   : > { %v1945_v11 = vadd.f32 %v1911_v33, %v1811_v63 }
 0x2e9   : > { %v2276_v9 = vadd.f32 %v3703_v21, %v2240_v20 }
 0x2eb   : > { %v2308_v59 = vmax.f32 %v2276_v9, 0.0  ;;  %v2207_v41 = vpop.f32.mrf.mxu0 }
 0x2ec   : > { %v2067_v3 = vpop.f32.mrf.mxu3 }
 0x2ed   : > { %v2340_v0 = vpack.c.bf16 %v2308_v59, %v2308_v59  ;;  %v2101_v46 = vadd.f32 %v2067_v3, %v1945_v11 }
 0x2ef   : > { %2373 = vst.msk [vmem:[%s3715_s16 + $0x78] sm:$0xf] %vm2342_vm9, %v2340_v0  ;;  %v2241_v23 = vadd.f32 %v2207_v41, %v2101_v46 }
 0x2f1   : > { %v2277_v34 = vadd.f32 %v3703_v21, %v2241_v23 }
 0x2f3   : > { %v2309_v15 = vmax.f32 %v2277_v34, 0.0 }
 0x2f5   : > { %v2341_v35 = vpack.c.bf16 %v2309_v15, %v2309_v15 }
 0x2f7   : > { %2374 = vst.msk [vmem:[%s3715_s16 + $0x7c] sm:$0xf] %vm2342_vm9, %v2341_v35 }
 0x2f8 PF: > { %s13_s12 = sadd.s32 1, %s2729_s12  }
 0x2f9   : > { %p10_p4 = scmp.ge.s32.totalorder %s13_s12, 4  }
 0x2fb   :  { %12 = sbr.rel (!%p10_p4) target bundleno = 1 (0x1), region = 70 }

// kernel: _lambda_.3
= control target key start
LH: loop header
LB: loop body
LE: loop exit
PB: predicated region body
PF: predicated region fallthrough
CT: control target
= control target key end

     0   :  { %10 = vsyncpa [#allocation3], 0  ;;  %s4542_s0 = inlined_call_operand.vmem [shape: bf16[2,18,18,32], index: 0, kind: input, shape index: {}]   ;;  %s4543_s1 = inlined_call_operand.vmem [shape: bf16[9,32,32], index: 1, kind: input, shape index: {}]   ;;  %s4544_s2 = inlined_call_operand.vmem [shape: f32[1,32], index: 2, kind: input, shape index: {}]   ;;  %s4545_s3 = inlined_call_operand.vmem [shape: f32[32,32], index: 3, kind: input, shape index: {}]   ;;  %s4546_s4 = inlined_call_operand.vmem [shape: f32[1,32], index: 4, kind: input, shape index: {}]   ;;  %s4547_s5 = inlined_call_operand.hbm [shape: f32[2,1,32], index: 5, kind: output, shape index: {}]  }
   0x1   :  { %12 = vsyncpa [#allocation3 + $0x1], 0  ;;  %s3167_s18 = smov 0   ;;  %s3169_s19 = smov 0  }
   0x2   :  { %s3171_s20 = smov 0   ;;  %s3173_s21 = smov 0  }
   0x3 LB: > { %s3188_s22 = sadd.s32 4294967295, %s3135_s21   ;;  %s2634_s23 = sadd.s32 4294967294, %s3135_s21   ;;  %s3135_s21 = sphi %s3173_s21, %s4712_s21   ;;  %s3131_s20 = sphi %s3171_s20, %s4711_s20   ;;  %s3127_s19 = sphi %s3169_s19, %s4710_s19   ;;  %s3123_s18 = sphi %s3167_s18, %s4709_s18  }
   0x4   : > { %s3192_s24 = sadd.s32 1, %s3135_s21   ;;  %s135_s25 = sadd.s32 1, %s3131_s20 }
   0x5   : > { %s132_s26 = ssub.s32 %s3135_s21, %s3192_s24  ;;  %p145_p0 = scmp.ne.s32.totalorder %s3131_s20, %s3127_s19 }
   0x6   : > { %p133_p1 = scmp.eq.s32.totalorder %s132_s26, 0  ;;  %p146_p2 = scmp.eq.s32.totalorder %s3188_s22, 1 }
   0x7   : > { %p151_p3 = scmp.ne.s32.totalorder %s3127_s19, %s3123_s18  ;;  %p152_p4 = scmp.eq.s32.totalorder %s2634_s23, 1 }
   0x8   : > { %s3203_s27 = scalar_select %p133_p1, %s3131_s20, %s135_s25  }
   0x9   : > { %p3205_p5 = por %p146_p2, %p145_p0  ;;  %p3209_p6 = por %p152_p4, %p151_p3 }
   0xa   : > { %p2637_p7 = scmp.ge.s32.totalorder %s3135_s21, 1  ;;  %p190_p8 = scmp.lt.s32.totalorder %s3135_s21, 3 }
   0xc   : > { %p191_p9 = pnand %p2637_p7, %p190_p8 }
   0xe   : > { %194 = sbr.rel (%p191_p9) target bundleno = 927 (0x39f), region = 40 }
  0x13   : > { %v3001_v0 = vld [vmem:[%s4543_s1 + $0x18] sm:$0xff]  ;;  %p217_p10 = scmp.lt.s32.totalorder %s3188_s22, 1  ;;  %v3000_v1 = vld [vmem:[%s4543_s1 + $0x10] sm:$0xff]  ;;  %v3003_v2 = vld [vmem:[%s4543_s1 + $0x28] sm:$0xff]  ;;  %vm281_vm0 = vsmask.f32 3328  ;;  %s2575_s14 = scalar_lea.hbm %s4547_s5, %s3188_s22 }
  0x14   : > { %3016 = vmatpush.bf16.msra.mxu1 %v3001_v0  ;;  %3017 = vmatpush.bf16.msra.mxu2 %v3001_v0  ;;  %v3005_v3 = vld [vmem:[%s4543_s1 + $0x38] sm:$0xff]  ;;  %v2999_v4 = vld [vmem:[%s4543_s1 + $0x8] sm:$0xff]  ;;  %vm282_vm1 = vsmask.f32 7440  ;;  %v2998_v9 = vld [vmem:[%s4543_s1] sm:$0xff]  ;;  %vm733_vm2 = vcmask 261120  }
  0x15   : > { %s218_s9 = scalar_select %p217_p10, %s3188_s22, 1  ;;  %3018 = vmatpush.bf16.msra.mxu3 %v3001_v0  ;;  %788 = vmatpush.bf16.msra.mxu0 %v3001_v0  ;;  %v3007_v5 = vld [vmem:[%s4543_s1 + $0x48] sm:$0xff]  ;;  %vm3275_vm3 = vmor %vm281_vm0, %vm282_vm1  ;;  %vm1116_vm4 = vcmask 1042432   ;;  %vm1117_vm5 = vcmask 1046532   ;;  %vm2564_vm7 = vcmask 253952  }
  0x16   : > { %vm3597_vm6 = vmor %vm1116_vm4, %vm1117_vm5  ;;  %s215_s11 = sand.u32 1, %s3127_s19   ;;  %s2579_s17 = sshll.u32 %s2575_s14, 4  ;;  %s2580_s17 = int_to_ptr.hbm [resolvable:$true] %s2579_s17 }
  0x17   : > { %s3022_s10 = smul.u32 216, %s218_s9  ;;  %s216_s15 = scalar_lea.vmem [#allocation2], %s215_s11 }
  0x18   : > { %3019 = vmatpush.bf16.msra.mxu1 %v3000_v1  ;;  %3020 = vmatpush.bf16.msra.mxu2 %v3000_v1  ;;  %s2577_s16 = sshll.u32 %s216_s15, 4  ;;  %s2567_s23 = scalar_lea.sflag [#allocation3], %s215_s11  ;;  %s2578_s16 = int_to_ptr.vmem [resolvable:$true] %s2577_s16 }
  0x19   : > { %s3238_s30 = scalar_lea.vmem %s4542_s0, %s3022_s10  ;;  %3021 = vmatpush.bf16.msra.mxu3 %v3000_v1  ;;  %789 = vmatpush.bf16.msra.mxu0 %v3000_v1  ;;  %s3087_s25 = sshra.s32 %s2580_s17, 4  ;;  %s3088_s25 = int_to_ptr.hbm [resolvable:$true] %s3087_s25 }
  0x1a   : > { %v3241_v6 = vld [vmem:[%s3238_s30 + $0x3c] sm:$0xf]  ;;  %v3244_v7 = vld [vmem:[%s3238_s30 + $0x40] sm:$0xf]  ;;  %v3247_v8 = vld [vmem:[%s3238_s30 + $0x44] sm:$0x1]  ;;  %p3094_p0 = scmp.lt.s32.totalorder %s3088_s25, %s4547_s5 }
  0x1b   : > { %v405_v10 = vshrl.u32 %v3241_v6, 16  ;;  %v408_v11 = vshll.u32 %v3241_v6, 16  ;;  %v414_v12 = vshll.u32 %v3244_v7, 16  ;;  %v418_v13 = vshrl.u32 %v3244_v7, 16  ;;  %v3257_v14 = vld [vmem:[%s3238_s30 + $0x48] sm:$0xf] }
  0x1c   : > { %1350 = vmatpush.bf16.msrb.mxu2 %v3003_v2  ;;  %v424_v15 = vshll.u32 %v3247_v8, 16  ;;  %v3261_v16 = vld [vmem:[%s3238_s30 + $0x4c] sm:$0xf]  ;;  %v3264_v17 = vld [vmem:[%s3238_s30 + $0x50] sm:$0x1]  ;;  %v429_v18 = vshrl.u32 %v3257_v14, 16  ;;  %1017 = vmatpush.bf16.msrb.mxu1 %v2999_v4 }
  0x1d   : > { %1496 = vmatpush.bf16.msrb.mxu3 %v3005_v3  ;;  %1664 = vmatpush.bf16.msrb.mxu0 %v3007_v5  ;;  %v407_v19 = vrot.slane %v405_v10, 4  ;;  %v410_v20 = vrot.slane %v408_v11, 5  ;;  %v416_v21 = vrot.slane %v414_v12, 5  ;;  %v420_v22 = vrot.slane %v418_v13, 4  ;;  %v256_v23 = vld [vmem:[%s3238_s30 + $0x84] sm:$0xf] }
  0x1e   : > { %v426_v24 = vrot.slane %v424_v15, 5  ;;  %v431_v25 = vrot.slane %v429_v18, 4  ;;  %v432_v26 = vshll.u32 %v3257_v14, 16  ;;  %v438_v27 = vshll.u32 %v3261_v16, 16  ;;  %v257_v32 = vld [vmem:[%s3238_s30 + $0x88] sm:$0xf] }
  0x1f   : > { %v411_v28 = vor.u32 %v410_v20, %v407_v19  ;;  %v421_v29 = vor.u32 %v420_v22, %v416_v21  ;;  %v442_v30 = vshrl.u32 %v3261_v16, 16  ;;  %v448_v31 = vshll.u32 %v3264_v17, 16  ;;  %v258_v43 = vld [vmem:[%s3238_s30 + $0x8c] sm:$0x1]  ;;  %v3285_v59 = vld [vmem:[%s3238_s30] sm:$0xf] }
  0x20   : > { %v434_v34 = vrot.slane %v432_v26, 5  ;;  %v440_v35 = vrot.slane %v438_v27, 5  ;;  %v549_v36 = vshrl.u32 %v256_v23, 16  ;;  %v552_v37 = vshll.u32 %v256_v23, 16  ;;  %1018 = vmatpush.bf16.msrb.mxu1 %v2998_v9  ;;  %v3292_v63 = vld [vmem:[%s3238_s30 + $0x4] sm:$0xf] }
  0x21   : > { %v412_v38 = vrot.slane %v411_v28, 4  ;;  %v422_v39 = vrot.slane %v421_v29, 4  ;;  %v444_v40 = vrot.slane %v442_v30, 4  ;;  %v450_v41 = vrot.slane %v448_v31, 5  ;;  %v3297_v4 = vld [vmem:[%s3238_s30 + $0x8] sm:$0x1] }
  0x22   : > { %v435_v42 = vor.u32 %v434_v34, %v431_v25  ;;  %v551_v44 = vrot.slane %v549_v36, 4  ;;  %v554_v45 = vrot.slane %v552_v37, 5  ;;  %v558_v46 = vshll.u32 %v257_v32, 16  ;;  %v3308_v19 = vld [vmem:[%s3238_s30 + $0x54] sm:$0xf]  ;;  %s3089_s26 = scalar_lea.hbm %s3088_s25, 1 }
  0x23   : > { %v417_v47 = vsel %vm3275_vm3, %v412_v38, %v416_v21  ;;  %v427_v48 = vsel %vm3275_vm3, %v422_v39, %v426_v24  ;;  %v445_v49 = vor.u32 %v444_v40, %v440_v35  ;;  %v562_v50 = vshrl.u32 %v257_v32, 16  ;;  %v3314_v24 = vld [vmem:[%s3238_s30 + $0x58] sm:$0xf]  ;;  %v3319_v28 = vld [vmem:[%s3238_s30 + $0x5c] sm:$0x1]  ;;  %p3090_p11 = scmp.ne.s32.totalorder %s3088_s25, %s3089_s26  ;;  %s3093_s22 = scalar_lea.hbm %s4547_s5, 2 }
  0x24   : > { %v683_v51 = vunpack.c.l.b16 %v417_v47  ;;  %v684_v52 = vunpack.c.l.b16 %v427_v48  ;;  %v436_v53 = vrot.slane %v435_v42, 4  ;;  %v555_v54 = vor.u32 %v554_v45, %v551_v44  ;;  %v259_v38 = vld [vmem:[%s3238_s30 + $0x90] sm:$0xf]  ;;  %v260_v47 = vld [vmem:[%s3238_s30 + $0x94] sm:$0xf]  ;;  %p3095_p1 = scmp.lt.s32.totalorder %s3093_s22, %s3089_s26 }
  0x25   : > { %v446_v55 = vrot.slane %v445_v49, 4  ;;  %v560_v56 = vrot.slane %v558_v46, 5  ;;  %v564_v57 = vrot.slane %v562_v50, 4  ;;  %v568_v58 = vshll.u32 %v258_v43, 16  ;;  %v261_v50 = vld [vmem:[%s3238_s30 + $0x98] sm:$0x1]  ;;  %p3091_p12 = pnand %p3090_p11, %p3205_p5 }
  0x26   : > { %v3287_v60 = vpack.c.b16 %v684_v52, %v683_v51  ;;  %v441_v61 = vsel %vm3275_vm3, %v436_v53, %v440_v35  ;;  %v556_v62 = vrot.slane %v555_v54, 4  ;;  %v285_v10 = vshrl.u32 %v3285_v59, 16  ;;  %p3096_p2 = por %p3095_p1, %p3094_p0 }
  0x27   : > { %v451_v0 = vsel %vm3275_vm3, %v446_v55, %v450_v41  ;;  %v685_v1 = vunpack.c.l.b16 %v441_v61  ;;  %v565_v2 = vor.u32 %v564_v57, %v560_v56  ;;  %v570_v3 = vrot.slane %v568_v58, 5  ;;  %p3092_p13 = pneg %p3091_p12 }
  0x28   : > { %2656 = vmatmul.msk.bf16.vlgmr.msra.gmra.mxu1 %vm733_vm2, %v3287_v60  ;;  %v686_v5 = vunpack.c.l.b16 %v451_v0  ;;  %v561_v9 = vsel %vm3275_vm3, %v556_v62, %v560_v56  ;;  %v288_v11 = vshll.u32 %v3285_v59, 16  ;;  %v294_v15 = vshll.u32 %v3292_v63, 16 }
  0x29   : > { %v566_v12 = vrot.slane %v565_v2, 4  ;;  %v695_v13 = vunpack.c.l.b16 %v561_v9  ;;  %v298_v18 = vshrl.u32 %v3292_v63, 16  ;;  %v287_v21 = vrot.slane %v285_v10, 4  ;;  %p3097_p3 = pnand %p3096_p2, %p3092_p13 }
  0x2a   : > { %v3310_v20 = vpack.c.b16 %v686_v5, %v685_v1  ;;  %v290_v22 = vrot.slane %v288_v11, 5  ;;  %v304_v23 = vshll.u32 %v3297_v4, 16  ;;  %v296_v26 = vrot.slane %v294_v15, 5  ;;  %v2980_v11 = vld [vmem:[%s3238_s30] sm:$0xff] }
  0x2b   : > { %v571_v25 = vsel %vm3275_vm3, %v566_v12, %v570_v3  ;;  %v300_v27 = vrot.slane %v298_v18, 4  ;;  %v453_v32 = vshrl.u32 %v3308_v19, 16  ;;  %v456_v35 = vshll.u32 %v3308_v19, 16  ;;  %v3340_v3 = vld [vmem:[%s3238_s30 + $0xc] sm:$0xf] }
  0x2c   : > { %4596 = vst [vmem:[#allocation5_spill] sm:$0xff] %v3310_v20  ;;  %2657 = vmatmul.msk.bf16.vlgmr.msra.gmra.mxu2 %vm733_vm2, %v3310_v20  ;;  %v696_v29 = vunpack.c.l.b16 %v571_v25  ;;  %v291_v30 = vor.u32 %v290_v22, %v287_v21  ;;  %v306_v31 = vrot.slane %v304_v23, 5  ;;  %v462_v36 = vshll.u32 %v3314_v24, 16  ;;  %v3344_v12 = vld [vmem:[%s3238_s30 + $0x10] sm:$0xf] }
  0x2d   : > { %v301_v34 = vor.u32 %v300_v27, %v296_v26  ;;  %v466_v37 = vshrl.u32 %v3314_v24, 16  ;;  %v455_v41 = vrot.slane %v453_v32, 4  ;;  %v472_v42 = vshll.u32 %v3319_v28, 16  ;;  %v3351_v22 = vld [vmem:[%s3238_s30 + $0x14] sm:$0x1] }
  0x2e   : > { %v3328_v39 = vpack.c.b16 %v696_v29, %v695_v13  ;;  %v292_v40 = vrot.slane %v291_v30, 4  ;;  %v458_v44 = vrot.slane %v456_v35, 5  ;;  %v464_v45 = vrot.slane %v462_v36, 5  ;;  %v3002_v29 = vld [vmem:[%s4543_s1 + $0x20] sm:$0xff]  ;;  %v3004_v30 = vld [vmem:[%s4543_s1 + $0x30] sm:$0xff] }
  0x2f   : > { %v302_v43 = vrot.slane %v301_v34, 4  ;;  %v468_v46 = vrot.slane %v466_v37, 4  ;;  %v474_v49 = vrot.slane %v472_v42, 5  ;;  %v573_v51 = vshrl.u32 %v259_v38, 16  ;;  %v3365_v36 = vld [vmem:[%s3238_s30 + $0x60] sm:$0xf]  ;;  %1351 = vmatpush.bf16.msrb.mxu2 %v3002_v29  ;;  %1497 = vmatpush.bf16.msrb.mxu3 %v3004_v30 }
  0x30   : > { %4597 = vst [vmem:[#allocation6_spill] sm:$0xff] %v3328_v39  ;;  %2662 = vmatmul.msk.bf16.vlgmr.msra.gmra.mxu3 %vm733_vm2, %v3328_v39  ;;  %v297_v48 = vsel %vm3275_vm3, %v292_v40, %v296_v26  ;;  %v459_v54 = vor.u32 %v458_v44, %v455_v41  ;;  %v576_v58 = vshll.u32 %v259_v38, 16  ;;  %v582_v61 = vshll.u32 %v260_v47, 16 }
  0x31   : > { %v307_v52 = vsel %vm3275_vm3, %v302_v43, %v306_v31  ;;  %v673_v53 = vunpack.c.l.b16 %v297_v48  ;;  %v469_v55 = vor.u32 %v468_v46, %v464_v45  ;;  %v575_v57 = vrot.slane %v573_v51, 4  ;;  %v3372_v46 = vld [vmem:[%s3238_s30 + $0x64] sm:$0xf] }
  0x32   : > { %v674_v56 = vunpack.c.l.b16 %v307_v52  ;;  %v460_v62 = vrot.slane %v459_v54, 4  ;;  %v586_v1 = vshrl.u32 %v260_v47, 16  ;;  %v592_v2 = vshll.u32 %v261_v50, 16 }
  0x33   : > { %v470_v0 = vrot.slane %v469_v55, 4  ;;  %v578_v9 = vrot.slane %v576_v58, 5  ;;  %v584_v10 = vrot.slane %v582_v61, 5  ;;  %v309_v27 = vshrl.u32 %v3340_v3, 16 }
  0x34   : > { %v705_v5 = vpack.c.b16 %v674_v56, %v673_v53  ;;  %v465_v13 = vsel %vm3275_vm3, %v460_v62, %v464_v45  ;;  %v588_v18 = vrot.slane %v586_v1, 4  ;;  %v594_v21 = vrot.slane %v592_v2, 5 }
  0x35   : > { %v475_v15 = vsel %vm3275_vm3, %v470_v0, %v474_v49  ;;  %v687_v23 = vunpack.c.l.b16 %v465_v13  ;;  %v579_v26 = vor.u32 %v578_v9, %v575_v57  ;;  %v312_v32 = vshll.u32 %v3340_v3, 16  ;;  %v3377_v49 = vld [vmem:[%s3238_s30 + $0x68] sm:$0x1]  ;;  %v3392_v13 = vld [vmem:[%s3238_s30 + $0xa0] sm:$0xf] }
  0x36   : > { %2651 = vmatmul.msk.bf16.vlgmr.msra.gmra.mxu0 %vm733_vm2, %v705_v5  ;;  %v688_v25 = vunpack.c.l.b16 %v475_v15  ;;  %v589_v31 = vor.u32 %v588_v18, %v584_v10  ;;  %v318_v34 = vshll.u32 %v3344_v12, 16  ;;  %v322_v35 = vshrl.u32 %v3344_v12, 16  ;;  %v262_v5 = vld [vmem:[%s3238_s30 + $0x9c] sm:$0xf]  ;;  %4600 = vst [vmem:[#allocation9_spill] sm:$0xff] %v3392_v13 }
  0x37   : > { %v580_v38 = vrot.slane %v579_v26, 4  ;;  %v311_v40 = vrot.slane %v309_v27, 4  ;;  %v328_v41 = vshll.u32 %v3351_v22, 16  ;;  %v314_v43 = vrot.slane %v312_v32, 5 }
  0x38   : > { %v3367_v37 = vpack.c.b16 %v688_v25, %v687_v23  ;;  %2739 = vmatmul.msk.bf16.vlgmr.msrb.gmra.mxu1 %vm733_vm2, %v2980_v11  ;;  %v590_v42 = vrot.slane %v589_v31, 4  ;;  %v320_v44 = vrot.slane %v318_v34, 5  ;;  %v324_v45 = vrot.slane %v322_v35, 4  ;;  %v3399_v25 = vld [vmem:[%s3238_s30 + $0xa4] sm:$0x1] }
  0x39   : > { %v585_v47 = vsel %vm3275_vm3, %v580_v38, %v584_v10  ;;  %v330_v48 = vrot.slane %v328_v41, 5  ;;  %v477_v50 = vshrl.u32 %v3365_v36, 16  ;;  %v480_v51 = vshll.u32 %v3365_v36, 16  ;;  %4601 = vst [vmem:[#allocation10_spill] sm:$0xff] %v3399_v25  ;;  %v3406_v38 = vld [vmem:[%s3238_s30 + $0x18] sm:$0xf] }
  0x3a   : > { %4598 = vst [vmem:[#allocation7_spill] sm:$0xff] %v3367_v37  ;;  %v595_v52 = vsel %vm3275_vm3, %v590_v42, %v594_v21  ;;  %v697_v53 = vunpack.c.l.b16 %v585_v47  ;;  %v315_v54 = vor.u32 %v314_v43, %v311_v40  ;;  %v325_v55 = vor.u32 %v324_v45, %v320_v44 }
  0x3b   : > { %v698_v56 = vunpack.c.l.b16 %v595_v52  ;;  %v479_v57 = vrot.slane %v477_v50, 4  ;;  %v482_v58 = vrot.slane %v480_v51, 5  ;;  %v486_v61 = vshll.u32 %v3372_v46, 16 }
  0x3c   : > { %2658 = vmatmul.msk.bf16.gmra.mxu2 %vm733_vm2, %v3367_v37  ;;  %v316_v62 = vrot.slane %v315_v54, 4  ;;  %v326_v0 = vrot.slane %v325_v55, 4  ;;  %v490_v1 = vshrl.u32 %v3372_v46, 16  ;;  %v496_v2 = vshll.u32 %v3377_v49, 16  ;;  %v3420_v54 = vld [vmem:[%s3238_s30 + $0x20] sm:$0x1] }
  0x3d   : > { %v3389_v9 = vpack.c.b16 %v698_v56, %v697_v53  ;;  %v483_v10 = vor.u32 %v482_v58, %v479_v57  ;;  %v488_v11 = vrot.slane %v486_v61, 5  ;;  %v597_v30 = vshrl.u32 %v262_v5, 16  ;;  %v3417_v53 = vld [vmem:[%s3238_s30 + $0xc] sm:$0xff] }
  0x3e   : > { %v321_v15 = vsel %vm3275_vm3, %v316_v62, %v320_v44  ;;  %v331_v18 = vsel %vm3275_vm3, %v326_v0, %v330_v48  ;;  %v492_v21 = vrot.slane %v490_v1, 4  ;;  %v498_v23 = vrot.slane %v496_v2, 5  ;;  %v3414_v44 = vld [vmem:[%s3238_s30 + $0x1c] sm:$0xf]  ;;  %v3428_v62 = vld [vmem:[%s3238_s30 + $0x6c] sm:$0xf] }
  0x3f   : > { %4599 = vst [vmem:[#allocation8_spill] sm:$0xff] %v3389_v9  ;;  %v675_v26 = vunpack.c.l.b16 %v321_v15  ;;  %v676_v27 = vunpack.c.l.b16 %v331_v18  ;;  %v484_v29 = vrot.slane %v483_v10, 4  ;;  %v600_v32 = vshll.u32 %v262_v5, 16  ;;  %v3006_v10 = vld [vmem:[%s4543_s1 + $0x40] sm:$0xff] }
  0x40   : > { %2663 = vmatmul.msk.bf16.gmra.mxu3 %vm733_vm2, %v3389_v9  ;;  %v493_v31 = vor.u32 %v492_v21, %v488_v11  ;;  %v606_v34 = vshll.u32 %v3392_v13, 16  ;;  %v610_v35 = vshrl.u32 %v3392_v13, 16  ;;  %v599_v42 = vrot.slane %v597_v30, 4  ;;  %1665 = vmatpush.bf16.msrb.mxu0 %v3006_v10  ;;  %v3469_v10 = vld [vmem:[%s3238_s30 + $0xb0] sm:$0x1] }
  0x41   : > { %v3408_v40 = vpack.c.b16 %v676_v27, %v675_v26  ;;  %v489_v41 = vsel %vm3275_vm3, %v484_v29, %v488_v11  ;;  %v616_v43 = vshll.u32 %v3399_v25, 16  ;;  %v602_v47 = vrot.slane %v600_v32, 5  ;;  %v3442_v29 = vld [vmem:[%s3238_s30 + $0x70] sm:$0xf]  ;;  %4606 = vst [vmem:[#allocation15_spill] sm:$0xff] %v3469_v10 }
  0x42   : > { %v494_v45 = vrot.slane %v493_v31, 4  ;;  %v608_v48 = vrot.slane %v606_v34, 5  ;;  %v689_v50 = vunpack.c.l.b16 %v489_v41  ;;  %v612_v51 = vrot.slane %v610_v35, 4  ;;  %v3448_v35 = vld [vmem:[%s3238_s30 + $0x74] sm:$0x1] }
  0x43   : > { %v618_v52 = vrot.slane %v616_v43, 5  ;;  %v333_v55 = vshrl.u32 %v3406_v38, 16  ;;  %v603_v57 = vor.u32 %v602_v47, %v599_v42  ;;  %v336_v58 = vshll.u32 %v3406_v38, 16  ;;  %v3541_v13 = vld [vmem:[%s3238_s30 + $0xbc] sm:$0x1] }
  0x44   : > { %v499_v56 = vsel %vm3275_vm3, %v494_v45, %v498_v23  ;;  %v342_v61 = vshll.u32 %v3414_v44, 16  ;;  %v613_v1 = vor.u32 %v612_v51, %v608_v48  ;;  %v346_v5 = vshrl.u32 %v3414_v44, 16  ;;  %4613 = vst [vmem:[#allocation22_spill] sm:$0xff] %v3541_v13 }
  0x45   : > { %v690_v0 = vunpack.c.l.b16 %v499_v56  ;;  %v335_v2 = vrot.slane %v333_v55, 4  ;;  %v604_v11 = vrot.slane %v603_v57, 4  ;;  %v338_v15 = vrot.slane %v336_v58, 5 }
  0x46   : > { %2652 = vmatmul.msk.bf16.gmra.mxu0 %vm733_vm2, %v3408_v40  ;;  %v344_v18 = vrot.slane %v342_v61, 5  ;;  %v352_v21 = vshll.u32 %v3420_v54, 16  ;;  %v614_v26 = vrot.slane %v613_v1, 4  ;;  %v348_v27 = vrot.slane %v346_v5, 4  ;;  %v3459_v61 = vld [vmem:[%s3238_s30 + $0xa8] sm:$0xf] }
  0x47   : > { %v3437_v23 = vpack.c.b16 %v690_v0, %v689_v50  ;;  %v501_v30 = vshrl.u32 %v3428_v62, 16  ;;  %v609_v31 = vsel %vm3275_vm3, %v604_v11, %v608_v48  ;;  %v339_v32 = vor.u32 %v338_v15, %v335_v2  ;;  %4603 = vst [vmem:[#allocation12_spill] sm:$0xff] %v3459_v61  ;;  %v3466_v5 = vld [vmem:[%s3238_s30 + $0xac] sm:$0xf] }
  0x48   : > { %2740 = vmatmul.msk.bf16.gmra.mxu1 %vm733_vm2, %v3417_v53  ;;  %v354_v34 = vrot.slane %v352_v21, 5  ;;  %v504_v41 = vshll.u32 %v3428_v62, 16  ;;  %v619_v42 = vsel %vm3275_vm3, %v614_v26, %v618_v52  ;;  %v699_v43 = vunpack.c.l.b16 %v609_v31  ;;  %4605 = vst [vmem:[#allocation14_spill] sm:$0xff] %v3466_v5 }
  0x49   : > { %4602 = vst [vmem:[#allocation11_spill] sm:$0xff] %v3437_v23  ;;  %v349_v45 = vor.u32 %v348_v27, %v344_v18  ;;  %v503_v47 = vrot.slane %v501_v30, 4  ;;  %v700_v50 = vunpack.c.l.b16 %v619_v42  ;;  %v340_v51 = vrot.slane %v339_v32, 4 }
  0x4a   : > { %v506_v55 = vrot.slane %v504_v41, 5  ;;  %v510_v48 = vshll.u32 %v3442_v29, 16  ;;  %v514_v57 = vshrl.u32 %v3442_v29, 16  ;;  %v520_v58 = vshll.u32 %v3448_v35, 16 }
  0x4b   : > { %v350_v56 = vrot.slane %v349_v45, 4  ;;  %v3461_v52 = vpack.c.b16 %v700_v50, %v699_v43  ;;  %v345_v0 = vsel %vm3275_vm3, %v340_v51, %v344_v18  ;;  %v621_v31 = vshrl.u32 %v3459_v61, 16  ;;  %v3481_v43 = vld [vmem:[%s3238_s30 + $0x24] sm:$0xf]  ;;  %v3486_v51 = vld [vmem:[%s3238_s30 + $0x28] sm:$0xf] }
  0x4c   : > { %2659 = vmatmul.msk.bf16.gmra.mxu2 %vm733_vm2, %v3437_v23  ;;  %v507_v1 = vor.u32 %v506_v55, %v503_v47  ;;  %v512_v2 = vrot.slane %v510_v48, 5  ;;  %v677_v15 = vunpack.c.l.b16 %v345_v0  ;;  %v516_v21 = vrot.slane %v514_v57, 4 }
  0x4d   : > { %4604 = vst [vmem:[#allocation13_spill] sm:$0xff] %v3461_v52  ;;  %v355_v11 = vsel %vm3275_vm3, %v350_v56, %v354_v34  ;;  %v522_v26 = vrot.slane %v520_v58, 5  ;;  %v624_v18 = vshll.u32 %v3459_v61, 16  ;;  %v630_v41 = vshll.u32 %v3466_v5, 16 }
  0x4e   : > { %v678_v27 = vunpack.c.l.b16 %v355_v11  ;;  %v508_v30 = vrot.slane %v507_v1, 4  ;;  %v517_v32 = vor.u32 %v516_v21, %v512_v2  ;;  %v634_v42 = vshrl.u32 %v3466_v5, 16  ;;  %v3491_v11 = vld [vmem:[%s3238_s30 + $0x2c] sm:$0x1] }
  0x4f   : > { %v640_v34 = vshll.u32 %v3469_v10, 16  ;;  %v623_v47 = vrot.slane %v621_v31, 4  ;;  %v626_v50 = vrot.slane %v624_v18, 5  ;;  %v632_v56 = vrot.slane %v630_v41, 5  ;;  %v3497_v31 = vld [vmem:[%s3238_s30 + $0x18] sm:$0xff] }
  0x50   : > { %2664 = vmatmul.msk.bf16.gmra.mxu3 %vm733_vm2, %v3461_v52  ;;  %v513_v45 = vsel %vm3275_vm3, %v508_v30, %v512_v2  ;;  %v3488_v55 = vpack.c.b16 %v678_v27, %v677_v15  ;;  %v518_v48 = vrot.slane %v517_v32, 4  ;;  %v636_v57 = vrot.slane %v634_v42, 4  ;;  %v3502_v18 = vld [vmem:[%s3238_s30 + $0x78] sm:$0xf]  ;;  %v3513_v10 = vld [vmem:[%s3238_s30 + $0x7c] sm:$0xf] }
  0x51   : > { %v691_v58 = vunpack.c.l.b16 %v513_v45  ;;  %v627_v0 = vor.u32 %v626_v50, %v623_v47  ;;  %v642_v1 = vrot.slane %v640_v34, 5  ;;  %v357_v21 = vshrl.u32 %v3481_v43, 16  ;;  %4607 = vst [vmem:[#allocation16_spill] sm:$0xff] %v3502_v18 }
  0x52   : > { %v523_v2 = vsel %vm3275_vm3, %v518_v48, %v522_v26  ;;  %v637_v30 = vor.u32 %v636_v57, %v632_v56  ;;  %v360_v15 = vshll.u32 %v3481_v43, 16  ;;  %v366_v27 = vshll.u32 %v3486_v51, 16 }
  0x53   : > { %v692_v32 = vunpack.c.l.b16 %v523_v2  ;;  %v628_v41 = vrot.slane %v627_v0, 4  ;;  %v359_v42 = vrot.slane %v357_v21, 4  ;;  %v370_v34 = vshrl.u32 %v3486_v51, 16  ;;  %v3516_v0 = vld [vmem:[%s3238_s30 + $0x80] sm:$0x1] }
  0x54   : > { %v638_v26 = vrot.slane %v637_v30, 4  ;;  %v362_v45 = vrot.slane %v360_v15, 5  ;;  %v368_v47 = vrot.slane %v366_v27, 5  ;;  %v376_v50 = vshll.u32 %v3491_v11, 16  ;;  %4609 = vst [vmem:[#allocation18_spill] sm:$0xff] %v3516_v0 }
  0x55   : > { %v3508_v48 = vpack.c.b16 %v692_v32, %v691_v58  ;;  %v633_v57 = vsel %vm3275_vm3, %v628_v41, %v632_v56  ;;  %v372_v61 = vrot.slane %v370_v34, 4  ;;  %v525_v21 = vshrl.u32 %v3502_v18, 16 }
  0x56   : > { %2653 = vmatmul.msk.bf16.gmra.mxu0 %vm733_vm2, %v3488_v55  ;;  %v643_v2 = vsel %vm3275_vm3, %v638_v26, %v642_v1  ;;  %v701_v30 = vunpack.c.l.b16 %v633_v57  ;;  %v363_v58 = vor.u32 %v362_v45, %v359_v42  ;;  %v378_v15 = vrot.slane %v376_v50, 5  ;;  %v3528_v26 = vld [vmem:[%s3238_s30 + $0xb4] sm:$0xf] }
  0x57   : > { %4608 = vst [vmem:[#allocation17_spill] sm:$0xff] %v3508_v48  ;;  %v702_v27 = vunpack.c.l.b16 %v643_v2  ;;  %v373_v56 = vor.u32 %v372_v61, %v368_v47  ;;  %v527_v32 = vrot.slane %v525_v21, 4  ;;  %v528_v41 = vshll.u32 %v3502_v18, 16  ;;  %v3534_v61 = vld [vmem:[%s3238_s30 + $0xb8] sm:$0xf] }
  0x58   : > { %2741 = vmatmul.msk.bf16.gmra.mxu1 %vm733_vm2, %v3497_v31  ;;  %v364_v34 = vrot.slane %v363_v58, 4  ;;  %v534_v5 = vshll.u32 %v3513_v10, 16  ;;  %v538_v52 = vshrl.u32 %v3513_v10, 16  ;;  %v544_v1 = vshll.u32 %v3516_v0, 16  ;;  %4610 = vst [vmem:[#allocation19_spill] sm:$0xff] %v3528_v26 }
  0x59   : > { %v3531_v25 = vpack.c.b16 %v702_v27, %v701_v30  ;;  %v374_v42 = vrot.slane %v373_v56, 4  ;;  %v530_v45 = vrot.slane %v528_v41, 5  ;;  %4612 = vst [vmem:[#allocation21_spill] sm:$0xff] %v3534_v61  ;;  %v645_v41 = vshrl.u32 %v3528_v26, 16  ;;  %v3551_v18 = vld [vmem:[%s3238_s30 + $0x30] sm:$0xf] }
  0x5a   : > { %v369_v50 = vsel %vm3275_vm3, %v364_v34, %v368_v47  ;;  %v536_v21 = vrot.slane %v534_v5, 5  ;;  %v540_v2 = vrot.slane %v538_v52, 4  ;;  %v546_v58 = vrot.slane %v544_v1, 5 }
  0x5b   : > { %4611 = vst [vmem:[#allocation20_spill] sm:$0xff] %v3531_v25  ;;  %v379_v30 = vsel %vm3275_vm3, %v374_v42, %v378_v15  ;;  %v679_v27 = vunpack.c.l.b16 %v369_v50  ;;  %v531_v56 = vor.u32 %v530_v45, %v527_v32  ;;  %v648_v39 = vshll.u32 %v3528_v26, 16  ;;  %v3556_v45 = vld [vmem:[%s3238_s30 + $0x34] sm:$0xf]  ;;  %v3011_v50 = vld [vmem:[%s4543_s1 + $0x68] sm:$0xff] }
  0x5c   : > { %2660 = vmatmul.msk.bf16.gmra.mxu2 %vm733_vm2, %v3508_v48  ;;  %v680_v57 = vunpack.c.l.b16 %v379_v30  ;;  %v541_v9 = vor.u32 %v540_v2, %v536_v21  ;;  %v654_v47 = vshll.u32 %v3534_v61, 16  ;;  %v647_v52 = vrot.slane %v645_v41, 4  ;;  %v3566_v26 = vld [vmem:[%s3238_s30 + $0x38] sm:$0x1] }
  0x5d   : > { %v532_v5 = vrot.slane %v531_v56, 4  ;;  %v658_v34 = vshrl.u32 %v3534_v61, 16  ;;  %v664_v1 = vshll.u32 %v3541_v13, 16  ;;  %v650_v32 = vrot.slane %v648_v39, 5  ;;  %1962 = vmatpush.bf16.msra.mxu2 %v3011_v50 }
  0x5e   : > { %v542_v15 = vrot.slane %v541_v9, 4  ;;  %v656_v42 = vrot.slane %v654_v47, 5  ;;  %v3561_v2 = vpack.c.b16 %v680_v57, %v679_v27  ;;  %v381_v13 = vshrl.u32 %v3551_v18, 16 }
  0x5f   : > { %v537_v30 = vsel %vm3275_vm3, %v532_v5, %v536_v21  ;;  %v660_v56 = vrot.slane %v658_v34, 4  ;;  %v666_v41 = vrot.slane %v664_v1, 5  ;;  %v651_v47 = vor.u32 %v650_v32, %v647_v52  ;;  %v3574_v21 = vld [vmem:[%s3238_s30 + $0x24] sm:$0xff] }
  0x60   : > { %2665 = vmatmul.msk.bf16.gmra.mxu3 %vm733_vm2, %v3531_v25  ;;  %v547_v39 = vsel %vm3275_vm3, %v542_v15, %v546_v58  ;;  %v693_v9 = vunpack.c.l.b16 %v537_v30  ;;  %v384_v57 = vshll.u32 %v3551_v18, 16  ;;  %v390_v27 = vshll.u32 %v3556_v45, 16 }
  0x61   : > { %v694_v61 = vunpack.c.l.b16 %v547_v39  ;;  %v661_v25 = vor.u32 %v660_v56, %v656_v42  ;;  %v652_v0 = vrot.slane %v651_v47, 4  ;;  %v383_v5 = vrot.slane %v381_v13, 4  ;;  %v3013_v13 = vld [vmem:[%s4543_s1 + $0x78] sm:$0xff] }
  0x62   : > { %v394_v34 = vshrl.u32 %v3556_v45, 16  ;;  %v400_v1 = vshll.u32 %v3566_v26, 16  ;;  %v386_v15 = vrot.slane %v384_v57, 5  ;;  %v392_v32 = vrot.slane %v390_v27, 5  ;;  %2130 = vmatpush.bf16.msra.mxu3 %v3013_v13 }
  0x63   : > { %v3578_v58 = vpack.c.b16 %v694_v61, %v693_v9  ;;  %v662_v52 = vrot.slane %v661_v25, 4  ;;  %v657_v50 = vsel %vm3275_vm3, %v652_v0, %v656_v42  ;;  %v3009_v61 = vld [vmem:[%s4543_s1 + $0x58] sm:$0xff]  ;;  %v3015_v25 = vld [vmem:[%s4543_s1 + $0x88] sm:$0xff]  ;;  %v2755_v27 = vrot.slane %v3285_v59, 9 }
  0x64   : > { %v396_v30 = vrot.slane %v394_v34, 4  ;;  %v402_v56 = vrot.slane %v400_v1, 5  ;;  %v703_v9 = vunpack.c.l.b16 %v657_v50  ;;  %v387_v0 = vor.u32 %v386_v15, %v383_v5  ;;  %1816 = vmatpush.bf16.msra.mxu1 %v3009_v61  ;;  %2282 = vmatpush.bf16.msra.mxu0 %v3015_v25 }
  0x65   : > { %4614 = vst [vmem:[#allocation23_spill] sm:$0xff] %v3578_v58  ;;  %v667_v39 = vsel %vm3275_vm3, %v662_v52, %v666_v41  ;;  %v1121_v34 = vrot.slane %v3292_v63, 5  ;;  %v2756_v41 = vrot.slane %v3340_v3, 9  ;;  %v1128_v5 = vrot.slane %v3344_v12, 5 }
  0x66   : > { %2654 = vmatmul.msk.bf16.gmra.mxu0 %vm733_vm2, %v3561_v2  ;;  %v704_v42 = vunpack.c.l.b16 %v667_v39  ;;  %v397_v47 = vor.u32 %v396_v30, %v392_v32  ;;  %v388_v1 = vrot.slane %v387_v0, 4  ;;  %v1131_v52 = vrot.slane %v3351_v22, 5 }
  0x67   : > { %v1122_v50 = vsel %vm3597_vm6, %v2755_v27, %v1121_v34  ;;  %v1123_v30 = vrot.slane %v1121_v34, 4  ;;  %v1129_v63 = vsel %vm3597_vm6, %v2756_v41, %v1128_v5  ;;  %v1130_v13 = vrot.slane %v1128_v5, 4 }
  0x68   : > { %2742 = vmatmul.msk.bf16.gmra.mxu1 %vm733_vm2, %v3574_v21  ;;  %v398_v15 = vrot.slane %v397_v47, 4  ;;  %v393_v59 = vsel %vm3275_vm3, %v388_v1, %v392_v32  ;;  %v1236_v39 = vunpack.c.l.b16 %v1122_v50  ;;  %v3614_v3 = vpack.c.b16 %v704_v42, %v703_v9 }
  0x69   : > { %v4617_v22 = vrot.slane %v3297_v4, 5  ;;  %v1238_v32 = vunpack.c.l.b16 %v1129_v63  ;;  %v1132_v0 = vsel %vm3597_vm6, %v1130_v13, %v1131_v52  ;;  %v681_v47 = vunpack.c.l.b16 %v393_v59  ;;  %v3631_v4 = vld [vmem:[%s3238_s30 + $0x30] sm:$0xff] }
  0x6a   : > { %v403_v12 = vsel %vm3275_vm3, %v398_v15, %v402_v56  ;;  %v1239_v34 = vunpack.c.l.b16 %v1132_v0  ;;  %v2757_v42 = vrot.slane %v3406_v38, 9  ;;  %v1135_v41 = vrot.slane %v3414_v44, 5  ;;  %v3650_v38 = vld [vmem:[%s3238_s30 + $0x3c] sm:$0xff] }
  0x6b   : > { %v1125_v61 = vsel %vm3597_vm6, %v1123_v30, %v4617_v22  ;;  %v682_v27 = vunpack.c.l.b16 %v403_v12  ;;  %v1138_v5 = vrot.slane %v3420_v54, 5  ;;  %v1142_v44 = vrot.slane %v3486_v51, 5 }
  0x6c   : > { %2661 = vmatmul.msk.bf16.gmra.mxu2 %vm733_vm2, %v3578_v58  ;;  %v1237_v25 = vunpack.c.l.b16 %v1125_v61  ;;  %v3626_v9 = vpack.c.b16 %v1239_v34, %v1238_v32  ;;  %v1136_v52 = vsel %vm3597_vm6, %v2757_v42, %v1135_v41  ;;  %v1137_v15 = vrot.slane %v1135_v41, 4  ;;  %v3670_v61 = vld [vmem:[%s3238_s30 + $0x48] sm:$0xff]  ;;  %v3690_v34 = vld [vmem:[%s3238_s30 + $0x54] sm:$0xff] }
  0x6d   : > { %v3628_v56 = vpack.c.b16 %v682_v27, %v681_v47  ;;  %v1240_v50 = vunpack.c.l.b16 %v1136_v52  ;;  %v2758_v54 = vrot.slane %v3481_v43, 9  ;;  %v1144_v63 = vrot.slane %v1142_v44, 4  ;;  %4618 = vst [vmem:[#allocation24_spill] sm:$0xff] %v3670_v61 }
  0x6e   : > { %v1268_v1 = vpack.c.b16 %v1237_v25, %v1236_v39  ;;  %v1139_v30 = vsel %vm3597_vm6, %v1137_v15, %v1138_v5  ;;  %v1145_v13 = vrot.slane %v3491_v11, 5  ;;  %v1149_v43 = vrot.slane %v3556_v45, 5  ;;  %4619 = vst [vmem:[#allocation25_spill] sm:$0xff] %v3690_v34  ;;  %v3709_v5 = vld [vmem:[%s3238_s30 + $0x60] sm:$0xff] }
  0x6f   : > { %v1241_v59 = vunpack.c.l.b16 %v1139_v30  ;;  %v2759_v11 = vrot.slane %v3551_v18, 9  ;;  %v1152_v32 = vrot.slane %v3566_v26, 5  ;;  %4620 = vst [vmem:[#allocation26_spill] sm:$0xff] %v3709_v5  ;;  %v1156_v30 = vrot.slane %v3244_v7, 5 }
  0x70   : > { %2666 = vmatmul.msk.bf16.gmra.mxu3 %vm733_vm2, %v3614_v3  ;;  %v1146_v12 = vsel %vm3597_vm6, %v1144_v63, %v1145_v13  ;;  %v2760_v63 = vrot.slane %v3241_v6, 9  ;;  %v3739_v6 = vld [vmem:[%s3238_s30 + $0x6c] sm:$0xff] }
  0x71   : > { %v3645_v39 = vpack.c.b16 %v1241_v59, %v1240_v50  ;;  %v1243_v22 = vunpack.c.l.b16 %v1146_v12  ;;  %v1150_v25 = vsel %vm3597_vm6, %v2759_v11, %v1149_v43  ;;  %v1158_v13 = vrot.slane %v1156_v30, 4  ;;  %4622 = vst [vmem:[#allocation28_spill] sm:$0xff] %v3739_v6 }
  0x72   : > { %v1244_v47 = vunpack.c.l.b16 %v1150_v25  ;;  %v1157_v7 = vsel %vm3597_vm6, %v2760_v63, %v1156_v30  ;;  %v1166_v63 = vrot.slane %v3264_v17, 5 }
  0x76   : > { %2655 = vmatmul.msk.bf16.gmra.mxu0 %vm733_vm2, %v3628_v56 }
  0x78   : > { %2743 = vmatmul.msk.bf16.gmra.mxu1 %vm733_vm2, %v3631_v4 }
  0x7c   : > { %2783 = vmatmul.msk.bf16.vlgmr.msrb.gmra.mxu2 %vm733_vm2, %v1268_v1 }
  0x80   : > { %2815 = vmatmul.msk.bf16.vlgmr.msrb.gmra.mxu3 %vm733_vm2, %v3417_v53  ;;  %v1143_v53 = vsel %vm3597_vm6, %v2758_v54, %v1142_v44 }
  0x86   : > { %2843 = vmatmul.msk.bf16.vlgmr.msrb.gmra.mxu0 %vm733_vm2, %v3408_v40  ;;  %v1242_v40 = vunpack.c.l.b16 %v1143_v53  ;;  %v1159_v53 = vrot.slane %v3247_v8, 5 }
  0x88   : > { %2744 = vmatmul.msk.bf16.gmra.mxu1 %vm733_vm2, %v3650_v38  ;;  %v3667_v51 = vpack.c.b16 %v1243_v22, %v1242_v40  ;;  %v1160_v22 = vsel %vm3597_vm6, %v1158_v13, %v1159_v53 }
  0x89   : > { %v1247_v8 = vunpack.c.l.b16 %v1160_v22 }
  0x8c   : > { %2784 = vmatmul.msk.bf16.gmra.mxu2 %vm733_vm2, %v3626_v9 }
  0x90   : > { %2816 = vmatmul.msk.bf16.gmra.mxu3 %vm733_vm2, %v3497_v31  ;;  %v1151_v31 = vrot.slane %v1149_v43, 4 }
  0x92   : > { %v1153_v0 = vsel %vm3597_vm6, %v1151_v31, %v1152_v32  ;;  %v1246_v31 = vunpack.c.l.b16 %v1157_v7 }
  0x93   : > { %v1245_v45 = vunpack.c.l.b16 %v1153_v0 }
  0x95   : > { %v3687_v27 = vpack.c.b16 %v1245_v45, %v1244_v47  ;;  %v3749_v47 = vpack.c.b16 %v1247_v8, %v1246_v31  ;;  %v1163_v45 = vrot.slane %v3261_v16, 5 }
  0x96   : > { %2844 = vmatmul.msk.bf16.gmra.mxu0 %vm733_vm2, %v3488_v55 }
  0x98   : > { %2745 = vmatmul.msk.bf16.gmra.mxu1 %vm733_vm2, %v3670_v61 }
  0x9c   : > { %2785 = vmatmul.msk.bf16.gmra.mxu2 %vm733_vm2, %v3645_v39 }
  0xa0   : > { %2817 = vmatmul.msk.bf16.gmra.mxu3 %vm733_vm2, %v3574_v21 }
  0xa5   : > { %v3692_v18 = vpop.f32.mrf.mxu1 }
  0xa6   : > { %2845 = vmatmul.msk.bf16.gmra.mxu0 %vm733_vm2, %v3561_v2 }
  0xa8   : > { %2746 = vmatmul.msk.bf16.gmra.mxu1 %vm733_vm2, %v3690_v34 }
  0xac   : > { %2786 = vmatmul.msk.bf16.gmra.mxu2 %vm733_vm2, %v3667_v51 }
  0xad   : > { %v3700_v26 = vpop.f32.mrf.mxu1 }
  0xaf   : > { %v3702_v1 = vpop.f32.mrf.mxu2 }
  0xb0   : > { %2818 = vmatmul.msk.bf16.gmra.mxu3 %vm733_vm2, %v3631_v4 }
  0xb3   : > { %v791_v42 = vpop.f32.mrf.mxu0  ;;  %v3706_v41 = vpop.f32.mrf.mxu3 }
  0xb5   : > { %v1020_v52 = vpop.f32.mrf.mxu1 }
  0xb6   : > { %2846 = vmatmul.msk.bf16.gmra.mxu0 %vm733_vm2, %v3628_v56  ;;  %v3713_v15 = vadd.f32 %v1020_v52, %v791_v42 }
  0xb7   : > { %v3715_v50 = vpop.f32.mrf.mxu2 }
  0xb8   : > { %2747 = vmatmul.msk.bf16.gmra.mxu1 %vm733_vm2, %v3709_v5 }
  0xbb   : > { %v793_v59 = vpop.f32.mrf.mxu0  ;;  %v3720_v44 = vpop.f32.mrf.mxu3 }
  0xbc   : > { %2787 = vmatmul.msk.bf16.gmra.mxu2 %vm733_vm2, %v3687_v27 }
  0xbd   : > { %v1022_v54 = vpop.f32.mrf.mxu1 }
  0xbe   : > { %v3726_v12 = vadd.f32 %v1022_v54, %v793_v59  ;;  %v2761_v59 = vrot.slane %v3257_v14, 9  ;;  %v1165_v54 = vrot.slane %v1163_v45, 4  ;;  %v3771_v14 = vld [vmem:[%s3238_s30 + $0x78] sm:$0xff] }
  0xbf   : > { %v3728_v40 = vpop.f32.mrf.mxu2  ;;  %4625 = vst [vmem:[#allocation31_spill] sm:$0xff] %v3771_v14 }
  0xc0   : > { %2819 = vmatmul.msk.bf16.gmra.mxu3 %vm733_vm2, %v3650_v38  ;;  %v1164_v16 = vsel %vm3597_vm6, %v2761_v59, %v1163_v45  ;;  %v1167_v7 = vsel %vm3597_vm6, %v1165_v54, %v1166_v63  ;;  %v1173_v63 = vrot.slane %v3319_v28, 5  ;;  %v3806_v28 = vld [vmem:[%s3238_s30 + $0x84] sm:$0xff] }
  0xc1   : > { %v1248_v31 = vunpack.c.l.b16 %v1164_v16  ;;  %v1249_v17 = vunpack.c.l.b16 %v1167_v7  ;;  %v2762_v7 = vrot.slane %v3308_v19, 9  ;;  %v3010_v19 = vld [vmem:[%s4543_s1 + $0x60] sm:$0xff]  ;;  %4628 = vst [vmem:[#allocation34_spill] sm:$0xff] %v3806_v28 }
  0xc2   : > { %1963 = vmatpush.bf16.msra.mxu2 %v3010_v19  ;;  %v3014_v19 = vld [vmem:[%s4543_s1 + $0x80] sm:$0xff] }
  0xc3   : > { %v796_v43 = vpop.f32.mrf.mxu0  ;;  %v3736_v11 = vpop.f32.mrf.mxu3  ;;  %v3781_v45 = vpack.c.b16 %v1249_v17, %v1248_v31  ;;  %2283 = vmatpush.bf16.msra.mxu0 %v3014_v19 }
  0xc4   : > { %4621 = vst [vmem:[#allocation27_spill] sm:$0xff] %v3736_v11 }
  0xc5   : > { %v1025_v32 = vpop.f32.mrf.mxu1 }
  0xc6   : > { %2847 = vmatmul.msk.bf16.gmra.mxu0 %vm733_vm2, %v3287_v60  ;;  %v3743_v25 = vadd.f32 %v1025_v32, %v796_v43 }
  0xc7   : > { %v3745_v0 = vpop.f32.mrf.mxu2 }
  0xc8   : > { %2748 = vmatmul.msk.bf16.gmra.mxu1 %vm733_vm2, %v3739_v6 }
  0xcb   : > { %v798_v42 = vpop.f32.mrf.mxu0  ;;  %v3752_v52 = vpop.f32.mrf.mxu3 }
  0xcc   : > { %4623 = vst [vmem:[#allocation29_spill] sm:$0xff] %v3752_v52  ;;  %2788 = vmatmul.msk.bf16.gmra.mxu2 %vm733_vm2, %v3749_v47 }
  0xcd   : > { %v1027_v30 = vpop.f32.mrf.mxu1 }
  0xce   : > { %v3758_v13 = vadd.f32 %v1027_v30, %v798_v42  ;;  %v1170_v30 = vrot.slane %v3314_v24, 5 }
  0xcf   : > { %v3760_v53 = vpop.f32.mrf.mxu2 }
  0xd0   : > { %2820 = vmatmul.msk.bf16.gmra.mxu3 %vm733_vm2, %v3670_v61  ;;  %v1171_v24 = vsel %vm3597_vm6, %v2762_v7, %v1170_v30  ;;  %v3008_v7 = vld [vmem:[%s4543_s1 + $0x50] sm:$0xff]  ;;  %v3876_v61 = vld [vmem:[%s3238_s30 + $0x9c] sm:$0xff] }
  0xd1   : > { %1817 = vmatpush.bf16.msra.mxu1 %v3008_v7  ;;  %4633 = vst [vmem:[#allocation39_spill] sm:$0xff] %v3876_v61 }
  0xd3   : > { %v801_v22 = vpop.f32.mrf.mxu0  ;;  %v3768_v43 = vpop.f32.mrf.mxu3 }
  0xd4   : > { %4624 = vst [vmem:[#allocation30_spill] sm:$0xff] %v3768_v43 }
  0xd5   : > { %v1030_v8 = vpop.f32.mrf.mxu1 }
  0xd6   : > { %2848 = vmatmul.msk.bf16.gmra.mxu0 %vm733_vm2, %v3310_v20  ;;  %v3775_v32 = vadd.f32 %v1030_v8, %v801_v22  ;;  %v1172_v22 = vrot.slane %v1170_v30, 4  ;;  %v3847_v20 = vld [vmem:[%s3238_s30 + $0x90] sm:$0xff] }
  0xd7   : > { %v3777_v42 = vpop.f32.mrf.mxu2  ;;  %4631 = vst [vmem:[#allocation37_spill] sm:$0xff] %v3847_v20 }
  0xd8   : > { %2749 = vmatmul.msk.bf16.gmra.mxu1 %vm733_vm2, %v3771_v14  ;;  %v1174_v31 = vsel %vm3597_vm6, %v1172_v22, %v1173_v63  ;;  %v3012_v63 = vld [vmem:[%s4543_s1 + $0x70] sm:$0xff] }
  0xd9   : > { %2131 = vmatpush.bf16.msra.mxu3 %v3012_v63 }
  0xdb   : > { %v803_v59 = vpop.f32.mrf.mxu0  ;;  %v3784_v54 = vpop.f32.mrf.mxu3 }
  0xdc   : > { %4626 = vst [vmem:[#allocation32_spill] sm:$0xff] %v3784_v54  ;;  %2789 = vmatmul.msk.bf16.gmra.mxu2 %vm733_vm2, %v3781_v45 }
  0xdd   : > { %v1032_v16 = vpop.f32.mrf.mxu1 }
  0xde   : > { %v3790_v8 = vadd.f32 %v1032_v16, %v803_v59  ;;  %v1250_v59 = vunpack.c.l.b16 %v1171_v24  ;;  %v1251_v16 = vunpack.c.l.b16 %v1174_v31  ;;  %v1177_v31 = vrot.slane %v3372_v46, 5 }
  0xdf   : > { %v3792_v43 = vpop.f32.mrf.mxu2 }
  0xe0   : > { %2821 = vmatmul.msk.bf16.gmra.mxu3 %vm733_vm2, %v3690_v34  ;;  %v3822_v24 = vpack.c.b16 %v1251_v16, %v1250_v59  ;;  %v2763_v59 = vrot.slane %v3365_v36, 9  ;;  %v1179_v16 = vrot.slane %v1177_v31, 4 }
  0xe2   : > { %v1178_v7 = vsel %vm3597_vm6, %v2763_v59, %v1177_v31 }
  0xe3   : > { %v806_v17 = vpop.f32.mrf.mxu0  ;;  %v3800_v54 = vpop.f32.mrf.mxu3  ;;  %v1252_v36 = vunpack.c.l.b16 %v1178_v7  ;;  %v2764_v7 = vrot.slane %v3428_v62, 9 }
  0xe4   : > { %4627 = vst [vmem:[#allocation33_spill] sm:$0xff] %v3800_v54  ;;  %v1180_v54 = vrot.slane %v3377_v49, 5 }
  0xe5   : > { %v1035_v52 = vpop.f32.mrf.mxu1 }
  0xe6   : > { %2849 = vmatmul.msk.bf16.gmra.mxu0 %vm733_vm2, %v3367_v37  ;;  %v3810_v30 = vadd.f32 %v1035_v52, %v806_v17 }
  0xe7   : > { %v3818_v22 = vpop.f32.mrf.mxu2 }
  0xe8   : > { %2750 = vmatmul.msk.bf16.gmra.mxu1 %vm733_vm2, %v3806_v28 }
  0xeb   : > { %v808_v52 = vpop.f32.mrf.mxu0  ;;  %v3825_v17 = vpop.f32.mrf.mxu3 }
  0xec   : > { %4629 = vst [vmem:[#allocation35_spill] sm:$0xff] %v3825_v17  ;;  %2790 = vmatmul.msk.bf16.gmra.mxu2 %vm733_vm2, %v3822_v24  ;;  %v1181_v17 = vsel %vm3597_vm6, %v1179_v16, %v1180_v54  ;;  %v1184_v54 = vrot.slane %v3442_v29, 5 }
  0xed   : > { %v1037_v37 = vpop.f32.mrf.mxu1  ;;  %v1253_v19 = vunpack.c.l.b16 %v1181_v17  ;;  %v1187_v17 = vrot.slane %v3448_v35, 5 }
  0xee   : > { %v3834_v46 = vadd.f32 %v1037_v37, %v808_v52 }
  0xef   : > { %v3836_v63 = vpop.f32.mrf.mxu2  ;;  %v3857_v31 = vpack.c.b16 %v1253_v19, %v1252_v36  ;;  %v1185_v36 = vsel %vm3597_vm6, %v2764_v7, %v1184_v54 }
  0xf0   : > { %2822 = vmatmul.msk.bf16.gmra.mxu3 %vm733_vm2, %v3709_v5  ;;  %v1254_v62 = vunpack.c.l.b16 %v1185_v36  ;;  %v4634_v36 = vld [vmem:[#allocation18_spill] sm:$0xff] }
  0xf3   : > { %v811_v34 = vpop.f32.mrf.mxu0  ;;  %v3844_v49 = vpop.f32.mrf.mxu3 }
  0xf4   : > { %4630 = vst [vmem:[#allocation36_spill] sm:$0xff] %v3844_v49 }
  0xf5   : > { %v1040_v37 = vpop.f32.mrf.mxu1 }
  0xf6   : > { %2850 = vmatmul.msk.bf16.gmra.mxu0 %vm733_vm2, %v3437_v23  ;;  %v3851_v52 = vadd.f32 %v1040_v37, %v811_v34  ;;  %v1186_v37 = vrot.slane %v1184_v54, 4 }
  0xf7   : > { %v3853_v5 = vpop.f32.mrf.mxu2 }
  0xf8   : > { %2751 = vmatmul.msk.bf16.gmra.mxu1 %vm733_vm2, %v3847_v20  ;;  %v1188_v19 = vsel %vm3597_vm6, %v1186_v37, %v1187_v17  ;;  %v1191_v17 = vrot.slane %v3513_v10, 5 }
  0xfb   : > { %v813_v59 = vpop.f32.mrf.mxu0  ;;  %v3860_v16 = vpop.f32.mrf.mxu3 }
  0xfc   : > { %4632 = vst [vmem:[#allocation38_spill] sm:$0xff] %v3860_v16  ;;  %2791 = vmatmul.msk.bf16.gmra.mxu2 %vm733_vm2, %v3857_v31 }
  0xfd   : > { %v1042_v34 = vpop.f32.mrf.mxu1 }
  0xfe   : > { %v3866_v49 = vadd.f32 %v1042_v34, %v813_v59  ;;  %v1255_v59 = vunpack.c.l.b16 %v1188_v19  ;;  %v4635_v19 = vld [vmem:[#allocation16_spill] sm:$0xff] }
  0xff   : > { %v1353_v23 = vpop.f32.mrf.mxu2 }
 0x100   : > { %2823 = vmatmul.msk.bf16.gmra.mxu3 %vm733_vm2, %v3739_v6  ;;  %v1433_v29 = vadd.f32 %v1353_v23, %v3713_v15  ;;  %v3887_v54 = vpack.c.b16 %v1255_v59, %v1254_v62 }
 0x103   : > { %v1667_v16 = vpop.f32.mrf.mxu0  ;;  %v1499_v35 = vpop.f32.mrf.mxu3 }
 0x104   : > { %v1579_v11 = vadd.f32 %v1499_v35, %v1433_v29  ;;  %v1193_v35 = vrot.slane %v1191_v17, 4 }
 0x105   : > { %v3878_v34 = vpop.f32.mrf.mxu1 }
 0x106   : > { %2851 = vmatmul.msk.bf16.gmra.mxu0 %vm733_vm2, %v3508_v48  ;;  %v3882_v6 = vadd.f32 %v1667_v16, %v1579_v11  ;;  %v1194_v11 = vrot.slane %v4634_v36, 5 }
 0x107   : > { %v1355_v23 = vpop.f32.mrf.mxu2 }
 0x108   : > { %v1434_v15 = vadd.f32 %v1355_v23, %v3726_v12  ;;  %2752 = vmatmul.msk.bf16.gmra.mxu1 %vm733_vm2, %v3876_v61  ;;  %v2765_v12 = vrot.slane %v4635_v19, 9  ;;  %v3906_v19 = vld [vmem:[%s3238_s30 + $0xa8] sm:$0xff] }
 0x109   : > { %4637 = vst [vmem:[#allocation16_spill] sm:$0xff] %v3906_v19 }
 0x10a   : > { %v1192_v59 = vsel %vm3597_vm6, %v2765_v12, %v1191_v17 }
 0x10b   : > { %v1669_v7 = vpop.f32.mrf.mxu0  ;;  %v1501_v37 = vpop.f32.mrf.mxu3 }
 0x10c   : > { %v1580_v29 = vadd.f32 %v1501_v37, %v1434_v15  ;;  %2792 = vmatmul.msk.bf16.gmra.mxu2 %vm733_vm2, %v3887_v54  ;;  %v1195_v15 = vsel %vm3597_vm6, %v1193_v35, %v1194_v11  ;;  %v3065_v35 = vld [vmem:[%s3238_s30 + $0x88] sm:$0xf] }
 0x10d   : > { %v3893_v16 = vpop.f32.mrf.mxu1 }
 0x10e   : > { %v3896_v23 = vadd.f32 %v1669_v7, %v1580_v29  ;;  %v1256_v7 = vunpack.c.l.b16 %v1192_v59  ;;  %v1257_v29 = vunpack.c.l.b16 %v1195_v15 }
 0x10f   : > { %v1358_v62 = vpop.f32.mrf.mxu2 }
 0x110   : > { %4636 = vst [vmem:[#allocation18_spill] sm:$0xff] %v3896_v23  ;;  %2824 = vmatmul.msk.bf16.gmra.mxu3 %vm733_vm2, %v3771_v14  ;;  %v1435_v10 = vadd.f32 %v1358_v62, %v3743_v25  ;;  %v3917_v11 = vpack.c.b16 %v1257_v29, %v1256_v7  ;;  %v1198_v62 = vrot.slane %v3065_v35, 5 }
 0x112   : > { %4639 = vst [vmem:[#allocation41_spill] sm:$0xff] %v3917_v11 }
 0x113   : > { %v1672_v37 = vpop.f32.mrf.mxu0  ;;  %v1504_v36 = vpop.f32.mrf.mxu3 }
 0x114   : > { %v1581_v48 = vadd.f32 %v1504_v36, %v1435_v10  ;;  %v3066_v36 = vld [vmem:[%s3238_s30 + $0x8c] sm:$0x1] }
 0x115   : > { %v3908_v23 = vpop.f32.mrf.mxu1 }
 0x116   : > { %2852 = vmatmul.msk.bf16.gmra.mxu0 %vm733_vm2, %v3578_v58  ;;  %v3912_v25 = vadd.f32 %v1672_v37, %v1581_v48  ;;  %v1201_v48 = vrot.slane %v3066_v36, 5  ;;  %v3067_v58 = vld [vmem:[%s3238_s30 + $0x84] sm:$0xf] }
 0x117   : > { %v1360_v17 = vpop.f32.mrf.mxu2 }
 0x118   : > { %4638 = vst [vmem:[#allocation40_spill] sm:$0xff] %v3912_v25  ;;  %v1436_v12 = vadd.f32 %v1360_v17, %v3758_v13  ;;  %2753 = vmatmul.msk.bf16.gmra.mxu1 %vm733_vm2, %v3906_v19  ;;  %v2766_v13 = vrot.slane %v3067_v58, 9  ;;  %v1200_v17 = vrot.slane %v1198_v62, 4  ;;  %v3936_v58 = vld [vmem:[%s3238_s30 + $0xb4] sm:$0xff] }
 0x11a   : > { %v1202_v35 = vsel %vm3597_vm6, %v1200_v17, %v1201_v48  ;;  %v3068_v17 = vld [vmem:[%s3238_s30 + $0x94] sm:$0xf] }
 0x11b   : > { %v1674_v10 = vpop.f32.mrf.mxu0  ;;  %v1506_v59 = vpop.f32.mrf.mxu3 }
 0x11c   : > { %v1582_v15 = vadd.f32 %v1506_v59, %v1436_v12  ;;  %2793 = vmatmul.msk.bf16.gmra.mxu2 %vm733_vm2, %v3917_v11  ;;  %v1199_v12 = vsel %vm3597_vm6, %v2766_v13, %v1198_v62 }
 0x11d   : > { %v3923_v37 = vpop.f32.mrf.mxu1 }
 0x11e   : > { %v3926_v14 = vadd.f32 %v1674_v10, %v1582_v15  ;;  %v1258_v10 = vunpack.c.l.b16 %v1199_v12  ;;  %v1259_v15 = vunpack.c.l.b16 %v1202_v35 }
 0x11f   : > { %v1363_v7 = vpop.f32.mrf.mxu2 }
 0x120   : > { %4640 = vst [vmem:[#allocation42_spill] sm:$0xff] %v3926_v14  ;;  %2825 = vmatmul.msk.bf16.gmra.mxu3 %vm733_vm2, %v3806_v28  ;;  %v1437_v29 = vadd.f32 %v1363_v7, %v3775_v32  ;;  %v4641_v28 = vld [vmem:[#allocation6_spill] sm:$0xff]  ;;  %v3947_v48 = vpack.c.b16 %v1259_v15, %v1258_v10  ;;  %v1205_v7 = vrot.slane %v3068_v17, 5 }
 0x122   : > { %4643 = vst [vmem:[#allocation44_spill] sm:$0xff] %v3947_v48 }
 0x123   : > { %v1677_v59 = vpop.f32.mrf.mxu0  ;;  %v1509_v36 = vpop.f32.mrf.mxu3 }
 0x124   : > { %v1583_v11 = vadd.f32 %v1509_v36, %v1437_v29  ;;  %v3069_v36 = vld [vmem:[%s3238_s30 + $0x98] sm:$0x1] }
 0x125   : > { %v3938_v14 = vpop.f32.mrf.mxu1 }
 0x126   : > { %2853 = vmatmul.msk.bf16.gmra.mxu0 %vm733_vm2, %v4641_v28  ;;  %v3942_v32 = vadd.f32 %v1677_v59, %v1583_v11  ;;  %v1208_v28 = vrot.slane %v3069_v36, 5  ;;  %v3070_v59 = vld [vmem:[%s3238_s30 + $0x90] sm:$0xf] }
 0x127   : > { %v1365_v62 = vpop.f32.mrf.mxu2 }
 0x128   : > { %4642 = vst [vmem:[#allocation43_spill] sm:$0xff] %v3942_v32  ;;  %v1438_v13 = vadd.f32 %v1365_v62, %v3790_v8  ;;  %2754 = vmatmul.msk.bf16.gmra.mxu1 %vm733_vm2, %v3936_v58  ;;  %v2767_v32 = vrot.slane %v3070_v59, 9  ;;  %v1207_v8 = vrot.slane %v1205_v7, 4 }
 0x12a   : > { %v1206_v15 = vsel %vm3597_vm6, %v2767_v32, %v1205_v7 }
 0x12b   : > { %v1679_v29 = vpop.f32.mrf.mxu0  ;;  %v1511_v12 = vpop.f32.mrf.mxu3 }
 0x12c   : > { %v1584_v35 = vadd.f32 %v1511_v12, %v1438_v13  ;;  %2794 = vmatmul.msk.bf16.gmra.mxu2 %vm733_vm2, %v3947_v48  ;;  %v1209_v13 = vsel %vm3597_vm6, %v1207_v8, %v1208_v28  ;;  %v1260_v48 = vunpack.c.l.b16 %v1206_v15  ;;  %v4647_v28 = vld [vmem:[#allocation9_spill] sm:$0xff] }
 0x12d   : > { %v3953_v11 = vpop.f32.mrf.mxu1  ;;  %v1261_v59 = vunpack.c.l.b16 %v1209_v13  ;;  %v1212_v7 = vrot.slane %v4647_v28, 5  ;;  %v4648_v13 = vld [vmem:[#allocation10_spill] sm:$0xff] }
 0x12e   : > { %v3956_v62 = vadd.f32 %v1679_v29, %v1584_v35  ;;  %v4644_v35 = vld [vmem:[#allocation8_spill] sm:$0xff] }
 0x12f   : > { %v1368_v25 = vpop.f32.mrf.mxu2  ;;  %v3972_v32 = vpack.c.b16 %v1261_v59, %v1260_v48 }
 0x130   : > { %2826 = vmatmul.msk.bf16.gmra.mxu3 %vm733_vm2, %v3847_v20  ;;  %v1439_v10 = vadd.f32 %v1368_v25, %v3810_v30 }
 0x131   : > { %4646 = vst [vmem:[#allocation46_spill] sm:$0xff] %v3972_v32 }
 0x133   : > { %v1682_v17 = vpop.f32.mrf.mxu0  ;;  %v1514_v12 = vpop.f32.mrf.mxu3 }
 0x134   : > { %v1585_v36 = vadd.f32 %v1514_v12, %v1439_v10  ;;  %v1215_v12 = vrot.slane %v4648_v13, 5 }
 0x135   : > { %v3965_v29 = vpop.f32.mrf.mxu1 }
 0x136   : > { %2854 = vmatmul.msk.bf16.gmra.mxu0 %vm733_vm2, %v4644_v35  ;;  %v3969_v20 = vadd.f32 %v1682_v17, %v1585_v36  ;;  %v3071_v36 = vld [vmem:[%s3238_s30 + $0x9c] sm:$0xf] }
 0x137   : > { %v1370_v30 = vpop.f32.mrf.mxu2  ;;  %v2768_v35 = vrot.slane %v3071_v36, 9 }
 0x138   : > { %4645 = vst [vmem:[#allocation45_spill] sm:$0xff] %v3969_v20  ;;  %v1440_v25 = vadd.f32 %v1370_v30, %v3834_v46  ;;  %2872 = vmatmul.msk.bf16.vlgmr.msra.gmra.mxu1 %vm733_vm2, %v3626_v9  ;;  %v1214_v46 = vrot.slane %v1212_v7, 4 }
 0x139   : > { %v1213_v30 = vsel %vm3597_vm6, %v2768_v35, %v1212_v7  ;;  %v4653_v35 = vld [vmem:[#allocation14_spill] sm:$0xff] }
 0x13a   : > { %v1219_v7 = vrot.slane %v4653_v35, 5 }
 0x13b   : > { %v1684_v8 = vpop.f32.mrf.mxu0  ;;  %v1516_v10 = vpop.f32.mrf.mxu3 }
 0x13c   : > { %v1586_v15 = vadd.f32 %v1516_v10, %v1440_v25  ;;  %2795 = vmatmul.msk.bf16.gmra.mxu2 %vm733_vm2, %v3972_v32  ;;  %v1216_v25 = vsel %vm3597_vm6, %v1214_v46, %v1215_v12  ;;  %v1262_v32 = vunpack.c.l.b16 %v1213_v30  ;;  %v4654_v30 = vld [vmem:[#allocation15_spill] sm:$0xff] }
 0x13d   : > { %v3980_v17 = vpop.f32.mrf.mxu1  ;;  %v1263_v36 = vunpack.c.l.b16 %v1216_v25  ;;  %v1222_v25 = vrot.slane %v4654_v30, 5 }
 0x13e   : > { %v3983_v48 = vadd.f32 %v1684_v8, %v1586_v15  ;;  %v4650_v8 = vld [vmem:[#allocation13_spill] sm:$0xff] }
 0x13f   : > { %v1373_v59 = vpop.f32.mrf.mxu2 }
 0x140   : > { %4649 = vst [vmem:[#allocation9_spill] sm:$0xff] %v3983_v48  ;;  %2827 = vmatmul.msk.bf16.gmra.mxu3 %vm733_vm2, %v3876_v61  ;;  %v1441_v9 = vadd.f32 %v1373_v59, %v3851_v52  ;;  %v3999_v59 = vpack.c.b16 %v1263_v36, %v1262_v32 }
 0x142   : > { %4652 = vst [vmem:[#allocation47_spill] sm:$0xff] %v3999_v59 }
 0x143   : > { %v1687_v28 = vpop.f32.mrf.mxu0  ;;  %v1519_v10 = vpop.f32.mrf.mxu3 }
 0x144   : > { %v1587_v13 = vadd.f32 %v1519_v10, %v1441_v9  ;;  %v4655_v10 = vld [vmem:[#allocation12_spill] sm:$0xff] }
 0x145   : > { %v3992_v20 = vpop.f32.mrf.mxu1 }
 0x146   : > { %2855 = vmatmul.msk.bf16.gmra.mxu0 %vm733_vm2, %v4650_v8  ;;  %v3996_v15 = vadd.f32 %v1687_v28, %v1587_v13  ;;  %v2769_v13 = vrot.slane %v4655_v10, 9 }
 0x147   : > { %v1375_v61 = vpop.f32.mrf.mxu2 }
 0x148   : > { %4651 = vst [vmem:[#allocation10_spill] sm:$0xff] %v3996_v15  ;;  %v1442_v52 = vadd.f32 %v1375_v61, %v3866_v49  ;;  %2873 = vmatmul.msk.bf16.gmra.mxu1 %vm733_vm2, %v3645_v39  ;;  %v1221_v61 = vrot.slane %v1219_v7, 4  ;;  %v1046_v49 = vadd.f32 %v3878_v34, %v3692_v18  ;;  %v1220_v35 = vsel %vm3597_vm6, %v2769_v13, %v1219_v7 }
 0x149   : > { %v1264_v8 = vunpack.c.l.b16 %v1220_v35 }
 0x14b   : > { %v1689_v12 = vpop.f32.mrf.mxu0  ;;  %v1521_v46 = vpop.f32.mrf.mxu3 }
 0x14c   : > { %v1588_v9 = vadd.f32 %v1521_v46, %v1442_v52  ;;  %2796 = vmatmul.msk.bf16.gmra.mxu2 %vm733_vm2, %v3999_v59  ;;  %v1223_v46 = vsel %vm3597_vm6, %v1221_v61, %v1222_v25  ;;  %v4033_v25 = vld [vmem:[%s3238_s30 + $0xc0] sm:$0xf]  ;;  %v4036_v61 = vld [vmem:[%s3238_s30 + $0xc4] sm:$0xf] }
 0x14d   : > { %v4007_v28 = vpop.f32.mrf.mxu1  ;;  %v1265_v18 = vunpack.c.l.b16 %v1223_v46  ;;  %4660 = vst [vmem:[#allocation48_spill] sm:$0xff] %v4033_v25 }
 0x14e   : > { %v4012_v32 = vadd.f32 %v1689_v12, %v1588_v9  ;;  %v1048_v12 = vadd.f32 %v3893_v16, %v3700_v26  ;;  %v4657_v9 = vld [vmem:[#allocation20_spill] sm:$0xff]  ;;  %4661 = vst [vmem:[#allocation49_spill] sm:$0xff] %v4036_v61  ;;  %v1612_v16 = vshrl.u32 %v4033_v25, 16 }
 0x14f   : > { %v1378_v36 = vpop.f32.mrf.mxu2 }
 0x150   : > { %4656 = vst [vmem:[#allocation14_spill] sm:$0xff] %v4012_v32  ;;  %2828 = vmatmul.msk.bf16.gmra.mxu3 %vm733_vm2, %v3906_v19  ;;  %v1443_v52 = vadd.f32 %v1378_v36, %v1046_v49  ;;  %v4028_v36 = vpack.c.b16 %v1265_v18, %v1264_v8  ;;  %v1625_v8 = vshrl.u32 %v4036_v61, 16  ;;  %v4663_v18 = vld [vmem:[#allocation22_spill] sm:$0xff]  ;;  %v1614_v59 = vrot.slane %v1612_v16, 4 }
 0x152   : > { %4659 = vst [vmem:[#allocation12_spill] sm:$0xff] %v4028_v36 }
 0x153   : > { %v1692_v30 = vpop.f32.mrf.mxu0  ;;  %v1524_v10 = vpop.f32.mrf.mxu3 }
 0x154   : > { %v1589_v15 = vadd.f32 %v1524_v10, %v1443_v52  ;;  %v4662_v52 = vld [vmem:[#allocation21_spill] sm:$0xff] }
 0x155   : > { %v4020_v34 = vpop.f32.mrf.mxu1  ;;  %v1226_v35 = vrot.slane %v4662_v52, 5  ;;  %v4664_v52 = vld [vmem:[#allocation19_spill] sm:$0xff] }
 0x156   : > { %2856 = vmatmul.msk.bf16.gmra.mxu0 %vm733_vm2, %v4657_v9  ;;  %v4026_v49 = vadd.f32 %v1692_v30, %v1589_v15  ;;  %v1615_v15 = vshll.u32 %v4033_v25, 16  ;;  %v1621_v30 = vshll.u32 %v4036_v61, 16  ;;  %v2770_v9 = vrot.slane %v4664_v52, 9 }
 0x157   : > { %v1380_v7 = vpop.f32.mrf.mxu2  ;;  %v1228_v19 = vrot.slane %v1226_v35, 4 }
 0x158   : > { %4658 = vst [vmem:[#allocation15_spill] sm:$0xff] %v4026_v49  ;;  %v1444_v13 = vadd.f32 %v1380_v7, %v1048_v12  ;;  %2874 = vmatmul.msk.bf16.gmra.mxu1 %vm733_vm2, %v3667_v51  ;;  %v1229_v12 = vrot.slane %v4663_v18, 5  ;;  %v1051_v49 = vadd.f32 %v3908_v23, %v3702_v1  ;;  %v1617_v61 = vrot.slane %v1615_v15, 5  ;;  %v4056_v18 = vld [vmem:[%s3238_s30 + $0xc8] sm:$0x1] }
 0x159   : > { %v1623_v48 = vrot.slane %v1621_v30, 5  ;;  %v1227_v52 = vsel %vm3597_vm6, %v2770_v9, %v1226_v35  ;;  %v1631_v16 = vshll.u32 %v4056_v18, 16 }
 0x15a   : > { %v1266_v30 = vunpack.c.l.b16 %v1227_v52  ;;  %v4082_v52 = vld [vmem:[%s3238_s30 + $0xc0] sm:$0xff] }
 0x15b   : > { %v1694_v46 = vpop.f32.mrf.mxu0  ;;  %v1526_v26 = vpop.f32.mrf.mxu3 }
 0x15c   : > { %v1590_v10 = vadd.f32 %v1526_v26, %v1444_v13  ;;  %2797 = vmatmul.msk.bf16.gmra.mxu2 %vm733_vm2, %v4028_v36  ;;  %v1627_v13 = vrot.slane %v1625_v8, 4  ;;  %v1230_v36 = vsel %vm3597_vm6, %v1228_v19, %v1229_v12 }
 0x15d   : > { %v4046_v7 = vpop.f32.mrf.mxu1  ;;  %v1267_v8 = vunpack.c.l.b16 %v1230_v36 }
 0x15e   : > { %v4051_v25 = vadd.f32 %v1694_v46, %v1590_v10  ;;  %v1618_v46 = vor.u32 %v1617_v61, %v1614_v59  ;;  %v1628_v10 = vor.u32 %v1627_v13, %v1623_v48  ;;  %v1633_v61 = vrot.slane %v1631_v16, 5 }
 0x15f   : > { %v1383_v32 = vpop.f32.mrf.mxu2  ;;  %v4071_v12 = vpack.c.b16 %v1267_v8, %v1266_v30 }
 0x160   : > { %4665 = vst [vmem:[#allocation21_spill] sm:$0xff] %v4051_v25  ;;  %2829 = vmatmul.msk.bf16.gmra.mxu3 %vm733_vm2, %v3936_v58  ;;  %v1445_v26 = vadd.f32 %v1383_v32, %v1051_v49  ;;  %v1053_v32 = vadd.f32 %v3923_v37, %v3715_v50  ;;  %v1619_v49 = vrot.slane %v1618_v46, 4  ;;  %v1629_v59 = vrot.slane %v1628_v10, 4 }
 0x162   : > { %v1624_v50 = vsel %vm3275_vm3, %v1619_v49, %v1623_v48  ;;  %v1634_v37 = vsel %vm3275_vm3, %v1629_v59, %v1633_v61 }
 0x163   : > { %v1697_v1 = vpop.f32.mrf.mxu0  ;;  %v1529_v23 = vpop.f32.mrf.mxu3  ;;  %v1640_v46 = vunpack.c.l.b16 %v1624_v50  ;;  %v1641_v10 = vunpack.c.l.b16 %v1634_v37  ;;  %v3072_v50 = vld [vmem:[%s3238_s30 + $0x18] sm:$0xff] }
 0x164   : > { %v1591_v15 = vadd.f32 %v1529_v23, %v1445_v26  ;;  %v1056_v23 = vadd.f32 %v3938_v14, %v3728_v40  ;;  %v1058_v40 = vadd.f32 %v3953_v11, %v3745_v0  ;;  %v1061_v0 = vadd.f32 %v3965_v29, %v3760_v53 }
 0x165   : > { %v4063_v25 = vpop.f32.mrf.mxu1  ;;  %v4092_v30 = vpack.c.b16 %v1641_v10, %v1640_v46 }
 0x166   : > { %2857 = vmatmul.msk.bf16.gmra.mxu0 %vm733_vm2, %v3614_v3  ;;  %v4069_v9 = vadd.f32 %v1697_v1, %v1591_v15 }
 0x167   : > { %v1385_v19 = vpop.f32.mrf.mxu2 }
 0x168   : > { %v1446_v35 = vadd.f32 %v1385_v19, %v1053_v32  ;;  %2875 = vmatmul.msk.bf16.gmra.mxu1 %vm733_vm2, %v3687_v27 }
 0x16b   : > { %v1699_v36 = vpop.f32.mrf.mxu0  ;;  %v1531_v13 = vpop.f32.mrf.mxu3 }
 0x16c   : > { %v1592_v26 = vadd.f32 %v1531_v13, %v1446_v35  ;;  %2798 = vmatmul.msk.bf16.gmra.mxu2 %vm733_vm2, %v4071_v12 }
 0x16d   : > { %v4084_v1 = vpop.f32.mrf.mxu1 }
 0x16e   : > { %v4088_v16 = vadd.f32 %v1699_v36, %v1592_v26 }
 0x16f   : > { %v1388_v15 = vpop.f32.mrf.mxu2 }
 0x170   : > { %2830 = vmatmul.msk.bf16.gmra.mxu3 %vm733_vm2, %v4082_v52  ;;  %v1447_v48 = vadd.f32 %v1388_v15, %v1056_v23 }
 0x173   : > { %v1702_v8 = vpop.f32.mrf.mxu0  ;;  %v1534_v32 = vpop.f32.mrf.mxu3 }
 0x174   : > { %v1593_v19 = vadd.f32 %v1534_v32, %v1447_v48 }
 0x175   : > { %v4094_v49 = vpop.f32.mrf.mxu1 }
 0x176   : > { %2858 = vmatmul.msk.bf16.gmra.mxu0 %vm733_vm2, %v4092_v30  ;;  %v4100_v14 = vadd.f32 %v1702_v8, %v1593_v19  ;;  %v1063_v8 = vadd.f32 %v3980_v17, %v3777_v42  ;;  %v1066_v42 = vadd.f32 %v3992_v20, %v3792_v43 }
 0x177   : > { %v1390_v59 = vpop.f32.mrf.mxu2 }
 0x178   : > { %v1448_v61 = vadd.f32 %v1390_v59, %v1058_v40  ;;  %2876 = vmatmul.msk.bf16.gmra.mxu1 %vm733_vm2, %v3749_v47 }
 0x17b   : > { %v1704_v35 = vpop.f32.mrf.mxu0  ;;  %v1536_v36 = vpop.f32.mrf.mxu3 }
 0x17c   : > { %v1594_v13 = vadd.f32 %v1536_v36, %v1448_v61  ;;  %2904 = vmatmul.msk.bf16.vlgmr.msra.gmra.mxu2 %vm733_vm2, %v3072_v50 }
 0x17d   : > { %v4106_v37 = vpop.f32.mrf.mxu1 }
 0x17e   : > { %v4110_v11 = vadd.f32 %v1704_v35, %v1594_v13 }
 0x17f   : > { %v1393_v26 = vpop.f32.mrf.mxu2 }
 0x180   : > { %2932 = vmatmul.msk.bf16.vlgmr.msra.gmra.mxu3 %vm733_vm2, %v3488_v55  ;;  %v1449_v23 = vadd.f32 %v1393_v26, %v1061_v0 }
 0x183   : > { %v1707_v46 = vpop.f32.mrf.mxu0  ;;  %v1539_v10 = vpop.f32.mrf.mxu3 }
 0x184   : > { %v1595_v15 = vadd.f32 %v1539_v10, %v1449_v23 }
 0x185   : > { %v4114_v48 = vpop.f32.mrf.mxu1 }
 0x186   : > { %2961 = vmatmul.msk.bf16.vlgmr.msra.gmra.mxu0 %vm733_vm2, %v3645_v39  ;;  %v4120_v32 = vadd.f32 %v1707_v46, %v1595_v15 }
 0x187   : > { %v1395_v53 = vpop.f32.mrf.mxu2 }
 0x188   : > { %v1450_v29 = vadd.f32 %v1395_v53, %v1063_v8  ;;  %2877 = vmatmul.msk.bf16.gmra.mxu1 %vm733_vm2, %v3781_v45 }
 0x18b   : > { %v1709_v55 = vpop.f32.mrf.mxu0  ;;  %v1541_v19 = vpop.f32.mrf.mxu3 }
 0x18c   : > { %v1596_v40 = vadd.f32 %v1541_v19, %v1450_v29  ;;  %2905 = vmatmul.msk.bf16.gmra.mxu2 %vm733_vm2, %v3574_v21  ;;  %v1068_v21 = vadd.f32 %v4007_v28, %v3818_v22  ;;  %v1071_v22 = vadd.f32 %v4020_v34, %v3836_v63 }
 0x18d   : > { %v4126_v59 = vpop.f32.mrf.mxu1 }
 0x18e   : > { %v4130_v17 = vadd.f32 %v1709_v55, %v1596_v40 }
 0x18f   : > { %v1398_v39 = vpop.f32.mrf.mxu2 }
 0x190   : > { %2933 = vmatmul.msk.bf16.gmra.mxu3 %vm733_vm2, %v3561_v2  ;;  %v1451_v61 = vadd.f32 %v1398_v39, %v1066_v42 }
 0x193   : > { %v1712_v35 = vpop.f32.mrf.mxu0  ;;  %v1544_v36 = vpop.f32.mrf.mxu3 }
 0x194   : > { %v1597_v13 = vadd.f32 %v1544_v36, %v1451_v61 }
 0x195   : > { %v4134_v50 = vpop.f32.mrf.mxu1 }
 0x196   : > { %2962 = vmatmul.msk.bf16.gmra.mxu0 %vm733_vm2, %v3667_v51  ;;  %v4140_v0 = vadd.f32 %v1712_v35, %v1597_v13 }
 0x197   : > { %v1400_v20 = vpop.f32.mrf.mxu2 }
 0x198   : > { %v1452_v43 = vadd.f32 %v1400_v20, %v1068_v21  ;;  %2878 = vmatmul.msk.bf16.gmra.mxu1 %vm733_vm2, %v3822_v24  ;;  %v1078_v21 = vadd.f32 %v4084_v1, %v3720_v44  ;;  %v4667_v1 = vld [vmem:[#allocation27_spill] sm:$0xff] }
 0x19b   : > { %v1714_v2 = vpop.f32.mrf.mxu0  ;;  %v1546_v26 = vpop.f32.mrf.mxu3 }
 0x19c   : > { %v1598_v23 = vadd.f32 %v1546_v26, %v1452_v43  ;;  %2906 = vmatmul.msk.bf16.gmra.mxu2 %vm733_vm2, %v3631_v4  ;;  %v1073_v4 = vadd.f32 %v4046_v7, %v3853_v5  ;;  %v1076_v5 = vadd.f32 %v4063_v25, %v3706_v41  ;;  %v4666_v26 = vld [vmem:[#allocation24_spill] sm:$0xff] }
 0x19d   : > { %v4146_v46 = vpop.f32.mrf.mxu1 }
 0x19e   : > { %v4150_v28 = vadd.f32 %v1714_v2, %v1598_v23  ;;  %v4668_v23 = vld [vmem:[#allocation18_spill] sm:$0xff] }
 0x19f   : > { %v1403_v51 = vpop.f32.mrf.mxu2 }
 0x1a0   : > { %2934 = vmatmul.msk.bf16.gmra.mxu3 %vm733_vm2, %v3628_v56  ;;  %v1453_v10 = vadd.f32 %v1403_v51, %v1071_v22 }
 0x1a3   : > { %v1717_v15 = vpop.f32.mrf.mxu0  ;;  %v1549_v8 = vpop.f32.mrf.mxu3 }
 0x1a4   : > { %v1599_v53 = vadd.f32 %v1549_v8, %v1453_v10  ;;  %v4669_v10 = vld [vmem:[#allocation5_spill] sm:$0xff] }
 0x1a5   : > { %v4154_v29 = vpop.f32.mrf.mxu1 }
 0x1a6   : > { %2963 = vmatmul.msk.bf16.gmra.mxu0 %vm733_vm2, %v3687_v27  ;;  %v4160_v55 = vadd.f32 %v1717_v15, %v1599_v53 }
 0x1a7   : > { %v1405_v63 = vpop.f32.mrf.mxu2 }
 0x1a8   : > { %v1454_v34 = vadd.f32 %v1405_v63, %v1073_v4  ;;  %2879 = vmatmul.msk.bf16.gmra.mxu1 %vm733_vm2, %v3857_v31 }
 0x1ab   : > { %v1719_v56 = vpop.f32.mrf.mxu0  ;;  %v1551_v19 = vpop.f32.mrf.mxu3 }
 0x1ac   : > { %v1600_v40 = vadd.f32 %v1551_v19, %v1454_v34  ;;  %2907 = vmatmul.msk.bf16.gmra.mxu2 %vm733_vm2, %v3650_v38  ;;  %v4670_v34 = vld [vmem:[#allocation29_spill] sm:$0xff] }
 0x1ad   : > { %v4166_v42 = vpop.f32.mrf.mxu1 }
 0x1ae   : > { %v4170_v7 = vadd.f32 %v1719_v56, %v1600_v40  ;;  %v1083_v56 = vadd.f32 %v4106_v37, %v4670_v34 }
 0x1af   : > { %v1408_v27 = vpop.f32.mrf.mxu2 }
 0x1b0   : > { %2935 = vmatmul.msk.bf16.gmra.mxu3 %vm733_vm2, %v3287_v60  ;;  %v1455_v39 = vadd.f32 %v1408_v27, %v1076_v5 }
 0x1b3   : > { %v1722_v61 = vpop.f32.mrf.mxu0  ;;  %v1554_v35 = vpop.f32.mrf.mxu3 }
 0x1b4   : > { %v1601_v36 = vadd.f32 %v1554_v35, %v1455_v39  ;;  %v4672_v39 = vld [vmem:[#allocation41_spill] sm:$0xff] }
 0x1b5   : > { %v1819_v13 = vpop.f32.mrf.mxu1 }
 0x1b6   : > { %2964 = vmatmul.msk.bf16.gmra.mxu0 %vm733_vm2, %v3749_v47  ;;  %v4179_v38 = vadd.f32 %v1819_v13, %v3882_v6  ;;  %v4181_v41 = vadd.f32 %v1722_v61, %v1601_v36  ;;  %v1081_v47 = vadd.f32 %v4094_v49, %v4667_v1  ;;  %v4671_v49 = vld [vmem:[#allocation40_spill] sm:$0xff]  ;;  %v4673_v13 = vld [vmem:[#allocation25_spill] sm:$0xff] }
 0x1b7   : > { %v1410_v25 = vpop.f32.mrf.mxu2 }
 0x1b8   : > { %v1456_v20 = vadd.f32 %v1410_v25, %v1078_v21  ;;  %2880 = vmatmul.msk.bf16.gmra.mxu1 %vm733_vm2, %v3887_v54  ;;  %v4674_v21 = vld [vmem:[#allocation30_spill] sm:$0xff] }
 0x1b9   : > { %v4675_v25 = vld [vmem:[#allocation42_spill] sm:$0xff] }
 0x1bb   : > { %v1724_v60 = vpop.f32.mrf.mxu0  ;;  %v1556_v43 = vpop.f32.mrf.mxu3 }
 0x1bc   : > { %v1602_v2 = vadd.f32 %v1556_v43, %v1456_v20  ;;  %2908 = vmatmul.msk.bf16.gmra.mxu2 %vm733_vm2, %v4666_v26 }
 0x1bd   : > { %v1821_v44 = vpop.f32.mrf.mxu1 }
 0x1be   : > { %v4190_v6 = vadd.f32 %v1821_v44, %v4668_v23  ;;  %v4192_v22 = vadd.f32 %v1724_v60, %v1602_v2  ;;  %v4676_v2 = vld [vmem:[#allocation7_spill] sm:$0xff] }
 0x1bf   : > { %v1413_v51 = vpop.f32.mrf.mxu2 }
 0x1c0   : > { %2936 = vmatmul.msk.bf16.gmra.mxu3 %vm733_vm2, %v4669_v10  ;;  %v1457_v15 = vadd.f32 %v1413_v51, %v1081_v47  ;;  %v4677_v51 = vld [vmem:[#allocation32_spill] sm:$0xff] }
 0x1c1   : > { %v1088_v10 = vadd.f32 %v4126_v59, %v4677_v51 }
 0x1c3   : > { %v1727_v8 = vpop.f32.mrf.mxu0  ;;  %v1559_v53 = vpop.f32.mrf.mxu3 }
 0x1c4   : > { %v1603_v4 = vadd.f32 %v1559_v53, %v1457_v15 }
 0x1c5   : > { %v1824_v63 = vpop.f32.mrf.mxu1 }
 0x1c6   : > { %2965 = vmatmul.msk.bf16.gmra.mxu0 %vm733_vm2, %v3781_v45  ;;  %v4201_v19 = vadd.f32 %v1824_v63, %v4671_v49  ;;  %v4203_v40 = vadd.f32 %v1727_v8, %v1603_v4  ;;  %v1086_v45 = vadd.f32 %v4114_v48, %v4674_v21  ;;  %v4678_v48 = vld [vmem:[#allocation43_spill] sm:$0xff]  ;;  %v4679_v63 = vld [vmem:[#allocation44_spill] sm:$0xff] }
 0x1c7   : > { %v1415_v5 = vpop.f32.mrf.mxu2 }
 0x1c8   : > { %v1458_v27 = vadd.f32 %v1415_v5, %v1083_v56  ;;  %2881 = vmatmul.msk.bf16.gmra.mxu1 %vm733_vm2, %v4672_v39  ;;  %v4680_v5 = vld [vmem:[#allocation26_spill] sm:$0xff] }
 0x1cb   : > { %v1729_v61 = vpop.f32.mrf.mxu0  ;;  %v1561_v35 = vpop.f32.mrf.mxu3 }
 0x1cc   : > { %v1604_v36 = vadd.f32 %v1561_v35, %v1458_v27  ;;  %2909 = vmatmul.msk.bf16.gmra.mxu2 %vm733_vm2, %v4673_v13  ;;  %v4681_v27 = vld [vmem:[#allocation33_spill] sm:$0xff]  ;;  %v4682_v13 = vld [vmem:[#allocation11_spill] sm:$0xff] }
 0x1cd   : > { %v1826_v37 = vpop.f32.mrf.mxu1 }
 0x1ce   : > { %v4212_v20 = vadd.f32 %v1826_v37, %v4675_v25  ;;  %v4214_v60 = vadd.f32 %v1729_v61, %v1604_v36 }
 0x1cf   : > { %v1418_v43 = vpop.f32.mrf.mxu2 }
 0x1d0   : > { %2937 = vmatmul.msk.bf16.gmra.mxu3 %vm733_vm2, %v4676_v2  ;;  %v1459_v26 = vadd.f32 %v1418_v43, %v1086_v45  ;;  %v4683_v2 = vld [vmem:[#allocation35_spill] sm:$0xff] }
 0x1d3   : > { %v1732_v44 = vpop.f32.mrf.mxu0  ;;  %v1564_v1 = vpop.f32.mrf.mxu3 }
 0x1d4   : > { %v1605_v47 = vadd.f32 %v1564_v1, %v1459_v26  ;;  %v1093_v26 = vadd.f32 %v4146_v46, %v4683_v2  ;;  %v4691_v2 = vld [vmem:[#allocation47_spill] sm:$0xff] }
 0x1d5   : > { %v1829_v23 = vpop.f32.mrf.mxu1 }
 0x1d6   : > { %2966 = vmatmul.msk.bf16.gmra.mxu0 %vm733_vm2, %v3822_v24  ;;  %v4223_v15 = vadd.f32 %v1829_v23, %v4678_v48  ;;  %v4225_v8 = vadd.f32 %v1732_v44, %v1605_v47  ;;  %v1091_v24 = vadd.f32 %v4134_v50, %v4681_v27  ;;  %v4684_v50 = vld [vmem:[#allocation45_spill] sm:$0xff]  ;;  %v4685_v23 = vld [vmem:[#allocation46_spill] sm:$0xff] }
 0x1d7   : > { %v1420_v53 = vpop.f32.mrf.mxu2 }
 0x1d8   : > { %v1460_v4 = vadd.f32 %v1420_v53, %v1088_v10  ;;  %2882 = vmatmul.msk.bf16.gmra.mxu1 %vm733_vm2, %v4679_v63  ;;  %v4686_v53 = vld [vmem:[#allocation28_spill] sm:$0xff] }
 0x1db   : > { %v1734_v34 = vpop.f32.mrf.mxu0  ;;  %v1566_v56 = vpop.f32.mrf.mxu3 }
 0x1dc   : > { %v1606_v49 = vadd.f32 %v1566_v56, %v1460_v4  ;;  %2910 = vmatmul.msk.bf16.gmra.mxu2 %vm733_vm2, %v4680_v5  ;;  %v4687_v4 = vld [vmem:[#allocation36_spill] sm:$0xff] }
 0x1dd   : > { %v1831_v59 = vpop.f32.mrf.mxu1 }
 0x1de   : > { %v4234_v61 = vadd.f32 %v1831_v59, %v3956_v62  ;;  %v4236_v35 = vadd.f32 %v1734_v34, %v1606_v49  ;;  %v4688_v34 = vld [vmem:[#allocation9_spill] sm:$0xff] }
 0x1df   : > { %v1423_v36 = vpop.f32.mrf.mxu2  ;;  %v4689_v59 = vld [vmem:[#allocation17_spill] sm:$0xff] }
 0x1e0   : > { %2938 = vmatmul.msk.bf16.gmra.mxu3 %vm733_vm2, %v4682_v13  ;;  %v1461_v37 = vadd.f32 %v1423_v36, %v1091_v24 }
 0x1e3   : > { %v1737_v21 = vpop.f32.mrf.mxu0  ;;  %v1569_v45 = vpop.f32.mrf.mxu3 }
 0x1e4   : > { %v1607_v25 = vadd.f32 %v1569_v45, %v1461_v37 }
 0x1e5   : > { %v1834_v43 = vpop.f32.mrf.mxu1 }
 0x1e6   : > { %2967 = vmatmul.msk.bf16.gmra.mxu0 %vm733_vm2, %v3857_v31  ;;  %v4245_v62 = vadd.f32 %v1834_v43, %v4684_v50  ;;  %v4247_v44 = vadd.f32 %v1737_v21, %v1607_v25  ;;  %v1096_v31 = vadd.f32 %v4154_v29, %v4687_v4  ;;  %v4690_v21 = vld [vmem:[#allocation38_spill] sm:$0xff] }
 0x1e7   : > { %v1425_v1 = vpop.f32.mrf.mxu2  ;;  %v1098_v45 = vadd.f32 %v4166_v42, %v4690_v21  ;;  %v2538_v42 = vld [vmem:[%s4545_s3 + $0x18] sm:$0xff]  ;;  %v4293_v21 = vld [vmem:[%s4544_s2] ss:$0 sm:$0xff] }
 0x1e8   : > { %v1462_v47 = vadd.f32 %v1425_v1, %v1093_v26  ;;  %2883 = vmatmul.msk.bf16.gmra.mxu1 %vm733_vm2, %v4685_v23 }
 0x1e9   : > { %2555 = vmatpush.msrb.mxu1 %v2538_v42 }
 0x1eb   : > { %v1739_v51 = vpop.f32.mrf.mxu0  ;;  %v1571_v10 = vpop.f32.mrf.mxu3 }
 0x1ec   : > { %v1608_v48 = vadd.f32 %v1571_v10, %v1462_v47  ;;  %2911 = vmatmul.msk.bf16.gmra.mxu2 %vm733_vm2, %v4686_v53  ;;  %v4692_v47 = vld [vmem:[#allocation31_spill] sm:$0xff]  ;;  %v4693_v10 = vld [vmem:[#allocation14_spill] sm:$0xff] }
 0x1ed   : > { %v1836_v46 = vpop.f32.mrf.mxu1 }
 0x1ee   : > { %v4256_v56 = vadd.f32 %v1836_v46, %v4688_v34  ;;  %v4258_v49 = vadd.f32 %v1739_v51, %v1608_v48  ;;  %v4694_v46 = vld [vmem:[#allocation23_spill] sm:$0xff] }
 0x1ef   : > { %v1428_v5 = vpop.f32.mrf.mxu2 }
 0x1f0   : > { %2939 = vmatmul.msk.bf16.gmra.mxu3 %vm733_vm2, %v4689_v59  ;;  %v1463_v27 = vadd.f32 %v1428_v5, %v1096_v31 }
 0x1f3   : > { %v1742_v24 = vpop.f32.mrf.mxu0  ;;  %v1574_v36 = vpop.f32.mrf.mxu3 }
 0x1f4   : > { %v1609_v13 = vadd.f32 %v1574_v36, %v1463_v27 }
 0x1f5   : > { %v4262_v37 = vpop.f32.mrf.mxu1 }
 0x1f6   : > { %2968 = vmatmul.msk.bf16.gmra.mxu0 %vm733_vm2, %v3887_v54  ;;  %v4268_v29 = vadd.f32 %v1742_v24, %v1609_v13  ;;  %v4695_v24 = vld [vmem:[#allocation15_spill] sm:$0xff] }
 0x1f7   : > { %v1430_v25 = vpop.f32.mrf.mxu2 }
 0x1f8   : > { %v1464_v43 = vadd.f32 %v1430_v25, %v1098_v45  ;;  %2884 = vmatmul.msk.bf16.gmra.mxu1 %vm733_vm2, %v4691_v2 }
 0x1fb   : > { %v1744_v26 = vpop.f32.mrf.mxu0  ;;  %v1576_v50 = vpop.f32.mrf.mxu3 }
 0x1fc   : > { %v1610_v1 = vadd.f32 %v1576_v50, %v1464_v43  ;;  %2912 = vmatmul.msk.bf16.gmra.mxu2 %vm733_vm2, %v4692_v47  ;;  %v4697_v50 = vld [vmem:[#allocation34_spill] sm:$0xff] }
 0x1fd   : > { %v1841_v51 = vpop.f32.mrf.mxu1 }
 0x1fe   : > { %v4278_v54 = vadd.f32 %v1841_v51, %v4693_v10  ;;  %v4280_v48 = vadd.f32 %v1744_v26, %v1610_v1  ;;  %v4698_v51 = vld [vmem:[#allocation21_spill] sm:$0xff] }
 0x1ff   : > { %v1965_v53 = vpop.f32.mrf.mxu2 }
 0x200   : > { %2940 = vmatmul.msk.bf16.gmra.mxu3 %vm733_vm2, %v4694_v46  ;;  %v2045_v4 = vadd.f32 %v1965_v53, %v4179_v38  ;;  %v4696_v38 = vld [vmem:[#allocation12_spill] sm:$0xff]  ;;  %v4699_v46 = vld [vmem:[#allocation6_spill] sm:$0xff] }
 0x203   : > { %v2285_v31 = vpop.f32.mrf.mxu0  ;;  %v2133_v34 = vpop.f32.mrf.mxu3 }
 0x204   : > { %v2213_v5 = vadd.f32 %v2133_v34, %v2045_v4 }
 0x205   : > { %v1844_v59 = vpop.f32.mrf.mxu1 }
 0x206   : > { %2969 = vmatmul.msk.bf16.gmra.mxu0 %vm733_vm2, %v4672_v39  ;;  %v2365_v27 = vadd.f32 %v2285_v31, %v2213_v5  ;;  %v4288_v36 = vadd.f32 %v1844_v59, %v4695_v24 }
 0x207   : > { %v1967_v13 = vpop.f32.mrf.mxu2 }
 0x208   : > { %v2046_v45 = vadd.f32 %v1967_v13, %v4190_v6  ;;  %2885 = vmatmul.msk.bf16.gmra.mxu1 %vm733_vm2, %v4696_v38  ;;  %v2401_v26 = vadd.f32 %v4293_v21, %v2365_v27 }
 0x20a   : > { %v2433_v53 = vmax.f32 %v2401_v26, 0.0 }
 0x20b   : > { %v2287_v25 = vpop.f32.mrf.mxu0  ;;  %v2135_v43 = vpop.f32.mrf.mxu3 }
 0x20c   : > { %v2214_v39 = vadd.f32 %v2135_v43, %v2046_v45  ;;  %2913 = vmatmul.msk.bf16.gmra.mxu2 %vm733_vm2, %v4697_v50  ;;  %v2465_v59 = vsel %vm733_vm2, %v2433_v53, 0.0  ;;  %v1785_v53 = vrot.slane %v4056_v18, 5 }
 0x20d   : > { %v1846_v1 = vpop.f32.mrf.mxu1 }
 0x20e   : > { %v2366_v47 = vadd.f32 %v2287_v25, %v2214_v39  ;;  %v4302_v42 = vadd.f32 %v1846_v1, %v4698_v51  ;;  %v4700_v25 = vld [vmem:[#allocation49_spill] sm:$0xff] }
 0x20f   : > { %v1970_v10 = vpop.f32.mrf.mxu2  ;;  %v1782_v43 = vrot.slane %v4700_v25, 5  ;;  %v4703_v25 = vld [vmem:[#allocation8_spill] sm:$0xff] }
 0x210   : > { %v2402_v6 = vadd.f32 %v4293_v21, %v2366_v47  ;;  %2941 = vmatmul.msk.bf16.gmra.mxu3 %vm733_vm2, %v4699_v46  ;;  %v2047_v4 = vadd.f32 %v1970_v10, %v4201_v19  ;;  %v4701_v47 = vld [vmem:[#allocation48_spill] sm:$0xff] }
 0x211   : > { %v2859_v51 = vrot.slane %v4701_v47, 9  ;;  %v1784_v10 = vrot.slane %v1782_v43, 4 }
 0x212   : > { %v2434_v31 = vmax.f32 %v2402_v6, 0.0 }
 0x213   : > { %v2290_v34 = vpop.f32.mrf.mxu0  ;;  %v2138_v5 = vpop.f32.mrf.mxu3 }
 0x214   : > { %v2466_v27 = vsel %vm733_vm2, %v2434_v31, 0.0  ;;  %v2215_v24 = vadd.f32 %v2138_v5, %v2047_v4  ;;  %v4702_v31 = vld [vmem:[#allocation37_spill] sm:$0xff] }
 0x215   : > { %v2467_v13 = vadd.f32 %v2466_v27, %v2465_v59  ;;  %v1849_v45 = vpop.f32.mrf.mxu1  ;;  %v1786_v59 = vsel %vm3597_vm6, %v1784_v10, %v1785_v53 }
 0x216   : > { %2970 = vmatmul.msk.bf16.gmra.mxu0 %vm733_vm2, %v4679_v63  ;;  %v2367_v26 = vadd.f32 %v2290_v34, %v2215_v24  ;;  %v4314_v39 = vadd.f32 %v1849_v45, %v4069_v9 }
 0x217   : > { %v1972_v19 = vpop.f32.mrf.mxu2 }
 0x218   : > { %v2403_v50 = vadd.f32 %v4293_v21, %v2367_v26  ;;  %v2048_v1 = vadd.f32 %v1972_v19, %v4212_v20  ;;  %2886 = vmatmul.msk.bf16.gmra.mxu1 %vm733_vm2, %v4071_v12  ;;  %v1783_v20 = vsel %vm3597_vm6, %v2859_v51, %v1782_v43  ;;  %v1793_v19 = vunpack.c.l.b16 %v1786_v59  ;;  %v4704_v59 = vld [vmem:[#allocation39_spill] sm:$0xff] }
 0x21a   : > { %v2435_v6 = vmax.f32 %v2403_v50, 0.0 }
 0x21b   : > { %v2292_v46 = vpop.f32.mrf.mxu0  ;;  %v2140_v63 = vpop.f32.mrf.mxu3 }
 0x21c   : > { %v2468_v4 = vsel %vm733_vm2, %v2435_v6, 0.0  ;;  %v2216_v9 = vadd.f32 %v2140_v63, %v2048_v1  ;;  %2914 = vmatmul.msk.bf16.gmra.mxu2 %vm733_vm2, %v4702_v31 }
 0x21d   : > { %v2469_v34 = vadd.f32 %v2468_v4, %v2467_v13  ;;  %v1851_v5 = vpop.f32.mrf.mxu1  ;;  %v1792_v13 = vunpack.c.l.b16 %v1783_v20 }
 0x21e   : > { %v2368_v27 = vadd.f32 %v2292_v46, %v2216_v9  ;;  %v4330_v18 = vadd.f32 %v1851_v5, %v4088_v16 }
 0x21f   : > { %v1975_v24 = vpop.f32.mrf.mxu2  ;;  %v4337_v10 = vpack.c.b16 %v1793_v19, %v1792_v13 }
 0x220   : > { %v2404_v45 = vadd.f32 %v4293_v21, %v2368_v27  ;;  %2942 = vmatmul.msk.bf16.gmra.mxu3 %vm733_vm2, %v4703_v25  ;;  %v2049_v26 = vadd.f32 %v1975_v24, %v4223_v15  ;;  %v4705_v25 = vld [vmem:[#allocation13_spill] sm:$0xff] }
 0x222   : > { %v2436_v50 = vmax.f32 %v2404_v45, 0.0 }
 0x223   : > { %v2295_v1 = vpop.f32.mrf.mxu0  ;;  %v2143_v43 = vpop.f32.mrf.mxu3 }
 0x224   : > { %v2470_v47 = vsel %vm733_vm2, %v2436_v50, 0.0  ;;  %v2217_v51 = vadd.f32 %v2143_v43, %v2049_v26 }
 0x225   : > { %v2471_v16 = vadd.f32 %v2470_v47, %v2469_v34  ;;  %v1854_v53 = vpop.f32.mrf.mxu1 }
 0x226   : > { %2971 = vmatmul.msk.bf16.gmra.mxu0 %vm733_vm2, %v4685_v23  ;;  %v2369_v6 = vadd.f32 %v2295_v1, %v2217_v51  ;;  %v4342_v46 = vadd.f32 %v1854_v53, %v4100_v14 }
 0x227   : > { %v1977_v15 = vpop.f32.mrf.mxu2 }
 0x228   : > { %v2405_v63 = vadd.f32 %v4293_v21, %v2369_v6  ;;  %v2050_v4 = vadd.f32 %v1977_v15, %v4234_v61  ;;  %2887 = vmatmul.msk.bf16.gmra.mxu1 %vm733_vm2, %v4337_v10 }
 0x22a   : > { %v2437_v9 = vmax.f32 %v2405_v63, 0.0 }
 0x22b   : > { %v2297_v31 = vpop.f32.mrf.mxu0  ;;  %v2145_v5 = vpop.f32.mrf.mxu3 }
 0x22c   : > { %v2472_v34 = vsel %vm733_vm2, %v2437_v9, 0.0  ;;  %v2218_v20 = vadd.f32 %v2145_v5, %v2050_v4  ;;  %2915 = vmatmul.msk.bf16.gmra.mxu2 %vm733_vm2, %v4704_v59  ;;  %v4706_v5 = vld [vmem:[#allocation16_spill] sm:$0xff] }
 0x22d   : > { %v2473_v23 = vadd.f32 %v2472_v34, %v2471_v16  ;;  %v1856_v14 = vpop.f32.mrf.mxu1 }
 0x22e   : > { %v2370_v27 = vadd.f32 %v2297_v31, %v2218_v20  ;;  %v4352_v24 = vadd.f32 %v1856_v14, %v4110_v11  ;;  %v4707_v20 = vld [vmem:[#allocation10_spill] sm:$0xff] }
 0x22f   : > { %v1980_v45 = vpop.f32.mrf.mxu2  ;;  %v1907_v59 = vadd.f32 %v4262_v37, %v4707_v20 }
 0x230   : > { %v2406_v61 = vadd.f32 %v4293_v21, %v2370_v27  ;;  %2943 = vmatmul.msk.bf16.gmra.mxu3 %vm733_vm2, %v4705_v25  ;;  %v2051_v26 = vadd.f32 %v1980_v45, %v4245_v62  ;;  %v4708_v45 = vld [vmem:[#allocation20_spill] sm:$0xff] }
 0x232   : > { %v2438_v13 = vmax.f32 %v2406_v61, 0.0 }
 0x233   : > { %v2300_v19 = vpop.f32.mrf.mxu0  ;;  %v2148_v50 = vpop.f32.mrf.mxu3 }
 0x234   : > { %v2474_v1 = vsel %vm733_vm2, %v2438_v13, 0.0  ;;  %v2219_v43 = vadd.f32 %v2148_v50, %v2051_v26 }
 0x235   : > { %v2475_v47 = vadd.f32 %v2474_v1, %v2473_v23  ;;  %v1859_v51 = vpop.f32.mrf.mxu1 }
 0x236   : > { %2972 = vmatmul.msk.bf16.gmra.mxu0 %vm733_vm2, %v4691_v2  ;;  %v2371_v11 = vadd.f32 %v2300_v19, %v2219_v43  ;;  %v4362_v16 = vadd.f32 %v1859_v51, %v4120_v32  ;;  %v2537_v32 = vld [vmem:[%s4545_s3 + $0x10] sm:$0xff] }
 0x237   : > { %v1982_v53 = vpop.f32.mrf.mxu2  ;;  %2556 = vmatpush.msrb.mxu1 %v2537_v32  ;;  %v4402_v32 = vld [vmem:[%s3238_s30 + $0xd0] sm:$0xf] }
 0x238   : > { %v2407_v6 = vadd.f32 %v4293_v21, %v2371_v11  ;;  %v2052_v62 = vadd.f32 %v1982_v53, %v4256_v56 }
 0x23a   : > { %v2439_v15 = vmax.f32 %v2407_v6, 0.0 }
 0x23b   : > { %v2302_v63 = vpop.f32.mrf.mxu0  ;;  %v2150_v4 = vpop.f32.mrf.mxu3 }
 0x23c   : > { %v2476_v9 = vsel %vm733_vm2, %v2439_v15, 0.0  ;;  %v2220_v31 = vadd.f32 %v2150_v4, %v2052_v62  ;;  %2916 = vmatmul.msk.bf16.gmra.mxu2 %vm733_vm2, %v4706_v5 }
 0x23d   : > { %v2477_v34 = vadd.f32 %v2476_v9, %v2475_v47  ;;  %v1861_v2 = vpop.f32.mrf.mxu1 }
 0x23e   : > { %v2372_v23 = vadd.f32 %v2302_v63, %v2220_v31  ;;  %v4375_v56 = vadd.f32 %v1861_v2, %v4130_v17 }
 0x23f   : > { %v1985_v14 = vpop.f32.mrf.mxu2 }
 0x240   : > { %v2408_v27 = vadd.f32 %v4293_v21, %v2372_v23  ;;  %2944 = vmatmul.msk.bf16.gmra.mxu3 %vm733_vm2, %v4708_v45  ;;  %v2053_v61 = vadd.f32 %v1985_v14, %v1907_v59 }
 0x242   : > { %v2440_v25 = vmax.f32 %v2408_v27, 0.0 }
 0x243   : > { %v2305_v26 = vpop.f32.mrf.mxu0  ;;  %v2153_v13 = vpop.f32.mrf.mxu3 }
 0x244   : > { %v2478_v19 = vsel %vm733_vm2, %v2440_v25, 0.0  ;;  %v2221_v50 = vadd.f32 %v2153_v13, %v2053_v61 }
 0x245   : > { %v2479_v1 = vadd.f32 %v2478_v19, %v2477_v34  ;;  %v1864_v37 = vpop.f32.mrf.mxu1  ;;  %v4399_v34 = vld [vmem:[%s3238_s30 + $0xcc] sm:$0xf] }
 0x246   : > { %2973 = vmatmul.msk.bf16.gmra.mxu0 %vm733_vm2, %v4696_v38  ;;  %v2373_v17 = vadd.f32 %v2305_v26, %v2221_v50  ;;  %v4384_v43 = vadd.f32 %v1864_v37, %v4140_v0  ;;  %v2081_v45 = vshll.u32 %v4399_v34, 16 }
 0x247   : > { %v1987_v47 = vpop.f32.mrf.mxu2 }
 0x248   : > { %v2409_v51 = vadd.f32 %v4293_v21, %v2373_v17  ;;  %v2054_v11 = vadd.f32 %v1987_v47, %v4278_v54 }
 0x24a   : > { %v2441_v53 = vmax.f32 %v2409_v51, 0.0  ;;  %v276_v51 = vld [vmem:[%s3238_s30 + $0xd4] sm:$0x1] }
 0x24b   : > { %v2307_v6 = vpop.f32.mrf.mxu0  ;;  %v2155_v62 = vpop.f32.mrf.mxu3 }
 0x24c   : > { %v2480_v15 = vsel %vm733_vm2, %v2441_v53, 0.0  ;;  %v2222_v63 = vadd.f32 %v2155_v62, %v2054_v11  ;;  %2917 = vmatmul.msk.bf16.gmra.mxu2 %vm733_vm2, %v3936_v58 }
 0x24d   : > { %v2481_v38 = vadd.f32 %v2480_v15, %v2479_v1  ;;  %v1866_v4 = vpop.f32.mrf.mxu1  ;;  %v2083_v1 = vrot.slane %v2081_v45, 5  ;;  %v2948_v45 = vrot.slane %v4399_v34, 9 }
 0x24e   : > { %v2374_v0 = vadd.f32 %v2307_v6, %v2222_v63  ;;  %v4392_v9 = vadd.f32 %v1866_v4, %v4150_v28  ;;  %v2078_v28 = vshrl.u32 %v4399_v34, 16  ;;  %v2097_v63 = vshll.u32 %v276_v51, 16 }
 0x24f   : > { %v1990_v31 = vpop.f32.mrf.mxu2 }
 0x250   : > { %v2410_v5 = vadd.f32 %v4293_v21, %v2374_v0  ;;  %2945 = vmatmul.msk.bf16.gmra.mxu3 %vm733_vm2, %v3614_v3  ;;  %v2055_v54 = vadd.f32 %v1990_v31, %v4288_v36  ;;  %v2087_v3 = vshll.u32 %v4402_v32, 16  ;;  %v2091_v36 = vshrl.u32 %v4402_v32, 16 }
 0x251   : > { %v2080_v50 = vrot.slane %v2078_v28, 4 }
 0x252   : > { %v2442_v2 = vmax.f32 %v2410_v5, 0.0  ;;  %v2089_v37 = vrot.slane %v2087_v3, 5  ;;  %v2093_v17 = vrot.slane %v2091_v36, 4  ;;  %v2251_v36 = vrot.slane %v276_v51, 5 }
 0x253   : > { %v2310_v58 = vpop.f32.mrf.mxu0  ;;  %v2158_v20 = vpop.f32.mrf.mxu3  ;;  %v2084_v62 = vor.u32 %v2083_v1, %v2080_v50 }
 0x254   : > { %v2482_v59 = vsel %vm733_vm2, %v2442_v2, 0.0  ;;  %v2223_v23 = vadd.f32 %v2158_v20, %v2055_v54  ;;  %v2094_v15 = vor.u32 %v2093_v17, %v2089_v37  ;;  %v2099_v54 = vrot.slane %v2097_v63, 5 }
 0x255   : > { %v2483_v14 = vadd.f32 %v2482_v59, %v2481_v38  ;;  %v1869_v27 = vpop.f32.mrf.mxu1  ;;  %v2085_v31 = vrot.slane %v2084_v62, 4  ;;  %v2248_v20 = vrot.slane %v4402_v32, 5 }
 0x256   : > { %2974 = vmatmul.msk.bf16.gmra.mxu0 %vm733_vm2, %v4071_v12  ;;  %v2375_v61 = vadd.f32 %v2310_v58, %v2223_v23  ;;  %v4412_v25 = vadd.f32 %v1869_v27, %v4160_v55  ;;  %v2095_v5 = vrot.slane %v2094_v15, 4 }
 0x257   : > { %v1992_v26 = vpop.f32.mrf.mxu2  ;;  %v2250_v3 = vrot.slane %v2248_v20, 4 }
 0x258   : > { %v2411_v13 = vadd.f32 %v4293_v21, %v2375_v61  ;;  %v2056_v19 = vadd.f32 %v1992_v26, %v4302_v42  ;;  %v2997_v26 = vld [vmem:[%s3238_s30 + $0xcc] sm:$0xff] }
 0x25a   : > { %v2443_v47 = vmax.f32 %v2411_v13, 0.0 }
 0x25b   : > { %v2312_v11 = vpop.f32.mrf.mxu0  ;;  %v2160_v53 = vpop.f32.mrf.mxu3 }
 0x25c   : > { %v2484_v6 = vsel %vm733_vm2, %v2443_v47, 0.0  ;;  %v2224_v12 = vadd.f32 %v2160_v53, %v2056_v19  ;;  %2918 = vmatmul.msk.bf16.gmra.mxu2 %vm733_vm2, %v4082_v52 }
 0x25d   : > { %v2485_v55 = vadd.f32 %v2484_v6, %v2483_v14  ;;  %v2090_v14 = vsel %vm3275_vm3, %v2085_v31, %v2089_v37  ;;  %v2249_v37 = vsel %vm3597_vm6, %v2948_v45, %v2248_v20 }
 0x25e   : > { %v2376_v38 = vadd.f32 %v2312_v11, %v2224_v12  ;;  %v2106_v13 = vunpack.c.l.b16 %v2090_v14  ;;  %v2258_v11 = vunpack.c.l.b16 %v2249_v37 }
 0x25f   : > { %v1995_v42 = vpop.f32.mrf.mxu2 }
 0x260   : > { %v2412_v4 = vadd.f32 %v4293_v21, %v2376_v38  ;;  %2946 = vmatmul.msk.bf16.gmra.mxu3 %vm733_vm2, %v4092_v30  ;;  %v2057_v0 = vadd.f32 %v1995_v42, %v4314_v39  ;;  %v2100_v30 = vsel %vm3275_vm3, %v2095_v5, %v2099_v54 }
 0x261   : > { %v2107_v19 = vunpack.c.l.b16 %v2100_v30 }
 0x262   : > { %v2444_v2 = vmax.f32 %v2412_v4, 0.0 }
 0x263   : > { %v2315_v58 = vpop.f32.mrf.mxu0  ;;  %v2163_v52 = vpop.f32.mrf.mxu3  ;;  %v2108_v47 = vpack.c.b16 %v2107_v19, %v2106_v13 }
 0x264   : > { %v2486_v59 = vsel %vm733_vm2, %v2444_v2, 0.0  ;;  %v2225_v23 = vadd.f32 %v2163_v52, %v2057_v0 }
 0x265   : > { %v2487_v28 = vadd.f32 %v2486_v59, %v2485_v55 }
 0x266   : > { %2975 = vmatmul.msk.bf16.gmra.mxu0 %vm733_vm2, %v4337_v10  ;;  %v2377_v39 = vadd.f32 %v2315_v58, %v2225_v23  ;;  %v2252_v10 = vsel %vm3597_vm6, %v2250_v3, %v2251_v36  ;;  %v2536_v23 = vld [vmem:[%s4545_s3 + $0x8] sm:$0xff] }
 0x267   : > { %v1997_v27 = vpop.f32.mrf.mxu2  ;;  %v2259_v53 = vunpack.c.l.b16 %v2252_v10  ;;  %2557 = vmatpush.msrb.mxu1 %v2536_v23 }
 0x268   : > { %v2413_v32 = vadd.f32 %v4293_v21, %v2377_v39  ;;  %v2058_v61 = vadd.f32 %v1997_v27, %v4330_v18 }
 0x269   : > { %v2260_v57 = vpack.c.b16 %v2259_v53, %v2258_v11 }
 0x26a   : > { %v2445_v50 = vmax.f32 %v2413_v32, 0.0 }
 0x26b   : > { %v2317_v1 = vpop.f32.mrf.mxu0  ;;  %v2165_v33 = vpop.f32.mrf.mxu3 }
 0x26c   : > { %v2488_v34 = vsel %vm733_vm2, %v2445_v50, 0.0  ;;  %v2226_v17 = vadd.f32 %v2165_v33, %v2058_v61  ;;  %2919 = vmatmul.msk.bf16.gmra.mxu2 %vm733_vm2, %v2997_v26 }
 0x26d   : > { %v2489_v51 = vadd.f32 %v2488_v34, %v2487_v28  ;;  %v1871_v34 = vpop.f32.mrf.mxu1 }
 0x26e   : > { %v2378_v18 = vadd.f32 %v2317_v1, %v2226_v17 }
 0x26f   : > { %v2000_v6 = vpop.f32.mrf.mxu2 }
 0x270   : > { %v2414_v12 = vadd.f32 %v4293_v21, %v2378_v18  ;;  %2947 = vmatmul.msk.bf16.gmra.mxu3 %vm733_vm2, %v2108_v47  ;;  %v2059_v55 = vadd.f32 %v2000_v6, %v4342_v46 }
 0x272   : > { %v2446_v62 = vmax.f32 %v2414_v12, 0.0 }
 0x273   : > { %v2320_v15 = vpop.f32.mrf.mxu0  ;;  %v2168_v63 = vpop.f32.mrf.mxu3 }
 0x274   : > { %v2490_v38 = vsel %vm733_vm2, %v2446_v62, 0.0  ;;  %v2227_v42 = vadd.f32 %v2168_v63, %v2059_v55 }
 0x275   : > { %v2491_v4 = vadd.f32 %v2490_v38, %v2489_v51 }
 0x276   : > { %2976 = vmatmul.msk.bf16.gmra.mxu0 %vm733_vm2, %v2260_v57  ;;  %v2379_v0 = vadd.f32 %v2320_v15, %v2227_v42  ;;  %v1874_v15 = vpop.f32.mrf.mxu1 }
 0x277   : > { %v2002_v31 = vpop.f32.mrf.mxu2 }
 0x278   : > { %v2415_v5 = vadd.f32 %v4293_v21, %v2379_v0  ;;  %v2060_v54 = vadd.f32 %v2002_v31, %v4352_v24 }
 0x27a   : > { %v2447_v2 = vmax.f32 %v2415_v5, 0.0 }
 0x27b   : > { %v2322_v58 = vpop.f32.mrf.mxu0  ;;  %v2170_v52 = vpop.f32.mrf.mxu3 }
 0x27c   : > { %v2492_v46 = vsel %vm733_vm2, %v2447_v2, 0.0  ;;  %v2228_v20 = vadd.f32 %v2170_v52, %v2060_v54 }
 0x27d   : > { %v2493_v59 = vadd.f32 %v2492_v46, %v2491_v4 }
 0x27e   : > { %v2380_v28 = vadd.f32 %v2322_v58, %v2228_v20  ;;  %v1876_v46 = vpop.f32.mrf.mxu1 }
 0x27f   : > { %v2005_v14 = vpop.f32.mrf.mxu2 }
 0x280   : > { %v2416_v30 = vadd.f32 %v4293_v21, %v2380_v28  ;;  %v2061_v39 = vadd.f32 %v2005_v14, %v4362_v16 }
 0x282   : > { %v2448_v27 = vmax.f32 %v2416_v30, 0.0  ;;  %v1920_v30 = vadd.f32 %v1871_v34, %v4170_v7 }
 0x283   : > { %v2325_v24 = vpop.f32.mrf.mxu0  ;;  %v2173_v45 = vpop.f32.mrf.mxu3 }
 0x284   : > { %v2494_v3 = vsel %vm733_vm2, %v2448_v27, 0.0  ;;  %v2229_v36 = vadd.f32 %v2173_v45, %v2061_v39 }
 0x285   : > { %v2495_v32 = vadd.f32 %v2494_v3, %v2493_v59 }
 0x286   : > { %v2381_v61 = vadd.f32 %v2325_v24, %v2229_v36 }
 0x287   : > { %v2007_v26 = vpop.f32.mrf.mxu2 }
 0x288   : > { %v2417_v13 = vadd.f32 %v4293_v21, %v2381_v61  ;;  %v2062_v19 = vadd.f32 %v2007_v26, %v4375_v56  ;;  %v1879_v61 = vpop.f32.mrf.mxu1 }
 0x28a   : > { %v2449_v50 = vmax.f32 %v2417_v13, 0.0 }
 0x28b   : > { %v2327_v1 = vpop.f32.mrf.mxu0  ;;  %v2175_v33 = vpop.f32.mrf.mxu3 }
 0x28c   : > { %v2496_v37 = vsel %vm733_vm2, %v2449_v50, 0.0  ;;  %v2230_v10 = vadd.f32 %v2175_v33, %v2062_v19  ;;  %v1921_v19 = vadd.f32 %v1874_v15, %v4181_v41 }
 0x28d   : > { %v2497_v16 = vadd.f32 %v2496_v37, %v2495_v32 }
 0x28e   : > { %v2382_v17 = vadd.f32 %v2327_v1, %v2230_v10 }
 0x28f   : > { %v2010_v47 = vpop.f32.mrf.mxu2 }
 0x290   : > { %v2418_v51 = vadd.f32 %v4293_v21, %v2382_v17  ;;  %v2063_v18 = vadd.f32 %v2010_v47, %v4384_v43 }
 0x292   : > { %v2450_v11 = vmax.f32 %v2418_v51, 0.0  ;;  %v1922_v51 = vadd.f32 %v1876_v46, %v4192_v22 }
 0x293   : > { %v2330_v53 = vpop.f32.mrf.mxu0  ;;  %v2178_v6 = vpop.f32.mrf.mxu3 }
 0x294   : > { %v2498_v12 = vsel %vm733_vm2, %v2450_v11, 0.0  ;;  %v2231_v56 = vadd.f32 %v2178_v6, %v2063_v18  ;;  %v1881_v18 = vpop.f32.mrf.mxu1 }
 0x295   : > { %v2499_v55 = vadd.f32 %v2498_v12, %v2497_v16  ;;  %v1924_v46 = vadd.f32 %v1881_v18, %v4214_v60 }
 0x296   : > { %v2383_v62 = vadd.f32 %v2330_v53, %v2231_v56 }
 0x297   : > { %v2012_v57 = vpop.f32.mrf.mxu2 }
 0x298   : > { %v2419_v63 = vadd.f32 %v4293_v21, %v2383_v62  ;;  %v2064_v38 = vadd.f32 %v2012_v57, %v4392_v9 }
 0x29a   : > { %v2451_v42 = vmax.f32 %v2419_v63, 0.0  ;;  %v2535_v63 = vld [vmem:[%s4545_s3] sm:$0xff] }
 0x29b   : > { %v2332_v4 = vpop.f32.mrf.mxu0  ;;  %v2180_v0 = vpop.f32.mrf.mxu3  ;;  %2558 = vmatpush.msrb.mxu1 %v2535_v63 }
 0x29c   : > { %v2500_v31 = vsel %vm733_vm2, %v2451_v42, 0.0  ;;  %v2232_v43 = vadd.f32 %v2180_v0, %v2064_v38  ;;  %v1923_v38 = vadd.f32 %v1879_v61, %v4203_v40 }
 0x29d   : > { %v2501_v5 = vadd.f32 %v2500_v31, %v2499_v55 }
 0x29e   : > { %v2384_v54 = vadd.f32 %v2332_v4, %v2232_v43  ;;  %v1884_v4 = vpop.f32.mrf.mxu1 }
 0x29f   : > { %v2015_v2 = vpop.f32.mrf.mxu2 }
 0x2a0   : > { %v2420_v58 = vadd.f32 %v4293_v21, %v2384_v54  ;;  %v2065_v52 = vadd.f32 %v2015_v2, %v4412_v25 }
 0x2a2   : > { %v2452_v20 = vmax.f32 %v2420_v58, 0.0 }
 0x2a3   : > { %v2335_v59 = vpop.f32.mrf.mxu0  ;;  %v2183_v23 = vpop.f32.mrf.mxu3 }
 0x2a4   : > { %v2502_v28 = vsel %vm733_vm2, %v2452_v20, 0.0  ;;  %v2233_v9 = vadd.f32 %v2183_v23, %v2065_v52 }
 0x2a5   : > { %v2503_v14 = vadd.f32 %v2502_v28, %v2501_v5 }
 0x2a6   : > { %v2385_v39 = vadd.f32 %v2335_v59, %v2233_v9  ;;  %v1886_v28 = vpop.f32.mrf.mxu1 }
 0x2a7   : > { %v2017_v27 = vpop.f32.mrf.mxu2 }
 0x2a8   : > { %v2421_v24 = vadd.f32 %v4293_v21, %v2385_v39  ;;  %v2066_v45 = vadd.f32 %v2017_v27, %v1920_v30 }
 0x2aa   : > { %v2453_v3 = vmax.f32 %v2421_v24, 0.0 }
 0x2ab   : > { %v2337_v36 = vpop.f32.mrf.mxu0  ;;  %v2185_v32 = vpop.f32.mrf.mxu3 }
 0x2ac   : > { %v2504_v25 = vsel %vm733_vm2, %v2453_v3, 0.0  ;;  %v2234_v26 = vadd.f32 %v2185_v32, %v2066_v45  ;;  %v1925_v45 = vadd.f32 %v1884_v4, %v4225_v8 }
 0x2ad   : > { %v2505_v13 = vadd.f32 %v2504_v25, %v2503_v14 }
 0x2ae   : > { %v2386_v50 = vadd.f32 %v2337_v36, %v2234_v26 }
 0x2af   : > { %v2020_v1 = vpop.f32.mrf.mxu2 }
 0x2b0   : > { %v2422_v33 = vadd.f32 %v4293_v21, %v2386_v50  ;;  %v2067_v7 = vadd.f32 %v2020_v1, %v1921_v19 }
 0x2b2   : > { %v2454_v37 = vmax.f32 %v2422_v33, 0.0  ;;  %v1926_v33 = vadd.f32 %v1886_v28, %v4236_v35 }
 0x2b3   : > { %v2340_v10 = vpop.f32.mrf.mxu0  ;;  %v2188_v16 = vpop.f32.mrf.mxu3 }
 0x2b4   : > { %v2506_v34 = vsel %vm733_vm2, %v2454_v37, 0.0  ;;  %v2235_v17 = vadd.f32 %v2188_v16, %v2067_v7 }
 0x2b5   : > { %v2507_v47 = vadd.f32 %v2506_v34, %v2505_v13  ;;  %v1889_v13 = vpop.f32.mrf.mxu1 }
 0x2b6   : > { %v2387_v11 = vadd.f32 %v2340_v10, %v2235_v17 }
 0x2b7   : > { %v2022_v53 = vpop.f32.mrf.mxu2 }
 0x2b8   : > { %v2423_v6 = vadd.f32 %v4293_v21, %v2387_v11  ;;  %v2068_v41 = vadd.f32 %v2022_v53, %v1922_v51  ;;  %v1927_v11 = vadd.f32 %v1889_v13, %v4247_v44 }
 0x2ba   : > { %v2455_v12 = vmax.f32 %v2423_v6, 0.0 }
 0x2bb   : > { %v2342_v56 = vpop.f32.mrf.mxu0  ;;  %v2190_v55 = vpop.f32.mrf.mxu3 }
 0x2bc   : > { %v2508_v62 = vsel %vm733_vm2, %v2455_v12, 0.0  ;;  %v2236_v57 = vadd.f32 %v2190_v55, %v2068_v41 }
 0x2bd   : > { %v2509_v15 = vadd.f32 %v2508_v62, %v2507_v47  ;;  %v1891_v53 = vpop.f32.mrf.mxu1 }
 0x2be   : > { %v2388_v22 = vadd.f32 %v2342_v56, %v2236_v57 }
 0x2bf   : > { %v2025_v42 = vpop.f32.mrf.mxu2 }
 0x2c0   : > { %v2424_v0 = vadd.f32 %v4293_v21, %v2388_v22  ;;  %v2069_v31 = vadd.f32 %v2025_v42, %v1923_v38  ;;  %v1928_v38 = vadd.f32 %v1891_v53, %v4258_v49 }
 0x2c2   : > { %v2456_v43 = vmax.f32 %v2424_v0, 0.0 }
 0x2c3   : > { %v2345_v5 = vpop.f32.mrf.mxu0  ;;  %v2193_v54 = vpop.f32.mrf.mxu3 }
 0x2c4   : > { %v2510_v2 = vsel %vm733_vm2, %v2456_v43, 0.0  ;;  %v2237_v58 = vadd.f32 %v2193_v54, %v2069_v31 }
 0x2c5   : > { %v2511_v52 = vadd.f32 %v2510_v2, %v2509_v15  ;;  %v1894_v4 = vpop.f32.mrf.mxu1 }
 0x2c6   : > { %v2389_v20 = vadd.f32 %v2345_v5, %v2237_v58 }
 0x2c7   : > { %v2027_v59 = vpop.f32.mrf.mxu2 }
 0x2c8   : > { %v2425_v40 = vadd.f32 %v4293_v21, %v2389_v20  ;;  %v2070_v23 = vadd.f32 %v2027_v59, %v1924_v46 }
 0x2ca   : > { %v2457_v9 = vmax.f32 %v2425_v40, 0.0 }
 0x2cb   : > { %v2347_v14 = vpop.f32.mrf.mxu0  ;;  %v2195_v30 = vpop.f32.mrf.mxu3 }
 0x2cc   : > { %v2512_v39 = vsel %vm733_vm2, %v2457_v9, 0.0  ;;  %v2238_v27 = vadd.f32 %v2195_v30, %v2070_v23 }
 0x2cd   : > { %v2513_v24 = vadd.f32 %v2512_v39, %v2511_v52  ;;  %v1929_v52 = vadd.f32 %v1894_v4, %v4268_v29  ;;  %v1896_v40 = vpop.f32.mrf.mxu1 }
 0x2ce   : > { %v2390_v3 = vadd.f32 %v2347_v14, %v2238_v27  ;;  %v1930_v27 = vadd.f32 %v1896_v40, %v4280_v48 }
 0x2cf   : > { %v2030_v36 = vpop.f32.mrf.mxu2 }
 0x2d0   : > { %v2426_v32 = vadd.f32 %v4293_v21, %v2390_v3  ;;  %v2071_v60 = vadd.f32 %v2030_v36, %v1925_v45 }
 0x2d2   : > { %v2458_v61 = vmax.f32 %v2426_v32, 0.0 }
 0x2d3   : > { %v2350_v25 = vpop.f32.mrf.mxu0  ;;  %v2198_v26 = vpop.f32.mrf.mxu3 }
 0x2d4   : > { %v2514_v19 = vsel %vm733_vm2, %v2458_v61, 0.0  ;;  %v2239_v50 = vadd.f32 %v2198_v26, %v2071_v60 }
 0x2d5   : > { %v2515_v1 = vadd.f32 %v2514_v19, %v2513_v24 }
 0x2d6   : > { %v2391_v7 = vadd.f32 %v2350_v25, %v2239_v50 }
 0x2d7   : > { %v2032_v37 = vpop.f32.mrf.mxu2 }
 0x2d8   : > { %v2427_v10 = vadd.f32 %v4293_v21, %v2391_v7  ;;  %v2072_v8 = vadd.f32 %v2032_v37, %v1926_v33 }
 0x2da   : > { %v2459_v16 = vmax.f32 %v2427_v10, 0.0 }
 0x2db   : > { %v2352_v34 = vpop.f32.mrf.mxu0  ;;  %v2200_v17 = vpop.f32.mrf.mxu3 }
 0x2dc   : > { %v2516_v47 = vsel %vm733_vm2, %v2459_v16, 0.0  ;;  %v2240_v51 = vadd.f32 %v2200_v17, %v2072_v8  ;;  %v2539_v17 = vld [vmem:[%s4546_s4] sm:$0x1] }
 0x2dd   : > { %v2517_v18 = vadd.f32 %v2516_v47, %v2515_v1 }
 0x2de   : > { %v2392_v6 = vadd.f32 %v2352_v34, %v2240_v51 }
 0x2df   : > { %v2035_v41 = vpop.f32.mrf.mxu2 }
 0x2e0   : > { %v2428_v12 = vadd.f32 %v4293_v21, %v2392_v6  ;;  %v2073_v35 = vadd.f32 %v2035_v41, %v1927_v11 }
 0x2e2   : > { %v2460_v56 = vmax.f32 %v2428_v12, 0.0 }
 0x2e3   : > { %v2355_v55 = vpop.f32.mrf.mxu0  ;;  %v2203_v62 = vpop.f32.mrf.mxu3 }
 0x2e4   : > { %v2518_v57 = vsel %vm733_vm2, %v2460_v56, 0.0  ;;  %v2241_v15 = vadd.f32 %v2203_v62, %v2073_v35 }
 0x2e5   : > { %v2519_v63 = vadd.f32 %v2518_v57, %v2517_v18 }
 0x2e6   : > { %v2393_v22 = vadd.f32 %v2355_v55, %v2241_v15 }
 0x2e7   : > { %v2037_v42 = vpop.f32.mrf.mxu2 }
 0x2e8   : > { %v2429_v44 = vadd.f32 %v4293_v21, %v2393_v22  ;;  %v2074_v0 = vadd.f32 %v2037_v42, %v1928_v38 }
 0x2ea   : > { %v2461_v31 = vmax.f32 %v2429_v44, 0.0 }
 0x2eb   : > { %v2357_v43 = vpop.f32.mrf.mxu0  ;;  %v2205_v5 = vpop.f32.mrf.mxu3 }
 0x2ec   : > { %v2520_v54 = vsel %vm733_vm2, %v2461_v31, 0.0  ;;  %v2242_v2 = vadd.f32 %v2205_v5, %v2074_v0 }
 0x2ed   : > { %v2521_v58 = vadd.f32 %v2520_v54, %v2519_v63 }
 0x2ee   : > { %v2394_v46 = vadd.f32 %v2357_v43, %v2242_v2 }
 0x2ef   : > { %v2040_v20 = vpop.f32.mrf.mxu2 }
 0x2f0   : > { %v2430_v59 = vadd.f32 %v4293_v21, %v2394_v46  ;;  %v2075_v49 = vadd.f32 %v2040_v20, %v1929_v52 }
 0x2f2   : > { %v2462_v23 = vmax.f32 %v2430_v59, 0.0 }
 0x2f3   : > { %v2360_v28 = vpop.f32.mrf.mxu0  ;;  %v2208_v9 = vpop.f32.mrf.mxu3 }
 0x2f4   : > { %v2522_v14 = vsel %vm733_vm2, %v2462_v23, 0.0  ;;  %v2243_v30 = vadd.f32 %v2208_v9, %v2075_v49 }
 0x2f5   : > { %v2523_v39 = vadd.f32 %v2522_v14, %v2521_v58 }
 0x2f6   : > { %v2395_v24 = vadd.f32 %v2360_v28, %v2243_v30 }
 0x2f7   : > { %v2042_v45 = vpop.f32.mrf.mxu2 }
 0x2f8   : > { %v2431_v3 = vadd.f32 %v4293_v21, %v2395_v24  ;;  %v2076_v29 = vadd.f32 %v2042_v45, %v1930_v27 }
 0x2fa   : > { %v2463_v36 = vmax.f32 %v2431_v3, 0.0 }
 0x2fb   : > { %v2210_v32 = vpop.f32.mrf.mxu3  ;;  %v2362_v26 = vpop.f32.mrf.mxu0 }
 0x2fc   : > { %v2524_v60 = vsel %vm733_vm2, %v2463_v36, 0.0  ;;  %v2244_v61 = vadd.f32 %v2210_v32, %v2076_v29 }
 0x2fd   : > { %v2525_v25 = vadd.f32 %v2524_v60, %v2523_v39 }
 0x2fe   : > { %v2396_v13 = vadd.f32 %v2362_v26, %v2244_v61 }
 0x300   : > { %v2432_v19 = vadd.f32 %v4293_v21, %v2396_v13 }
 0x302   : > { %v2464_v50 = vmax.f32 %v2432_v19, 0.0 }
 0x304   : > { %v2526_v48 = vsel %vm733_vm2, %v2464_v50, 0.0 }
 0x305   : > { %v2527_v1 = vadd.f32 %v2526_v48, %v2525_v25 }
 0x307   : > { %v2528_v33 = vrot.slane %v2527_v1, 4 }
 0x309   : > { %v2529_v7 = vadd.f32 %v2528_v33, %v2527_v1 }
 0x30b   : > { %v2530_v37 = vrot.slane %v2529_v7, 2 }
 0x30d   : > { %v2531_v10 = vadd.f32 %v2530_v37, %v2529_v7 }
 0x30f   : > { %v2532_v8 = vrot.slane %v2531_v10, 1 }
 0x311   : > { %v2533_v16 = vadd.f32 %v2532_v8, %v2531_v10 }
 0x313   : > { %v2534_v34 = vmul.f32 0.00390625, %v2533_v16 }
 0x315   : > { %2977 = vmatmul.msk.f32.vlgmr.msrb.gmra.mxu1 %vm733_vm2, %v2534_v34 }
 0x392   : > { %v2560_v21 = vpop.f32.mrf.mxu1 }
 0x393   : > { %v2561_v47 = vadd.f32 %v2560_v21, %v2539_v17 }
 0x395   : > { %3063 = vtanh.f32 %v2561_v47 }
 0x39b   : > { %v3064_v51 = vpop.eup %3063 }
 0x39c   : > { %2565 = vst.msk [vmem:[%s216_s15] sm:$0x1] %vm2564_vm7, %v3064_v51 }
 0x39d   : > { %3100 = shalt.err (!%p3097_p3)
}
 0x39e   : > { %3023 = dma.vmem_to_hbm [thread:$0]  (%p3205_p5), %s2578_s16, 16, %s2580_s17, %s2567_s23  }
 0x39f PF: > { %p3029_p4 = scmp.ge.s32.totalorder %s3135_s21, 2  ;;  %s2591_s9 = sand.u32 1, %s3123_s18  }
 0x3a0   : > { %s2592_s10 = scalar_lea.sflag [#allocation3], %s2591_s9 }
 0x3a1   : > { %p3026_p7 = pnand %p3029_p4, %p3209_p6 }
 0x3a3   : > { %p3027_p8 = pneg %p3026_p7 }
 0x3a5   : > { %3118 = dma.done.wait (%p3027_p8), %s2592_s10, 16  }
 0x3a6   : > { %3120 = vsyncadd (%p3027_p8), %s2592_s10, 4294967280  ;;  %p15_p9 = scmp.ge.s32.totalorder %s3192_s24, 4   ;;  %s4709_s18 = smov %s3127_s19 }
 0x3a7   : > { %s4710_s19 = smov %s3131_s20  ;;  %s4711_s20 = smov %s3203_s27 }
 0x3a8   : > { %s4712_s21 = smov %s3192_s24  ;;  %17 = sbr.rel (!%p15_p9) target bundleno = 3 (0x3), region = 83 }
 0x3ad   :  { %2597 = vsyncpa [#allocation3], 1 }
 0x3ae   :  { %2599 = vsyncpa [#allocation3 + $0x1], 1 }

</bundles_post_ra>
